<compile_context>
chip_gen: v7x
topology: tpu7x:2x2x1
jax: 0.10.0
libtpu: 0.0.40
codegen_flags: <defaults>
</compile_context>

<pallas_src>
import functools

import jax
import jax.numpy as jnp
from jax.experimental import pallas as pl
from jax.experimental.pallas import tpu as pltpu


def _round_up(n, m):
    return ((n + m - 1) // m) * m


def _conv3x3_im2col(xpad, w_ref, b_ref, H, W):
    """3x3 'same' conv as a single fused MXU matmul.

    xpad : (H+2, W+2, Cp) value, already zero-padded spatially
    w_ref: (9*Cp, Coutp) ref, taps stacked along K (tap k = ky*3+kx), WS scale
           already folded in
    b_ref: (1, Coutp) fp32 ref
    returns (H*W, Coutp) fp32
    """
    n = H * W
    cp = xpad.shape[-1]
    cols = []
    for ky in range(3):
        for kx in range(3):
            cols.append(xpad[ky:ky + H, kx:kx + W, :].reshape(n, cp))
    # Lane-aligned concat (cp is a multiple of 128) -> (n, 9*cp).
    col = jnp.concatenate(cols, axis=-1).astype(w_ref.dtype)
    y = jnp.dot(col, w_ref[...], preferred_element_type=jnp.float32)
    return y + b_ref[...]


def _convblock_kernel(xp_ref, w1_ref, b1_ref, w2_ref, b2_ref, out_ref, *,
                      H, W, cout_true, use_pn):
    """One batch element per grid step; everything else stays VMEM-resident.

    xp_ref : (1, H+2, W+2, cin_p)   spatially pre-padded, channel padded
    w1_ref : (9*cin_p, cout_p)      scale folded in
    b1_ref : (1, cout_p) fp32
    w2_ref : (9*cout_p, cout_p)
    b2_ref : (1, cout_p) fp32
    out_ref: (1, H, W, cout_p) fp32
    """
    cout_p = out_ref.shape[-1]
    inv_c = jnp.float32(1.0 / cout_true)

    def leaky(v):
        return jnp.where(v > 0, v, 0.2 * v)

    def pixelnorm(v):  # (n, cout_p); padded lanes are zero -> exact mean
        ms = jnp.sum(v * v, axis=-1, keepdims=True) * inv_c
        return v * jax.lax.rsqrt(ms + 1e-8)   # rsqrt -> EUP slot

    # ---- conv1 + LeakyReLU (+ PixelNorm) ----
    h = leaky(_conv3x3_im2col(xp_ref[0], w1_ref, b1_ref, H, W))
    if use_pn:
        h = pixelnorm(h)

    # ---- zero-border padded intermediate built as a VALUE (no scratch) ----
    h3 = h.reshape(H, W, cout_p)
    zrow = jnp.zeros((1, W, cout_p), h3.dtype)
    zcol = jnp.zeros((H + 2, 1, cout_p), h3.dtype)
    hp = jnp.concatenate([zrow, h3, zrow], axis=0)        # (H+2, W,   C)
    hp = jnp.concatenate([zcol, hp, zcol], axis=1)        # (H+2, W+2, C)

    # ---- conv2 + LeakyReLU (+ PixelNorm) ----
    o = leaky(_conv3x3_im2col(hp, w2_ref, b2_ref, H, W))
    if use_pn:
        o = pixelnorm(o)

    out_ref[0] = o.reshape(H, W, cout_p).astype(out_ref.dtype)


def conv_block(x_nchw, w1, b1, w2, b2, *, use_pixelnorm=True,
               compute_dtype=jnp.bfloat16):
    """ProGAN ConvBlock forward.

    x_nchw: (B, Cin, H, W) fp32;  w: (Cout, Cin, 3, 3) OIHW;  b: (Cout,)
    compute_dtype: dtype of the matmul operands (accumulation is fp32).
    Returns (B, Cout, H, W) fp32.
    """
    B, Cin, H, W = x_nchw.shape
    Cout = w1.shape[0]
    cin_p = max(128, _round_up(Cin, 128))
    cout_p = max(128, _round_up(Cout, 128))
    scale1 = (2.0 / (Cin * 9)) ** 0.5
    scale2 = (2.0 / (Cout * 9)) ** 0.5

    # NCHW -> NHWC, zero-pad channels to lane multiple and spatial by 1 (glue).
    x = jnp.transpose(x_nchw, (0, 2, 3, 1)).astype(jnp.float32)
    x = jnp.pad(x, ((0, 0), (1, 1), (1, 1), (0, cin_p - Cin)))
    x = x.astype(compute_dtype)

    def prep_w(w, scale, cin, cin_pad):
        cout = w.shape[0]
        # OIHW -> (ky, kx, Cin, Cout); fold the WS scale into the weight.
        wt = jnp.transpose(w, (2, 3, 1, 0)).astype(jnp.float32) * scale
        wt = jnp.pad(wt, ((0, 0), (0, 0), (0, cin_pad - cin),
                          (0, cout_p - cout)))
        return wt.reshape(9 * cin_pad, cout_p).astype(compute_dtype)

    w1r = prep_w(w1, scale1, Cin, cin_p)
    w2r = prep_w(w2, scale2, Cout, cout_p)
    b1r = jnp.pad(b1.astype(jnp.float32), (0, cout_p - Cout)).reshape(1, cout_p)
    b2r = jnp.pad(b2.astype(jnp.float32), (0, cout_p - Cout)).reshape(1, cout_p)

    kernel = functools.partial(_convblock_kernel, H=H, W=W, cout_true=Cout,
                               use_pn=use_pixelnorm)

    # VMEM budget: blocks (double-buffered) + resident weights + value temps.
    isz = jnp.dtype(compute_dtype).itemsize
    n = H * W
    est = (2 * (H + 2) * (W + 2) * cin_p * isz          # input block x2
           + 2 * n * cout_p * 4                          # output block x2
           + (9 * cin_p + 9 * cout_p) * cout_p * isz     # weights
           + 9 * n * (cin_p + cout_p) * isz              # im2col values
           + (H + 2) * (W + 2) * cout_p * 4              # padded intermediate
           + 6 * n * cout_p * 4)                         # fp32 epilogue temps
    vmem_limit = int(min(max(2 * est, 16 << 20), 48 << 20))

    out_nhwc = pl.pallas_call(
        kernel,
        out_shape=jax.ShapeDtypeStruct((B, H, W, cout_p), jnp.float32),
        grid=(B,),
        in_specs=[
            pl.BlockSpec((1, H + 2, W + 2, cin_p), lambda b: (b, 0, 0, 0)),
            pl.BlockSpec((9 * cin_p, cout_p), lambda b: (0, 0)),
            pl.BlockSpec((1, cout_p), lambda b: (0, 0)),
            pl.BlockSpec((9 * cout_p, cout_p), lambda b: (0, 0)),
            pl.BlockSpec((1, cout_p), lambda b: (0, 0)),
        ],
        out_specs=pl.BlockSpec((1, H, W, cout_p), lambda b: (b, 0, 0, 0)),
        compiler_params=pltpu.CompilerParams(
            dimension_semantics=("parallel",),
            vmem_limit_bytes=vmem_limit),
    )(x, w1r, b1r, w2r, b2r)

    # Drop channel padding (lanes beyond Cout are exact zeros), back to NCHW.
    return jnp.transpose(out_nhwc[..., :Cout], (0, 3, 1, 2))


def _reference(x, w1, b1, w2, b2, use_pn=True):
    """Pure-JAX reference matching the PyTorch forward (NCHW)."""
    def wsconv(x, w, b, cin):
        s = (2.0 / (cin * 9)) ** 0.5
        y = jax.lax.conv_general_dilated(
            x * s, w, window_strides=(1, 1), padding=((1, 1), (1, 1)),
            dimension_numbers=("NCHW", "OIHW", "NCHW"))
        return y + b.reshape(1, -1, 1, 1)

    def leaky(v):
        return jnp.where(v > 0, v, 0.2 * v)

    def pn(v):
        return v / jnp.sqrt(jnp.mean(v * v, axis=1, keepdims=True) + 1e-8)

    h = leaky(wsconv(x, w1, b1, x.shape[1]))
    h = pn(h) if use_pn else h
    o = leaky(wsconv(h, w2, b2, h.shape[1]))
    o = pn(o) if use_pn else o
    return o


if __name__ == "__main__":
    key = jax.random.PRNGKey(0)
    k_x, k_w1, k_w2 = jax.random.split(key, 3)

    B, Cin, Cout, H, W = 2, 4, 8, 16, 16

    x = jax.random.normal(k_x, (B, Cin, H, W), dtype=jnp.float32)
    # Matches WSConv2d.__init__: weight ~ N(0,1), bias = 0.
    w1 = jax.random.normal(k_w1, (Cout, Cin, 3, 3), dtype=jnp.float32)
    b1 = jnp.zeros((Cout,), dtype=jnp.float32)
    w2 = jax.random.normal(k_w2, (Cout, Cout, 3, 3), dtype=jnp.float32)
    b2 = jnp.zeros((Cout,), dtype=jnp.float32)

    ref = _reference(x, w1, b1, w2, b2, use_pn=True)

    # fp32-operand path: matches the PyTorch forward tightly.
    out_f32 = jax.block_until_ready(
        conv_block(x, w1, b1, w2, b2, use_pixelnorm=True,
                   compute_dtype=jnp.float32))
    assert out_f32.shape == (B, Cout, H, W), out_f32.shape
    assert jnp.allclose(out_f32, ref, rtol=1e-4, atol=1e-4), float(
        jnp.max(jnp.abs(out_f32 - ref)))

    # bf16-operand path (v6e/v7x MXU-native), fp32 accumulation.
    out_bf16 = jax.block_until_ready(
        conv_block(x, w1, b1, w2, b2, use_pixelnorm=True,
                   compute_dtype=jnp.bfloat16))
    assert jnp.allclose(out_bf16, ref, rtol=3e-2, atol=3e-2), float(
        jnp.max(jnp.abs(out_bf16 - ref)))

    # use_pixelnorm=False variant.
    ref_np = _reference(x, w1, b1, w2, b2, use_pn=False)
    out_np = jax.block_until_ready(
        conv_block(x, w1, b1, w2, b2, use_pixelnorm=False,
                   compute_dtype=jnp.float32))
    assert jnp.allclose(out_np, ref_np, rtol=1e-4, atol=1e-4), float(
        jnp.max(jnp.abs(out_np - ref_np)))

    print("KERNEL_OK")
</pallas_src>

<mosaic_0001>
module attributes {stable_mosaic.version = 11 : i64} {
  func.func @_convblock_kernel(%arg0: i32, %arg1: memref<1x18x18x128xf32, #tpu.memory_space<vmem>>, %arg2: memref<1152x128xf32, #tpu.memory_space<vmem>>, %arg3: memref<1x128xf32, #tpu.memory_space<vmem>>, %arg4: memref<1152x128xf32, #tpu.memory_space<vmem>>, %arg5: memref<1x128xf32, #tpu.memory_space<vmem>>, %arg6: memref<1x16x16x128xf32, #tpu.memory_space<vmem>>) attributes {dimension_semantics = [#tpu.dimension_semantics<parallel>], iteration_bounds = array<i64: 2>, scalar_prefetch = 0 : i64, scratch_operands = 0 : i64, tpu.core_type = #tpu.core_type<tc>, window_params = [{transform_indices = @transform_0, window_bounds = array<i64: 1, 18, 18, 128>}, {pipeline_mode = #tpu.pipeline_mode<synchronous>, transform_indices = @transform_1, window_bounds = array<i64: 1152, 128>}, {pipeline_mode = #tpu.pipeline_mode<synchronous>, transform_indices = @transform_2, window_bounds = array<i64: 1, 128>}, {pipeline_mode = #tpu.pipeline_mode<synchronous>, transform_indices = @transform_3, window_bounds = array<i64: 1152, 128>}, {pipeline_mode = #tpu.pipeline_mode<synchronous>, transform_indices = @transform_4, window_bounds = array<i64: 1, 128>}, {transform_indices = @transform_5, window_bounds = array<i64: 1, 16, 16, 128>}]} {
    %c0 = arith.constant 0 : index
    %c0_0 = arith.constant 0 : index
    %c0_1 = arith.constant 0 : index
    %c0_2 = arith.constant 0 : index
    %0 = vector.load %arg1[%c0, %c0_0, %c0_1, %c0_2] : memref<1x18x18x128xf32, #tpu.memory_space<vmem>>, vector<1x18x18x128xf32>
    %1 = vector.shape_cast %0 : vector<1x18x18x128xf32> to vector<18x18x128xf32>
    %2 = vector.extract_strided_slice %1 {offsets = [0, 0, 0], sizes = [16, 16, 128], strides = [1, 1, 1]} : vector<18x18x128xf32> to vector<16x16x128xf32>
    %3 = vector.shape_cast %2 : vector<16x16x128xf32> to vector<256x128xf32>
    %4 = vector.extract_strided_slice %1 {offsets = [0, 1, 0], sizes = [16, 16, 128], strides = [1, 1, 1]} : vector<18x18x128xf32> to vector<16x16x128xf32>
    %5 = vector.shape_cast %4 : vector<16x16x128xf32> to vector<256x128xf32>
    %6 = vector.extract_strided_slice %1 {offsets = [0, 2, 0], sizes = [16, 16, 128], strides = [1, 1, 1]} : vector<18x18x128xf32> to vector<16x16x128xf32>
    %7 = vector.shape_cast %6 : vector<16x16x128xf32> to vector<256x128xf32>
    %8 = vector.extract_strided_slice %1 {offsets = [1, 0, 0], sizes = [16, 16, 128], strides = [1, 1, 1]} : vector<18x18x128xf32> to vector<16x16x128xf32>
    %9 = vector.shape_cast %8 : vector<16x16x128xf32> to vector<256x128xf32>
    %10 = vector.extract_strided_slice %1 {offsets = [1, 1, 0], sizes = [16, 16, 128], strides = [1, 1, 1]} : vector<18x18x128xf32> to vector<16x16x128xf32>
    %11 = vector.shape_cast %10 : vector<16x16x128xf32> to vector<256x128xf32>
    %12 = vector.extract_strided_slice %1 {offsets = [1, 2, 0], sizes = [16, 16, 128], strides = [1, 1, 1]} : vector<18x18x128xf32> to vector<16x16x128xf32>
    %13 = vector.shape_cast %12 : vector<16x16x128xf32> to vector<256x128xf32>
    %14 = vector.extract_strided_slice %1 {offsets = [2, 0, 0], sizes = [16, 16, 128], strides = [1, 1, 1]} : vector<18x18x128xf32> to vector<16x16x128xf32>
    %15 = vector.shape_cast %14 : vector<16x16x128xf32> to vector<256x128xf32>
    %16 = vector.extract_strided_slice %1 {offsets = [2, 1, 0], sizes = [16, 16, 128], strides = [1, 1, 1]} : vector<18x18x128xf32> to vector<16x16x128xf32>
    %17 = vector.shape_cast %16 : vector<16x16x128xf32> to vector<256x128xf32>
    %18 = vector.extract_strided_slice %1 {offsets = [2, 2, 0], sizes = [16, 16, 128], strides = [1, 1, 1]} : vector<18x18x128xf32> to vector<16x16x128xf32>
    %19 = vector.shape_cast %18 : vector<16x16x128xf32> to vector<256x128xf32>
    %20 = tpu.concatenate %3, %5, %7, %9, %11, %13, %15, %17, %19 in 1 : vector<256x128xf32>, vector<256x128xf32>, vector<256x128xf32>, vector<256x128xf32>, vector<256x128xf32>, vector<256x128xf32>, vector<256x128xf32>, vector<256x128xf32>, vector<256x128xf32> -> vector<256x1152xf32>
    %c0_3 = arith.constant 0 : index
    %c0_4 = arith.constant 0 : index
    %21 = vector.load %arg2[%c0_3, %c0_4] : memref<1152x128xf32, #tpu.memory_space<vmem>>, vector<1152x128xf32>
    %cst = arith.constant dense<0.000000e+00> : vector<256x128xf32>
    %22 = tpu.matmul %20, %21, %cst {dimension_numbers = #tpu.dot_dimension_numbers<[1], [0], [0], [1], [0, 0, 1, 1], [], []>} : vector<256x1152xf32>, vector<1152x128xf32>, vector<256x128xf32> -> vector<256x128xf32>
    %c0_5 = arith.constant 0 : index
    %c0_6 = arith.constant 0 : index
    %23 = vector.load %arg3[%c0_5, %c0_6] : memref<1x128xf32, #tpu.memory_space<vmem>>, vector<1x128xf32>
    %24 = vector.broadcast %23 : vector<1x128xf32> to vector<256x128xf32>
    %25 = arith.addf %22, %24 : vector<256x128xf32>
    %cst_7 = arith.constant 0.000000e+00 : f32
    %26 = vector.broadcast %cst_7 : f32 to vector<256x128xf32>
    %27 = arith.cmpf ogt, %25, %26 : vector<256x128xf32>
    %cst_8 = arith.constant 2.000000e-01 : f32
    %28 = vector.broadcast %cst_8 : f32 to vector<256x128xf32>
    %29 = arith.mulf %28, %25 : vector<256x128xf32>
    %30 = arith.select %27, %25, %29 : vector<256x128xi1>, vector<256x128xf32>
    %31 = arith.mulf %30, %30 : vector<256x128xf32>
    %cst_9 = arith.constant dense<0.000000e+00> : vector<256xf32>
    %32 = vector.multi_reduction <add>, %31, %cst_9 [1] : vector<256x128xf32> to vector<256xf32>
    %33 = vector.shape_cast %32 : vector<256xf32> to vector<256x1xf32>
    %cst_10 = arith.constant 1.250000e-01 : f32
    %34 = vector.broadcast %cst_10 : f32 to vector<256x1xf32>
    %35 = arith.mulf %33, %34 : vector<256x1xf32>
    %cst_11 = arith.constant 9.99999993E-9 : f32
    %36 = vector.broadcast %cst_11 : f32 to vector<256x1xf32>
    %37 = arith.addf %35, %36 : vector<256x1xf32>
    %38 = math.rsqrt %37 : vector<256x1xf32>
    %39 = vector.broadcast %38 : vector<256x1xf32> to vector<256x128xf32>
    %40 = arith.mulf %30, %39 : vector<256x128xf32>
    %41 = vector.shape_cast %40 : vector<256x128xf32> to vector<16x16x128xf32>
    %cst_12 = arith.constant 0.000000e+00 : f32
    %42 = vector.broadcast %cst_12 : f32 to vector<1x16x128xf32>
    %cst_13 = arith.constant 0.000000e+00 : f32
    %43 = vector.broadcast %cst_13 : f32 to vector<18x1x128xf32>
    %44 = tpu.concatenate %42, %41, %42 in 0 : vector<1x16x128xf32>, vector<16x16x128xf32>, vector<1x16x128xf32> -> vector<18x16x128xf32>
    %45 = tpu.concatenate %43, %44, %43 in 1 : vector<18x1x128xf32>, vector<18x16x128xf32>, vector<18x1x128xf32> -> vector<18x18x128xf32>
    %46 = vector.extract_strided_slice %45 {offsets = [0, 0, 0], sizes = [16, 16, 128], strides = [1, 1, 1]} : vector<18x18x128xf32> to vector<16x16x128xf32>
    %47 = vector.shape_cast %46 : vector<16x16x128xf32> to vector<256x128xf32>
    %48 = vector.extract_strided_slice %45 {offsets = [0, 1, 0], sizes = [16, 16, 128], strides = [1, 1, 1]} : vector<18x18x128xf32> to vector<16x16x128xf32>
    %49 = vector.shape_cast %48 : vector<16x16x128xf32> to vector<256x128xf32>
    %50 = vector.extract_strided_slice %45 {offsets = [0, 2, 0], sizes = [16, 16, 128], strides = [1, 1, 1]} : vector<18x18x128xf32> to vector<16x16x128xf32>
    %51 = vector.shape_cast %50 : vector<16x16x128xf32> to vector<256x128xf32>
    %52 = vector.extract_strided_slice %45 {offsets = [1, 0, 0], sizes = [16, 16, 128], strides = [1, 1, 1]} : vector<18x18x128xf32> to vector<16x16x128xf32>
    %53 = vector.shape_cast %52 : vector<16x16x128xf32> to vector<256x128xf32>
    %54 = vector.extract_strided_slice %45 {offsets = [1, 1, 0], sizes = [16, 16, 128], strides = [1, 1, 1]} : vector<18x18x128xf32> to vector<16x16x128xf32>
    %55 = vector.shape_cast %54 : vector<16x16x128xf32> to vector<256x128xf32>
    %56 = vector.extract_strided_slice %45 {offsets = [1, 2, 0], sizes = [16, 16, 128], strides = [1, 1, 1]} : vector<18x18x128xf32> to vector<16x16x128xf32>
    %57 = vector.shape_cast %56 : vector<16x16x128xf32> to vector<256x128xf32>
    %58 = vector.extract_strided_slice %45 {offsets = [2, 0, 0], sizes = [16, 16, 128], strides = [1, 1, 1]} : vector<18x18x128xf32> to vector<16x16x128xf32>
    %59 = vector.shape_cast %58 : vector<16x16x128xf32> to vector<256x128xf32>
    %60 = vector.extract_strided_slice %45 {offsets = [2, 1, 0], sizes = [16, 16, 128], strides = [1, 1, 1]} : vector<18x18x128xf32> to vector<16x16x128xf32>
    %61 = vector.shape_cast %60 : vector<16x16x128xf32> to vector<256x128xf32>
    %62 = vector.extract_strided_slice %45 {offsets = [2, 2, 0], sizes = [16, 16, 128], strides = [1, 1, 1]} : vector<18x18x128xf32> to vector<16x16x128xf32>
    %63 = vector.shape_cast %62 : vector<16x16x128xf32> to vector<256x128xf32>
    %64 = tpu.concatenate %47, %49, %51, %53, %55, %57, %59, %61, %63 in 1 : vector<256x128xf32>, vector<256x128xf32>, vector<256x128xf32>, vector<256x128xf32>, vector<256x128xf32>, vector<256x128xf32>, vector<256x128xf32>, vector<256x128xf32>, vector<256x128xf32> -> vector<256x1152xf32>
    %c0_14 = arith.constant 0 : index
    %c0_15 = arith.constant 0 : index
    %65 = vector.load %arg4[%c0_14, %c0_15] : memref<1152x128xf32, #tpu.memory_space<vmem>>, vector<1152x128xf32>
    %cst_16 = arith.constant dense<0.000000e+00> : vector<256x128xf32>
    %66 = tpu.matmul %64, %65, %cst_16 {dimension_numbers = #tpu.dot_dimension_numbers<[1], [0], [0], [1], [0, 0, 1, 1], [], []>} : vector<256x1152xf32>, vector<1152x128xf32>, vector<256x128xf32> -> vector<256x128xf32>
    %c0_17 = arith.constant 0 : index
    %c0_18 = arith.constant 0 : index
    %67 = vector.load %arg5[%c0_17, %c0_18] : memref<1x128xf32, #tpu.memory_space<vmem>>, vector<1x128xf32>
    %68 = vector.broadcast %67 : vector<1x128xf32> to vector<256x128xf32>
    %69 = arith.addf %66, %68 : vector<256x128xf32>
    %cst_19 = arith.constant 0.000000e+00 : f32
    %70 = vector.broadcast %cst_19 : f32 to vector<256x128xf32>
    %71 = arith.cmpf ogt, %69, %70 : vector<256x128xf32>
    %cst_20 = arith.constant 2.000000e-01 : f32
    %72 = vector.broadcast %cst_20 : f32 to vector<256x128xf32>
    %73 = arith.mulf %72, %69 : vector<256x128xf32>
    %74 = arith.select %71, %69, %73 : vector<256x128xi1>, vector<256x128xf32>
    %75 = arith.mulf %74, %74 : vector<256x128xf32>
    %cst_21 = arith.constant dense<0.000000e+00> : vector<256xf32>
    %76 = vector.multi_reduction <add>, %75, %cst_21 [1] : vector<256x128xf32> to vector<256xf32>
    %77 = vector.shape_cast %76 : vector<256xf32> to vector<256x1xf32>
    %cst_22 = arith.constant 1.250000e-01 : f32
    %78 = vector.broadcast %cst_22 : f32 to vector<256x1xf32>
    %79 = arith.mulf %77, %78 : vector<256x1xf32>
    %cst_23 = arith.constant 9.99999993E-9 : f32
    %80 = vector.broadcast %cst_23 : f32 to vector<256x1xf32>
    %81 = arith.addf %79, %80 : vector<256x1xf32>
    %82 = math.rsqrt %81 : vector<256x1xf32>
    %83 = vector.broadcast %82 : vector<256x1xf32> to vector<256x128xf32>
    %84 = arith.mulf %74, %83 : vector<256x128xf32>
    %85 = vector.shape_cast %84 : vector<256x128xf32> to vector<16x16x128xf32>
    %c0_24 = arith.constant 0 : index
    %c0_25 = arith.constant 0 : index
    %c0_26 = arith.constant 0 : index
    %c0_27 = arith.constant 0 : index
    %86 = vector.load %arg6[%c0_24, %c0_25, %c0_26, %c0_27] : memref<1x16x16x128xf32, #tpu.memory_space<vmem>>, vector<1x16x16x128xf32>
    %87 = vector.shape_cast %86 : vector<1x16x16x128xf32> to vector<16x16x128xf32>
    %88 = vector.shape_cast %85 : vector<16x16x128xf32> to vector<1x16x16x128xf32>
    tpu.vector_store %arg6[%c0_24, %c0_25, %c0_26, %c0_27], %88 {strides = array<i32>} : memref<1x16x16x128xf32, #tpu.memory_space<vmem>>, vector<1x16x16x128xf32>,
    return
  }
  func.func @transform_0(%arg0: i32) -> (i32, i32, i32, i32) {
    %c0_i32 = arith.constant 0 : i32
    %c0_i32_0 = arith.constant 0 : i32
    %c0_i32_1 = arith.constant 0 : i32
    %c0_i32_2 = arith.constant 0 : i32
    return %arg0, %c0_i32, %c0_i32_0, %c0_i32_1 : i32, i32, i32, i32
  }
  func.func @transform_1(%arg0: i32) -> (i32, i32) {
    %c0_i32 = arith.constant 0 : i32
    %c0_i32_0 = arith.constant 0 : i32
    %c0_i32_1 = arith.constant 0 : i32
    return %c0_i32, %c0_i32_0 : i32, i32
  }
  func.func @transform_2(%arg0: i32) -> (i32, i32) {
    %c0_i32 = arith.constant 0 : i32
    %c0_i32_0 = arith.constant 0 : i32
    %c0_i32_1 = arith.constant 0 : i32
    return %c0_i32, %c0_i32_0 : i32, i32
  }
  func.func @transform_3(%arg0: i32) -> (i32, i32) {
    %c0_i32 = arith.constant 0 : i32
    %c0_i32_0 = arith.constant 0 : i32
    %c0_i32_1 = arith.constant 0 : i32
    return %c0_i32, %c0_i32_0 : i32, i32
  }
  func.func @transform_4(%arg0: i32) -> (i32, i32) {
    %c0_i32 = arith.constant 0 : i32
    %c0_i32_0 = arith.constant 0 : i32
    %c0_i32_1 = arith.constant 0 : i32
    return %c0_i32, %c0_i32_0 : i32, i32
  }
  func.func @transform_5(%arg0: i32) -> (i32, i32, i32, i32) {
    %c0_i32 = arith.constant 0 : i32
    %c0_i32_0 = arith.constant 0 : i32
    %c0_i32_1 = arith.constant 0 : i32
    %c0_i32_2 = arith.constant 0 : i32
    return %arg0, %c0_i32, %c0_i32_0, %c0_i32_1 : i32, i32, i32, i32
  }
}

</mosaic_0001>

<bundles_post_ra>
// kernel: tpu_custom_call.1
= control target key start
LH: loop header
LB: loop body
LE: loop exit
PB: predicated region body
PF: predicated region fallthrough
CT: control target
= control target key end

     0   :  { %10 = vsyncpa [#allocation3], 0  ;;  %s8896_s0 = inlined_call_operand.vmem [shape: f32[2,18,18,128], index: 0, kind: input, shape index: {}]   ;;  %s8897_s1 = inlined_call_operand.vmem [shape: f32[1152,128], index: 1, kind: input, shape index: {}]   ;;  %s8898_s2 = inlined_call_operand.vmem [shape: f32[1,128], index: 2, kind: input, shape index: {}]   ;;  %s8899_s3 = inlined_call_operand.hbm [shape: f32[1152,128], index: 3, kind: input, shape index: {}]   ;;  %s8900_s4 = inlined_call_operand.vmem [shape: f32[1,128], index: 4, kind: input, shape index: {}]   ;;  %s8901_s5 = inlined_call_operand.hbm [shape: f32[2,16,16,128], index: 5, kind: output, shape index: {}]  }
   0x1   :  { %11 = vsyncpa [#allocation4], 0 }
   0x2   :  { %13 = vsyncpa [#allocation4 + $0x1], 0  ;;  %s5979_s18 = smov 0   ;;  %s5981_s19 = smov 0  }
   0x3   :  { %s5983_s20 = smov 0   ;;  %s5985_s21 = smov 0  }
   0x4 LB: > { %s6000_s22 = sadd.s32 4294967295, %s5939_s21   ;;  %s4352_s23 = sadd.s32 4294967294, %s5939_s21   ;;  %s5939_s21 = sphi %s5985_s21, %s9316_s21   ;;  %s5935_s20 = sphi %s5983_s20, %s9315_s20   ;;  %s5931_s19 = sphi %s5981_s19, %s9314_s19   ;;  %s5927_s18 = sphi %s5979_s18, %s9313_s18  }
   0x5   : > { %s6004_s24 = sadd.s32 1, %s5939_s21   ;;  %s136_s25 = sadd.s32 1, %s5935_s20 }
   0x6   : > { %s133_s26 = ssub.s32 %s5939_s21, %s6004_s24  ;;  %p146_p0 = scmp.ne.s32.totalorder %s5935_s20, %s5931_s19 }
   0x7   : > { %p134_p1 = scmp.eq.s32.totalorder %s133_s26, 0  ;;  %p147_p2 = scmp.eq.s32.totalorder %s6000_s22, 1 }
   0x8   : > { %p152_p3 = scmp.ne.s32.totalorder %s5931_s19, %s5927_s18  ;;  %p153_p4 = scmp.eq.s32.totalorder %s4352_s23, 1 }
   0x9   : > { %s6015_s27 = scalar_select %p134_p1, %s5935_s20, %s136_s25  }
   0xa   : > { %p6017_p5 = por %p147_p2, %p146_p0  ;;  %p6021_p6 = por %p153_p4, %p152_p3 }
   0xb   : > { %p4353_p7 = scmp.ge.s32.totalorder %s5939_s21, 1  ;;  %p160_p8 = scmp.lt.s32.totalorder %s5939_s21, 3 }
   0xc   : > { %s9069_s28 = scalar_select %p6017_p5, 1, 0 }
   0xd   : > { %s9070_s29 = scalar_select %p6021_p6, 1, 0 }
   0xe   : > { %p8902_p9 = scmp.eq.s32.totalorder %s6000_s22, 0  ;;  %p6028_p10 = pnand %p4353_p7, %p160_p8 }
   0xf   : > { %s5941_s6 = smov [#allocation2]   ;;  %s5845_s11 = scalar_lea.hbm %s8899_s3, 18432 }
  0x10   : > { %s9071_s30 = scalar_select %p6028_p10, 1, 0 }
  0x11   : > { %s178_s7 = sshll.u32 %s5941_s6, 4  ;;  %p5639_p11 = pneg %p6028_p10  ;;  %s179_s7 = int_to_ptr.vmem [resolvable:$true] %s178_s7 }
  0x12   : > { %p5846_p13 = scmp.ne.s32.totalorder %s8899_s3, %s5845_s11  ;;  %p5852_p3 = scmp.lt.u32.totalorder %s5845_s11, %s8899_s3 }
  0x13   : > { %p6036_p12 = pnand %p8902_p9, %p5639_p11 }
  0x15   : > { %p5847_p0 = pneg %p6036_p12 }
  0x17   : > { %p5848_p1 = pnand %p5847_p0, %p5846_p13 }
  0x19   : > { %p5849_p2 = pneg %p5848_p1 }
  0x1b   : > { %p5854_p4 = pnand %p5852_p3, %p5849_p2 }
  0x1d   : > { %5857 = shalt.err (!%p5854_p4)
}
  0x1e   : > { %s5858_s16 = scalar_lea.vmem %s179_s7, 18432  ;;  %p5866_p9 = scmp.lt.s32.totalorder %s179_s7, %s179_s7 }
  0x1f   : > { %p5859_p7 = scmp.ne.s32.totalorder %s179_s7, %s5858_s16  ;;  %p5867_p6 = scmp.lt.s32.totalorder %s5858_s16, %s5858_s16 }
  0x21   : > { %p5861_p8 = pnand %p5859_p7, %p5847_p0  ;;  %p5868_p5 = por %p5867_p6, %p5866_p9 }
  0x23   : > { %p5862_p11 = pneg %p5861_p8 }
  0x25   : > { %p5869_p10 = pnand %p5868_p5, %p5862_p11 }
  0x27   : > { %5872 = shalt.err (!%p5869_p10)
}
  0x28   : > { %s5942_s17 = smov 128   ;;  %s5943_s23 = smov 8  }
  0x29   : > { %5642 = dma.hbm_to_vmem [thread:$0]  (!%p6036_p12), %s8899_s3, 18432, %s179_s7, [#allocation3], %s5942_s17, %s5942_s17, %s5943_s23  }
  0x2a   : > { %p9073_p13 = scmp.ne.s32.totalorder %s9071_s30, 0 }
  0x2c   : > { %205 = sbr.rel (%p9073_p13) target bundleno = 1805 (0x70d), region = 40 }
  0x33   : > { %p9074_p1 = scmp.eq.s32.totalorder %s6000_s22, 0 }
  0x35   : > { %5918 = dma.done.wait (%p9074_p1), [#allocation3], 18432   ;;  %p9075_p0 = pmov %p9074_p1 }
  0x36   : > { %v8906_v0 = vmov 0.0|0.0   ;;  %p233_p5 = scmp.lt.s32.totalorder %s6000_s22, 1  ;;  %v600_v1 = vld [vmem:[%s8897_s1] sm:$0xff]  ;;  %v601_v2 = vld [vmem:[%s8897_s1 + $0x8] sm:$0xff]  ;;  %v602_v3 = vld [vmem:[%s8897_s1 + $0x10] sm:$0xff]  ;;  %vm340_vm0 = vcmask 1046528  }
  0x37   : > { %5920 = vsyncadd (%p9075_p0), [#allocation3], 4294948864  ;;  %4720 = vmatprep.subr.bf16.mxu0 %v8906_v0  ;;  %v4721_v4 = vpack.c.bf16 %v601_v2, %v600_v1  ;;  %v603_v5 = vld [vmem:[%s8897_s1 + $0x18] sm:$0xff]  ;;  %v604_v7 = vld [vmem:[%s8897_s1 + $0x20] sm:$0xff]  ;;  %vm453_vm1 = vcmask 1045504   ;;  %vm2229_vm11 = vcmask 1040384  }
  0x38   : > { %s234_s6 = scalar_select %p233_p5, %s6000_s22, 1  ;;  %v4724_v6 = vpack.c.bf16 %v603_v5, %v602_v3  ;;  %v605_v8 = vld [vmem:[%s8897_s1 + $0x28] sm:$0xff]  ;;  %v606_v10 = vld [vmem:[%s8897_s1 + $0x30] sm:$0xff]  ;;  %v607_v11 = vld [vmem:[%s8897_s1 + $0x38] sm:$0xff] }
  0x39   : > { %4722 = vmatpush1.bf16.msra.mxu0 %v4721_v4  ;;  %v4727_v9 = vpack.c.bf16 %v605_v8, %v604_v7  ;;  %v4730_v13 = vpack.c.bf16 %v607_v11, %v606_v10  ;;  %v608_v16 = vld [vmem:[%s8897_s1 + $0x40] sm:$0xff]  ;;  %v609_v17 = vld [vmem:[%s8897_s1 + $0x48] sm:$0xff]  ;;  %v610_v21 = vld [vmem:[%s8897_s1 + $0x50] sm:$0xff]  ;;  %s230_s15 = sand.u32 1, %s5931_s19   ;;  %s4463_s23 = sshll.u32 %s6000_s22, 12 }
  0x3a   : > { %s5632_s14 = smul.u32 432, %s234_s6  ;;  %4723 = vmatprep.subr.bf16.mxu0 %v8906_v0  ;;  %v4733_v20 = vpack.c.bf16 %v609_v17, %v608_v16  ;;  %v611_v22 = vld [vmem:[%s8897_s1 + $0x58] sm:$0xff]  ;;  %v612_v24 = vld [vmem:[%s8897_s1 + $0x60] sm:$0xff]  ;;  %v613_v25 = vld [vmem:[%s8897_s1 + $0x68] sm:$0xff]  ;;  %s4358_s16 = sshll.u32 %s230_s15, 8 }
  0x3b   : > { %v4736_v23 = vpack.c.bf16 %v611_v22, %v610_v21  ;;  %v4739_v26 = vpack.c.bf16 %v613_v25, %v612_v24  ;;  %v614_v27 = vld [vmem:[%s8897_s1 + $0x70] sm:$0xff]  ;;  %v615_v28 = vld [vmem:[%s8897_s1 + $0x78] sm:$0xff]  ;;  %v616_v30 = vld [vmem:[%s8897_s1 + $0x80] sm:$0xff]  ;;  %s8779_s17 = scalar_lea.vmem [#allocation5], %s4358_s16  ;;  %s8846_s9 = scalar_lea.hbm %s8901_s5, %s4463_s23 }
  0x3c   : > { %s6087_s8 = scalar_lea.vmem %s8896_s0, %s5632_s14  ;;  %v4742_v29 = vpack.c.bf16 %v615_v28, %v614_v27  ;;  %v617_v31 = vld [vmem:[%s8897_s1 + $0x88] sm:$0xff]  ;;  %v618_v33 = vld [vmem:[%s8897_s1 + $0x90] sm:$0xff]  ;;  %v619_v34 = vld [vmem:[%s8897_s1 + $0x98] sm:$0xff]  ;;  %s4278_s25 = sshll.u32 %s8779_s17, 4  ;;  %s8848_s25 = int_to_ptr.vmem [resolvable:$true] %s4278_s25 }
  0x3d   : > { %4725 = vmatpush1.bf16.msra.mxu0 %v4724_v6  ;;  %v6097_v12 = vld [vmem:[%s6087_s8] sm:$0xff]  ;;  %v6100_v14 = vld [vmem:[%s6087_s8 + $0x8] sm:$0xff]  ;;  %v4745_v32 = vpack.c.bf16 %v617_v31, %v616_v30  ;;  %v4748_v35 = vpack.c.bf16 %v619_v34, %v618_v33  ;;  %v622_v39 = vld [vmem:[%s8897_s1 + $0xb0] sm:$0xff]  ;;  %s8855_s22 = scalar_lea.sflag [#allocation4], %s230_s15  ;;  %s5873_s7 = scalar_lea.vmem %s8848_s25, 4096 }
  0x3e   : > { %4726 = vmatprep.subr.bf16.mxu0 %v8906_v0  ;;  %v341_v15 = vrot.slane %v6097_v12, 1  ;;  %v342_v18 = vrot.slane %v6100_v14, 1  ;;  %v620_v36 = vld [vmem:[%s8897_s1 + $0xa0] sm:$0xff]  ;;  %v621_v37 = vld [vmem:[%s8897_s1 + $0xa8] sm:$0xff]  ;;  %v623_v40 = vld [vmem:[%s8897_s1 + $0xb8] sm:$0xff]  ;;  %v454_v55 = vrot.slane %v6097_v12, 2  ;;  %p5874_p6 = scmp.ne.s32.totalorder %s8848_s25, %s5873_s7 }
  0x3f   : > { %v4751_v38 = vpack.c.bf16 %v621_v37, %v620_v36  ;;  %v4754_v41 = vpack.c.bf16 %v623_v40, %v622_v39  ;;  %v624_v42 = vld [vmem:[%s8897_s1 + $0xc0] sm:$0xff]  ;;  %v625_v43 = vld [vmem:[%s8897_s1 + $0xc8] sm:$0xff]  ;;  %v626_v45 = vld [vmem:[%s8897_s1 + $0xd0] sm:$0xff]  ;;  %v455_v56 = vrot.slane %v6100_v14, 2  ;;  %p9311_p9 = scmp.ne.s32.totalorder %s9069_s28, 0  ;;  %s5946_s30 = smov [#allocation5]  }
  0x40   : > { %v343_v19 = vsel %vm340_vm0, %v341_v15, %v342_v18  ;;  %v4757_v44 = vpack.c.bf16 %v625_v43, %v624_v42  ;;  %v627_v46 = vld [vmem:[%s8897_s1 + $0xd8] sm:$0xff]  ;;  %v628_v48 = vld [vmem:[%s8897_s1 + $0xe0] sm:$0xff]  ;;  %v629_v49 = vld [vmem:[%s8897_s1 + $0xe8] sm:$0xff]  ;;  %s5877_s10 = sshll.u32 %s5946_s30, 4  ;;  %s5878_s10 = int_to_ptr.vmem [resolvable:$false] %s5877_s10 }
  0x41   : > { %4728 = vmatpush1.bf16.msra.mxu0 %v4727_v9  ;;  %815 = vmatprep.mubr.f32.mxu0 %v343_v19  ;;  %v4760_v47 = vpack.c.bf16 %v627_v46, %v626_v45  ;;  %v4763_v50 = vpack.c.bf16 %v629_v49, %v628_v48  ;;  %v630_v51 = vld [vmem:[%s8897_s1 + $0xf0] sm:$0xff]  ;;  %v631_v52 = vld [vmem:[%s8897_s1 + $0xf8] sm:$0xff]  ;;  %v632_v57 = vld [vmem:[%s8897_s1 + $0x100] sm:$0xff]  ;;  %v6220_v5 = vsel %vm453_vm1, %v454_v55, %v455_v56  ;;  %p5875_p10 = pnand %p5874_p6, %p9311_p9  ;;  %s5879_s11 = scalar_lea.vmem %s5878_s10, 8192 }
  0x42   : > { %4729 = vmatprep.subr.bf16.mxu0 %v8906_v0  ;;  %v240_v53 = vld [vmem:[%s6087_s8 + $0x10] sm:$0x3]  ;;  %v4766_v54 = vpack.c.bf16 %v631_v52, %v630_v51  ;;  %v633_v58 = vld [vmem:[%s8897_s1 + $0x108] sm:$0xff]  ;;  %v6202_v60 = vld [vmem:[%s6087_s8 + $0x18] sm:$0xff]  ;;  %p5880_p2 = scmp.lt.s32.totalorder %s8848_s25, %s5878_s10  ;;  %p5881_p3 = scmp.lt.s32.totalorder %s5879_s11, %s5873_s7 }
  0x43   : > { %v344_v59 = vrot.slane %v240_v53, 1  ;;  %v6205_v61 = vld [vmem:[%s6087_s8 + $0x20] sm:$0xff]  ;;  %v4769_v62 = vpack.c.bf16 %v633_v58, %v632_v57  ;;  %v346_v1 = vrot.slane %v6202_v60, 1  ;;  %v634_v3 = vld [vmem:[%s8897_s1 + $0x110] sm:$0xff]  ;;  %v635_v4 = vld [vmem:[%s8897_s1 + $0x118] sm:$0xff]  ;;  %v457_v8 = vrot.slane %v240_v53, 2  ;;  %p5876_p12 = pneg %p5875_p10 }
  0x44   : > { %v347_v2 = vrot.slane %v6205_v61, 1  ;;  %v6223_v6 = vld [vmem:[%s6087_s8 + $0x28] sm:$0x3]  ;;  %v4772_v7 = vpack.c.bf16 %v635_v4, %v634_v3  ;;  %v636_v11 = vld [vmem:[%s8897_s1 + $0x120] sm:$0xff]  ;;  %v6241_v15 = vld [vmem:[%s6087_s8 + $0x38] sm:$0xff]  ;;  %p5882_p4 = por %p5881_p3, %p5880_p2 }
  0x45   : > { %4731 = vmatpush1.bf16.msra.mxu0 %v4730_v13  ;;  %v345_v63 = vsel %vm340_vm0, %v342_v18, %v344_v59  ;;  %v349_v10 = vrot.slane %v6223_v6, 1  ;;  %v6238_v13 = vld [vmem:[%s6087_s8 + $0x30] sm:$0xff]  ;;  %v6244_v16 = vsel %vm453_vm1, %v455_v56, %v457_v8  ;;  %v6261_v22 = vld [vmem:[%s6087_s8 + $0x40] sm:$0x3]  ;;  %v641_v27 = vld [vmem:[%s8897_s1 + $0x148] sm:$0xff] }
  0x46   : > { %4732 = vmatprep.subr.bf16.mxu0 %v8906_v0  ;;  %v6227_v9 = vsel %vm340_vm0, %v346_v1, %v347_v2  ;;  %v351_v19 = vrot.slane %v6238_v13, 1  ;;  %v638_v21 = vld [vmem:[%s8897_s1 + $0x130] sm:$0xff]  ;;  %v354_v25 = vrot.slane %v6261_v22, 1  ;;  %v6277_v28 = vld [vmem:[%s6087_s8 + $0x48] sm:$0xff]  ;;  %v464_v31 = vrot.slane %v6238_v13, 2  ;;  %v643_v37 = vld [vmem:[%s8897_s1 + $0x158] sm:$0xff]  ;;  %p5883_p7 = pnand %p5882_p4, %p5876_p12 }
  0x47   : > { %v6249_v18 = vsel %vm340_vm0, %v347_v2, %v349_v10  ;;  %v356_v34 = vrot.slane %v6277_v28, 1  ;;  %v642_v36 = vld [vmem:[%s8897_s1 + $0x150] sm:$0xff]  ;;  %v644_v43 = vld [vmem:[%s8897_s1 + $0x160] sm:$0xff]  ;;  %v6324_v46 = vld [vmem:[%s6087_s8 + $0x68] sm:$0xff] }
  0x48   : > { %v4784_v40 = vpack.c.bf16 %v643_v37, %v642_v36  ;;  %v6321_v45 = vld [vmem:[%s6087_s8 + $0x60] sm:$0xff]  ;;  %v646_v51 = vld [vmem:[%s8897_s1 + $0x170] sm:$0xff]  ;;  %v647_v52 = vld [vmem:[%s8897_s1 + $0x178] sm:$0xff] }
  0x49   : > { %4734 = vmatpush1.bf16.msra.mxu0 %v4733_v20  ;;  %v352_v20 = vrot.slane %v6241_v15, 1  ;;  %v361_v49 = vrot.slane %v6321_v45, 1  ;;  %v6341_v53 = vld [vmem:[%s6087_s8 + $0x70] sm:$0x3]  ;;  %v648_v57 = vld [vmem:[%s8897_s1 + $0x180] sm:$0xff]  ;;  %v649_v58 = vld [vmem:[%s8897_s1 + $0x188] sm:$0xff] }
  0x4a   : > { %4735 = vmatprep.subr.bf16.mxu0 %v8906_v0  ;;  %v364_v56 = vrot.slane %v6341_v53, 1  ;;  %v6357_v59 = vld [vmem:[%s6087_s8 + $0x78] sm:$0xff]  ;;  %v650_v4 = vld [vmem:[%s8897_s1 + $0x190] sm:$0xff]  ;;  %v6377_v8 = vld [vmem:[%s6087_s8 + $0x88] sm:$0x3] }
  0x4b   : > { %v6266_v24 = vsel %vm340_vm0, %v351_v19, %v352_v20  ;;  %v6287_v33 = vsel %vm340_vm0, %v352_v20, %v354_v25  ;;  %v366_v2 = vrot.slane %v6357_v59, 1  ;;  %v653_v19 = vld [vmem:[%s8897_s1 + $0x1a8] sm:$0xff]  ;;  %v6393_v20 = vld [vmem:[%s6087_s8 + $0x90] sm:$0xff]  ;;  %v656_v37 = vld [vmem:[%s8897_s1 + $0x1c0] sm:$0xff] }
  0x4c   : > { %v371_v25 = vrot.slane %v6393_v20, 1  ;;  %vm7491_vm13 = vmneg %vm2229_vm11 }
  0x4d   : > { %4737 = vmatpush1.bf16.msra.mxu0 %v4736_v23 }
  0x4e   : > { %4738 = vmatprep.subr.bf16.mxu0 %v8906_v0 }
  0x51   : > { %4740 = vmatpush1.bf16.msra.mxu0 %v4739_v26  ;;  %v640_v26 = vld [vmem:[%s8897_s1 + $0x140] sm:$0xff] }
  0x52   : > { %4741 = vmatprep.subr.bf16.mxu0 %v8906_v0  ;;  %v4781_v30 = vpack.c.bf16 %v641_v27, %v640_v26  ;;  %v654_v27 = vld [vmem:[%s8897_s1 + $0x1b0] sm:$0xff] }
  0x55   : > { %4743 = vmatpush1.bf16.msra.mxu0 %v4742_v29  ;;  %v6280_v29 = vld [vmem:[%s6087_s8 + $0x50] sm:$0xff] }
  0x56   : > { %4744 = vmatprep.subr.bf16.mxu0 %v8906_v0 }
  0x59   : > { %4746 = vmatpush1.bf16.msra.mxu0 %v4745_v32  ;;  %v8905_v32 = vrot.slane %v6241_v15, 2 }
  0x5a   : > { %4747 = vmatprep.subr.bf16.mxu0 %v8906_v0 }
  0x5b   : > { %v6304_v39 = vsel %vm453_vm1, %v464_v31, %v8905_v32  ;;  %v6413_v31 = vld [vmem:[%s6087_s8 + $0xa0] sm:$0x3] }
  0x5c   : > { %4592 = vmatprep.mubr.f32.mxu1 %v6304_v39  ;;  %v374_v36 = vrot.slane %v6413_v31, 1  ;;  %v6562_v32 = vld [vmem:[%s6087_s8 + $0x120] sm:$0xff] }
  0x5d   : > { %4749 = vmatpush1.bf16.msra.mxu0 %v4748_v35  ;;  %v357_v35 = vrot.slane %v6280_v29, 1 }
  0x5e   : > { %4750 = vmatprep.subr.bf16.mxu0 %v8906_v0 }
  0x61   : > { %4752 = vmatpush1.bf16.msra.mxu0 %v4751_v38  ;;  %v6299_v38 = vld [vmem:[%s6087_s8 + $0x58] sm:$0x3] }
  0x62   : > { %4753 = vmatprep.subr.bf16.mxu0 %v8906_v0  ;;  %v359_v42 = vrot.slane %v6299_v38, 1 }
  0x64   : > { %v6329_v48 = vsel %vm340_vm0, %v357_v35, %v359_v42  ;;  %v6429_v42 = vld [vmem:[%s6087_s8 + $0xa8] sm:$0xff] }
  0x65   : > { %4755 = vmatpush1.bf16.msra.mxu0 %v4754_v41  ;;  %v6310_v41 = vsel %vm340_vm0, %v356_v34, %v357_v35 }
  0x66   : > { %4756 = vmatprep.subr.bf16.mxu0 %v8906_v0 }
  0x69   : > { %4758 = vmatpush1.bf16.msra.mxu0 %v4757_v44  ;;  %v645_v44 = vld [vmem:[%s8897_s1 + $0x168] sm:$0xff] }
  0x6a   : > { %4759 = vmatprep.subr.bf16.mxu0 %v8906_v0 }
  0x6d   : > { %4761 = vmatpush1.bf16.msra.mxu0 %v4760_v47  ;;  %v4787_v47 = vpack.c.bf16 %v645_v44, %v644_v43  ;;  %v6432_v43 = vld [vmem:[%s6087_s8 + $0xb0] sm:$0xff] }
  0x6e   : > { %4762 = vmatprep.subr.bf16.mxu0 %v8906_v0 }
  0x71   : > { %4764 = vmatpush1.bf16.msra.mxu0 %v4763_v50  ;;  %v362_v50 = vrot.slane %v6324_v46, 1 }
  0x72   : > { %4765 = vmatprep.subr.bf16.mxu0 %v8906_v0 }
  0x73   : > { %v6346_v55 = vsel %vm340_vm0, %v361_v49, %v362_v50  ;;  %v6365_v1 = vsel %vm340_vm0, %v362_v50, %v364_v56  ;;  %v376_v49 = vrot.slane %v6429_v42, 1  ;;  %v377_v50 = vrot.slane %v6432_v43, 1 }
  0x74   : > { %9076 = vst [vmem:[#allocation8_spill] sm:$0xff] %v6365_v1 }
  0x75   : > { %4767 = vmatpush1.bf16.msra.mxu0 %v4766_v54  ;;  %v4790_v54 = vpack.c.bf16 %v647_v52, %v646_v51  ;;  %v658_v51 = vld [vmem:[%s8897_s1 + $0x1d0] sm:$0xff]  ;;  %v659_v52 = vld [vmem:[%s8897_s1 + $0x1d8] sm:$0xff] }
  0x76   : > { %4768 = vmatprep.subr.bf16.mxu0 %v8906_v0  ;;  %v4808_v56 = vpack.c.bf16 %v659_v52, %v658_v51  ;;  %v6518_v52 = vld [vmem:[%s6087_s8 + $0xf0] sm:$0xff] }
  0x78   : > { %816 = vmatmul.mubr.f32.vlgmr.msra.gmra.mrb[0].mxu0 %v6097_v12  ;;  %v637_v12 = vld [vmem:[%s8897_s1 + $0x128] sm:$0xff] }
  0x79   : > { %4770 = vmatpush1.bf16.msra.mxu0 %v4769_v62  ;;  %820 = vmatprep.mubr.f32.mxu0 %v345_v63  ;;  %v4775_v17 = vpack.c.bf16 %v637_v12, %v636_v11  ;;  %v6360_v62 = vld [vmem:[%s6087_s8 + $0x80] sm:$0xff]  ;;  %v4793_v63 = vpack.c.bf16 %v649_v58, %v648_v57  ;;  %v369_v12 = vrot.slane %v6377_v8, 1  ;;  %v6454_v57 = vsel %vm340_vm0, %v376_v49, %v377_v50  ;;  %v6509_v49 = vld [vmem:[%s6087_s8 + $0xe8] sm:$0x3] }
  0x7a   : > { %4771 = vmatprep.subr.bf16.mxu0 %v8906_v0  ;;  %v367_v3 = vrot.slane %v6360_v62, 1  ;;  %9081 = vst [vmem:[#allocation13_spill] sm:$0xff] %v6454_v57  ;;  %v389_v51 = vrot.slane %v6509_v49, 1 }
  0x7c   : > { %821 = vmatmul.mubr.f32.gmra.mrb[2].mxu0 %v6100_v14  ;;  %v639_v14 = vld [vmem:[%s8897_s1 + $0x138] sm:$0xff]  ;;  %v6382_v11 = vsel %vm340_vm0, %v366_v2, %v367_v3  ;;  %v661_v2 = vld [vmem:[%s8897_s1 + $0x1e8] sm:$0xff] }
  0x7d   : > { %825 = vmatprep.mubr.f32.mxu0 %v6227_v9  ;;  %4773 = vmatpush1.bf16.msra.mxu0 %v4772_v7  ;;  %v4778_v23 = vpack.c.bf16 %v639_v14, %v638_v21  ;;  %v651_v7 = vld [vmem:[%s8897_s1 + $0x198] sm:$0xff]  ;;  %9077 = vst [vmem:[#allocation9_spill] sm:$0xff] %v6382_v11 }
  0x7e   : > { %4774 = vmatprep.subr.bf16.mxu0 %v8906_v0  ;;  %v4796_v10 = vpack.c.bf16 %v651_v7, %v650_v4  ;;  %v6396_v21 = vld [vmem:[%s6087_s8 + $0x98] sm:$0xff]  ;;  %v6468_v4 = vld [vmem:[%s6087_s8 + $0xc8] sm:$0xff] }
  0x7f   : > { %v372_v26 = vrot.slane %v6396_v21, 1 }
  0x80   : > { %826 = vmatmul.mubr.f32.gmra.mrb[4].mxu0 %v6202_v60 }
  0x81   : > { %830 = vmatprep.mubr.f32.mxu0 %v6249_v18  ;;  %4776 = vmatpush1.bf16.msra.mxu0 %v4775_v17  ;;  %v652_v17 = vld [vmem:[%s8897_s1 + $0x1a0] sm:$0xff]  ;;  %v6418_v35 = vsel %vm340_vm0, %v371_v25, %v372_v26  ;;  %v6485_v25 = vld [vmem:[%s6087_s8 + $0xd0] sm:$0x3] }
  0x82   : > { %4777 = vmatprep.subr.bf16.mxu0 %v8906_v0  ;;  %v4799_v14 = vpack.c.bf16 %v653_v19, %v652_v17  ;;  %9079 = vst [vmem:[#allocation11_spill] sm:$0xff] %v6418_v35  ;;  %v382_v17 = vrot.slane %v6468_v4, 1  ;;  %v662_v19 = vld [vmem:[%s8897_s1 + $0x1f0] sm:$0xff] }
  0x84   : > { %831 = vmatmul.mubr.f32.gmra.mrb[6].mxu0 %v6205_v61 }
  0x85   : > { %835 = vmatprep.mubr.f32.mxu0 %v6266_v24  ;;  %4779 = vmatpush1.bf16.msra.mxu0 %v4778_v23  ;;  %v6401_v23 = vsel %vm340_vm0, %v367_v3, %v369_v12  ;;  %v6465_v3 = vld [vmem:[%s6087_s8 + $0xc0] sm:$0xff] }
  0x86   : > { %4780 = vmatprep.subr.bf16.mxu0 %v8906_v0  ;;  %9078 = vst [vmem:[#allocation10_spill] sm:$0xff] %v6401_v23  ;;  %v381_v12 = vrot.slane %v6465_v3, 1 }
  0x88   : > { %836 = vmatmul.mubr.f32.gmra.mrb[8].mxu0 %v6238_v13 }
  0x89   : > { %840 = vmatprep.mubr.f32.mxu0 %v6287_v33  ;;  %4782 = vmatpush1.bf16.msra.mxu0 %v4781_v30  ;;  %v655_v30 = vld [vmem:[%s8897_s1 + $0x1b8] sm:$0xff] }
  0x8a   : > { %4783 = vmatprep.subr.bf16.mxu0 %v8906_v0  ;;  %v4802_v34 = vpack.c.bf16 %v655_v30, %v654_v27  ;;  %v6490_v27 = vsel %vm340_vm0, %v381_v12, %v382_v17  ;;  %v384_v30 = vrot.slane %v6485_v25, 1 }
  0x8b   : > { %9083 = vst [vmem:[#allocation15_spill] sm:$0xff] %v6490_v27 }
  0x8c   : > { %841 = vmatmul.mubr.f32.gmra.mrb[10].mxu0 %v6241_v15 }
  0x8d   : > { %845 = vmatprep.mubr.f32.mxu0 %v6310_v41  ;;  %4785 = vmatpush1.bf16.msra.mxu0 %v4784_v40  ;;  %v657_v40 = vld [vmem:[%s8897_s1 + $0x1c8] sm:$0xff] }
  0x8e   : > { %4786 = vmatprep.subr.bf16.mxu0 %v8906_v0  ;;  %v4805_v44 = vpack.c.bf16 %v657_v40, %v656_v37  ;;  %v6503_v37 = vsel %vm340_vm0, %v382_v17, %v384_v30 }
  0x8f   : > { %9084 = vst [vmem:[#allocation16_spill] sm:$0xff] %v6503_v37 }
  0x90   : > { %846 = vmatmul.mubr.f32.gmra.mrb[12].mxu0 %v6277_v28 }
  0x91   : > { %850 = vmatprep.mubr.f32.mxu0 %v6329_v48  ;;  %4788 = vmatpush1.bf16.msra.mxu0 %v4787_v47  ;;  %v6437_v47 = vsel %vm340_vm0, %v372_v26, %v374_v36  ;;  %v6498_v36 = vld [vmem:[%s6087_s8 + $0xe0] sm:$0xff] }
  0x92   : > { %4789 = vmatprep.subr.bf16.mxu0 %v8906_v0  ;;  %9080 = vst [vmem:[#allocation12_spill] sm:$0xff] %v6437_v47 }
  0x94   : > { %851 = vmatmul.mubr.f32.gmra.mrb[14].mxu0 %v6280_v29 }
  0x95   : > { %855 = vmatprep.mubr.f32.mxu0 %v6346_v55  ;;  %4791 = vmatpush1.bf16.msra.mxu0 %v4790_v54  ;;  %v6449_v54 = vld [vmem:[%s6087_s8 + $0xb8] sm:$0x3] }
  0x96   : > { %4792 = vmatprep.subr.bf16.mxu0 %v8906_v0  ;;  %v379_v58 = vrot.slane %v6449_v54, 1 }
  0x98   : > { %856 = vmatmul.mubr.f32.gmra.mrb[16].mxu0 %v6321_v45 }
  0x99   : > { %860 = vmatprep.mubr.f32.mxu0 %v6365_v1  ;;  %4794 = vmatpush1.bf16.msra.mxu0 %v4793_v63  ;;  %v660_v63 = vld [vmem:[%s8897_s1 + $0x1e0] sm:$0xff]  ;;  %v9099_v1 = vmov 0.0|0.0  }
  0x9a   : > { %4795 = vmatprep.subr.bf16.mxu0 %v8906_v0  ;;  %v4811_v7 = vpack.c.bf16 %v661_v2, %v660_v63  ;;  %v391_v63 = vrot.slane %v6518_v52, 1 }
  0x9c   : > { %861 = vmatmul.mubr.f32.gmra.mrb[18].mxu0 %v6324_v46 }
  0x9d   : > { %865 = vmatprep.mubr.f32.mxu0 %v6382_v11  ;;  %4797 = vmatpush1.bf16.msra.mxu0 %v4796_v10  ;;  %v6473_v10 = vsel %vm340_vm0, %v377_v50, %v379_v58 }
  0x9e   : > { %4798 = vmatprep.subr.bf16.mxu0 %v8906_v0  ;;  %9082 = vst [vmem:[#allocation14_spill] sm:$0xff] %v6473_v10 }
  0xa0   : > { %866 = vmatmul.mubr.f32.gmra.mrb[20].mxu0 %v6357_v59 }
  0xa1   : > { %870 = vmatprep.mubr.f32.mxu0 %v6401_v23  ;;  %4800 = vmatpush1.bf16.msra.mxu0 %v4799_v14  ;;  %v663_v14 = vld [vmem:[%s8897_s1 + $0x1f8] sm:$0xff] }
  0xa2   : > { %4801 = vmatprep.subr.bf16.mxu0 %v8906_v0  ;;  %v4814_v26 = vpack.c.bf16 %v663_v14, %v662_v19  ;;  %v6540_v19 = vld [vmem:[%s6087_s8 + $0x108] sm:$0xff]  ;;  %v6543_v14 = vld [vmem:[%s6087_s8 + $0x110] sm:$0xff]  ;;  %v6641_v23 = vld [vmem:[%s6087_s8 + $0x178] sm:$0x3] }
  0xa3   : > { %v396_v30 = vrot.slane %v6540_v19, 1  ;;  %v419_v11 = vrot.slane %v6641_v23, 1 }
  0xa4   : > { %871 = vmatmul.mubr.f32.gmra.mrb[22].mxu0 %v6360_v62 }
  0xa5   : > { %875 = vmatprep.mubr.f32.mxu0 %v6418_v35  ;;  %4803 = vmatpush1.bf16.msra.mxu0 %v4802_v34  ;;  %v6495_v34 = vld [vmem:[%s6087_s8 + $0xd8] sm:$0xff]  ;;  %v6631_v35 = vld [vmem:[%s6087_s8 + $0x170] sm:$0xff] }
  0xa6   : > { %4804 = vmatprep.subr.bf16.mxu0 %v8906_v0  ;;  %v386_v40 = vrot.slane %v6495_v34, 1 }
  0xa8   : > { %876 = vmatmul.mubr.f32.gmra.mrb[24].mxu0 %v6393_v20 }
  0xa9   : > { %880 = vmatprep.mubr.f32.mxu0 %v6437_v47  ;;  %4806 = vmatpush1.bf16.msra.mxu0 %v4805_v44  ;;  %v387_v44 = vrot.slane %v6498_v36, 1 }
  0xaa   : > { %4807 = vmatprep.subr.bf16.mxu0 %v8906_v0 }
  0xab   : > { %v6514_v50 = vsel %vm340_vm0, %v386_v40, %v387_v44  ;;  %v6526_v58 = vsel %vm340_vm0, %v387_v44, %v389_v51  ;;  %v397_v40 = vrot.slane %v6543_v14, 1  ;;  %v6553_v44 = vld [vmem:[%s6087_s8 + $0x118] sm:$0x3] }
  0xac   : > { %881 = vmatmul.mubr.f32.gmra.mrb[26].mxu0 %v6396_v21  ;;  %9085 = vst [vmem:[#allocation17_spill] sm:$0xff] %v6514_v50  ;;  %9086 = vst [vmem:[#allocation18_spill] sm:$0xff] %v6526_v58 }
  0xad   : > { %885 = vmatprep.mubr.f32.mxu0 %v6454_v57  ;;  %4809 = vmatpush1.bf16.msra.mxu0 %v4808_v56  ;;  %v6521_v56 = vld [vmem:[%s6087_s8 + $0xf8] sm:$0xff]  ;;  %v6558_v51 = vsel %vm340_vm0, %v396_v30, %v397_v40  ;;  %v6575_v30 = vld [vmem:[%s6087_s8 + $0x130] sm:$0x3] }
  0xae   : > { %4810 = vmatprep.subr.bf16.mxu0 %v8906_v0  ;;  %v392_v2 = vrot.slane %v6521_v56, 1  ;;  %9089 = vst [vmem:[#allocation21_spill] sm:$0xff] %v6558_v51 }
  0xb0   : > { %886 = vmatmul.mubr.f32.gmra.mrb[28].mxu0 %v6429_v42  ;;  %v6536_v12 = vsel %vm340_vm0, %v391_v63, %v392_v2  ;;  %v399_v63 = vrot.slane %v6553_v44, 1 }
  0xb1   : > { %890 = vmatprep.mubr.f32.mxu0 %v6473_v10  ;;  %4812 = vmatpush1.bf16.msra.mxu0 %v4811_v7  ;;  %v6531_v7 = vld [vmem:[%s6087_s8 + $0x100] sm:$0x3]  ;;  %9087 = vst [vmem:[#allocation19_spill] sm:$0xff] %v6536_v12 }
  0xb2   : > { %4813 = vmatprep.subr.bf16.mxu0 %v8906_v0  ;;  %v394_v17 = vrot.slane %v6531_v7, 1 }
  0xb4   : > { %891 = vmatmul.mubr.f32.gmra.mrb[30].mxu0 %v6432_v43 }
  0xb5   : > { %895 = vmatprep.mubr.f32.mxu0 %v6490_v27  ;;  %4815 = vmatpush1.bf16.msra.mxu0 %v4814_v26  ;;  %v6548_v26 = vsel %vm340_vm0, %v392_v2, %v394_v17  ;;  %v6565_v2 = vld [vmem:[%s6087_s8 + $0x128] sm:$0xff]  ;;  %v6570_v17 = vsel %vm340_vm0, %v397_v40, %v399_v63  ;;  %v6587_v40 = vld [vmem:[%s6087_s8 + $0x140] sm:$0xff]  ;;  %v6606_v27 = vld [vmem:[%s6087_s8 + $0x150] sm:$0xff] }
  0xb6   : > { %4816 = vmatprep.subr.bf16.mxu0 %v8906_v0  ;;  %9088 = vst [vmem:[#allocation20_spill] sm:$0xff] %v6548_v26  ;;  %9090 = vst [vmem:[#allocation22_spill] sm:$0xff] %v6570_v17  ;;  %v401_v0 = vrot.slane %v6562_v32, 1 }
  0xb8   : > { %896 = vmatmul.mubr.f32.gmra.mrb[32].mxu0 %v6465_v3 }
  0xb9   : > { %900 = vmatprep.mubr.f32.mxu0 %v6503_v37 }
  0xbc   : > { %901 = vmatmul.mubr.f32.gmra.mrb[34].mxu0 %v6468_v4 }
  0xbd   : > { %905 = vmatprep.mubr.f32.mxu0 %v6514_v50  ;;  %v407_v50 = vrot.slane %v6587_v40, 1 }
  0xc0   : > { %906 = vmatmul.mubr.f32.gmra.mrb[36].mxu0 %v6495_v34 }
  0xc1   : > { %910 = vmatprep.mubr.f32.mxu0 %v6526_v58  ;;  %v6584_v58 = vld [vmem:[%s6087_s8 + $0x138] sm:$0xff] }
  0xc4   : > { %911 = vmatmul.mubr.f32.gmra.mrb[38].mxu0 %v6498_v36 }
  0xc5   : > { %915 = vmatprep.mubr.f32.mxu0 %v6536_v12 }
  0xc8   : > { %916 = vmatmul.mubr.f32.gmra.mrb[40].mxu0 %v6518_v52 }
  0xc9   : > { %920 = vmatprep.mubr.f32.mxu0 %v6548_v26  ;;  %v402_v26 = vrot.slane %v6565_v2, 1 }
  0xcb   : > { %v6580_v12 = vsel %vm340_vm0, %v401_v0, %v402_v26  ;;  %v6597_v0 = vld [vmem:[%s6087_s8 + $0x148] sm:$0x3] }
  0xcc   : > { %921 = vmatmul.mubr.f32.gmra.mrb[42].mxu0 %v6521_v56  ;;  %9091 = vst [vmem:[#allocation23_spill] sm:$0xff] %v6580_v12 }
  0xcd   : > { %925 = vmatprep.mubr.f32.mxu0 %v6558_v51  ;;  %v404_v51 = vrot.slane %v6575_v30, 1 }
  0xcf   : > { %v6592_v63 = vsel %vm340_vm0, %v402_v26, %v404_v51  ;;  %v6609_v26 = vld [vmem:[%s6087_s8 + $0x158] sm:$0xff] }
  0xd0   : > { %926 = vmatmul.mubr.f32.gmra.mrb[44].mxu0 %v6540_v19  ;;  %9092 = vst [vmem:[#allocation24_spill] sm:$0xff] %v6592_v63  ;;  %v412_v10 = vrot.slane %v6609_v26, 1 }
  0xd1   : > { %930 = vmatprep.mubr.f32.mxu0 %v6570_v17  ;;  %v406_v17 = vrot.slane %v6584_v58, 1 }
  0xd3   : > { %v6602_v37 = vsel %vm340_vm0, %v406_v17, %v407_v50  ;;  %v6619_v17 = vld [vmem:[%s6087_s8 + $0x160] sm:$0x3] }
  0xd4   : > { %931 = vmatmul.mubr.f32.gmra.mrb[46].mxu0 %v6543_v14  ;;  %9093 = vst [vmem:[#allocation25_spill] sm:$0xff] %v6602_v37  ;;  %v414_v47 = vrot.slane %v6619_v17, 1 }
  0xd5   : > { %935 = vmatprep.mubr.f32.mxu0 %v6580_v12  ;;  %v409_v12 = vrot.slane %v6597_v0, 1 }
  0xd7   : > { %v6614_v51 = vsel %vm340_vm0, %v407_v50, %v409_v12  ;;  %v6636_v50 = vsel %vm340_vm0, %v412_v10, %v414_v47 }
  0xd8   : > { %936 = vmatmul.mubr.f32.gmra.mrb[48].mxu0 %v6562_v32  ;;  %9094 = vst [vmem:[#allocation26_spill] sm:$0xff] %v6614_v51  ;;  %9096 = vst [vmem:[#allocation28_spill] sm:$0xff] %v6636_v50 }
  0xd9   : > { %940 = vmatprep.mubr.f32.mxu0 %v6592_v63  ;;  %v411_v63 = vrot.slane %v6606_v27, 1 }
  0xdb   : > { %v6624_v57 = vsel %vm340_vm0, %v411_v63, %v412_v10  ;;  %v664_v10 = vld [vmem:[%s8897_s1 + $0x200] sm:$0xff] }
  0xdc   : > { %941 = vmatmul.mubr.f32.gmra.mrb[50].mxu0 %v6565_v2  ;;  %9095 = vst [vmem:[#allocation27_spill] sm:$0xff] %v6624_v57 }
  0xdd   : > { %945 = vmatprep.mubr.f32.mxu0 %v6602_v37  ;;  %v6628_v37 = vld [vmem:[%s6087_s8 + $0x168] sm:$0xff] }
  0xde   : > { %v416_v12 = vrot.slane %v6628_v37, 1 }
  0xe0   : > { %946 = vmatmul.mubr.f32.gmra.mrb[52].mxu0 %v6584_v58 }
  0xe1   : > { %950 = vmatprep.mubr.f32.mxu0 %v6614_v51  ;;  %v417_v51 = vrot.slane %v6631_v35, 1 }
  0xe3   : > { %v6646_v63 = vsel %vm340_vm0, %v416_v12, %v417_v51  ;;  %v6652_v47 = vsel %vm340_vm0, %v417_v51, %v419_v11  ;;  %v665_v12 = vld [vmem:[%s8897_s1 + $0x208] sm:$0xff]  ;;  %v666_v11 = vld [vmem:[%s8897_s1 + $0x210] sm:$0xff]  ;;  %v667_v51 = vld [vmem:[%s8897_s1 + $0x218] sm:$0xff] }
  0xe4   : > { %951 = vmatmul.mubr.f32.gmra.mrb[54].mxu0 %v6587_v40  ;;  %9097 = vst [vmem:[#allocation29_spill] sm:$0xff] %v6646_v63  ;;  %9098 = vst [vmem:[#allocation30_spill] sm:$0xff] %v6652_v47 }
  0xe5   : > { %955 = vmatprep.mubr.f32.mxu0 %v6624_v57  ;;  %v4820_v57 = vpack.c.bf16 %v667_v51, %v666_v11  ;;  %v671_v11 = vld [vmem:[%s8897_s1 + $0x238] sm:$0xff]  ;;  %v674_v51 = vld [vmem:[%s8897_s1 + $0x250] sm:$0xff] }
  0xe8   : > { %956 = vmatmul.mubr.f32.gmra.mrb[56].mxu0 %v6606_v27 }
  0xe9   : > { %960 = vmatprep.mubr.f32.mxu0 %v6636_v50  ;;  %v460_v50 = vrot.slane %v6205_v61, 2 }
  0xec   : > { %961 = vmatmul.mubr.f32.gmra.mrb[58].mxu0 %v6609_v26 }
  0xed   : > { %965 = vmatprep.mubr.f32.mxu0 %v6646_v63  ;;  %v4817_v63 = vpack.c.bf16 %v665_v12, %v664_v10  ;;  %v668_v10 = vld [vmem:[%s8897_s1 + $0x220] sm:$0xff]  ;;  %v669_v12 = vld [vmem:[%s8897_s1 + $0x228] sm:$0xff] }
  0xf0   : > { %966 = vmatmul.mubr.f32.gmra.mrb[60].mxu0 %v6628_v37 }
  0xf1   : > { %970 = vmatprep.mubr.f32.mxu0 %v6652_v47  ;;  %v459_v47 = vrot.slane %v6202_v60, 2 }
  0xf4   : > { %971 = vmatmul.mubr.f32.gmra.mrb[62].mxu0 %v6631_v35 }
  0xf5   : > { %1040 = vmatprep.mubr.f32.mxu0 %v6202_v60  ;;  %v462_v60 = vrot.slane %v6223_v6, 2 }
  0xf8   : > { %1041 = vmatmul.mubr.f32.vlgmr.msra.gmra.mrb[0].mxu0 %v6220_v5  ;;  %v6684_v5 = vsel %vm453_vm1, %v459_v47, %v460_v50  ;;  %v467_v47 = vrot.slane %v6261_v22, 2 }
  0xf9   : > { %4818 = vmatpush1.bf16.msra.mxu0 %v4817_v63  ;;  %1045 = vmatprep.mubr.f32.mxu0 %v6205_v61  ;;  %v4823_v61 = vpack.c.bf16 %v669_v12, %v668_v10  ;;  %v670_v63 = vld [vmem:[%s8897_s1 + $0x230] sm:$0xff]  ;;  %v675_v10 = vld [vmem:[%s8897_s1 + $0x258] sm:$0xff]  ;;  %v9100_v12 = vrot.slane %v6241_v15, 2 }
  0xfa   : > { %4819 = vmatprep.subr.bf16.mxu0 %v9099_v1  ;;  %v4826_v6 = vpack.c.bf16 %v671_v11, %v670_v63  ;;  %v4832_v63 = vpack.c.bf16 %v675_v10, %v674_v51  ;;  %v676_v11 = vld [vmem:[%s8897_s1 + $0x260] sm:$0xff] }
  0xfb   : > { %v6721_v22 = vsel %vm453_vm1, %v9100_v12, %v467_v47  ;;  %v680_v10 = vld [vmem:[%s8897_s1 + $0x280] sm:$0xff]  ;;  %v681_v12 = vld [vmem:[%s8897_s1 + $0x288] sm:$0xff] }
  0xfc   : > { %1046 = vmatmul.mubr.f32.gmra.mrb[2].mxu0 %v6244_v16  ;;  %v672_v16 = vld [vmem:[%s8897_s1 + $0x240] sm:$0xff] }
  0xfd   : > { %1050 = vmatprep.mubr.f32.mxu0 %v6238_v13  ;;  %4821 = vmatpush1.bf16.msra.mxu0 %v4820_v57  ;;  %v6697_v13 = vsel %vm453_vm1, %v460_v50, %v462_v60  ;;  %v673_v57 = vld [vmem:[%s8897_s1 + $0x248] sm:$0xff]  ;;  %v469_v60 = vrot.slane %v6277_v28, 2 }
  0xfe   : > { %4822 = vmatprep.subr.bf16.mxu0 %v9099_v1  ;;  %v4829_v50 = vpack.c.bf16 %v673_v57, %v672_v16  ;;  %v678_v16 = vld [vmem:[%s8897_s1 + $0x270] sm:$0xff]  ;;  %v679_v57 = vld [vmem:[%s8897_s1 + $0x278] sm:$0xff] }
  0xff   : > { %v4838_v51 = vpack.c.bf16 %v679_v57, %v678_v16  ;;  %v685_v16 = vld [vmem:[%s8897_s1 + $0x2a8] sm:$0xff] }
 0x100   : > { %1051 = vmatmul.mubr.f32.gmra.mrb[4].mxu0 %v6684_v5 }
 0x101   : > { %1055 = vmatprep.mubr.f32.mxu0 %v6241_v15  ;;  %4824 = vmatpush1.bf16.msra.mxu0 %v4823_v61  ;;  %v470_v61 = vrot.slane %v6280_v29, 2 }
 0x102   : > { %4825 = vmatprep.subr.bf16.mxu0 %v9099_v1 }
 0x103   : > { %v6735_v15 = vsel %vm453_vm1, %v469_v60, %v470_v61  ;;  %v4841_v60 = vpack.c.bf16 %v681_v12, %v680_v10  ;;  %v485_v10 = vrot.slane %v6396_v21, 2 }
 0x104   : > { %1056 = vmatmul.mubr.f32.gmra.mrb[6].mxu0 %v6697_v13 }
 0x105   : > { %1060 = vmatprep.mubr.f32.mxu0 %v6277_v28  ;;  %4827 = vmatpush1.bf16.msra.mxu0 %v4826_v6  ;;  %v677_v6 = vld [vmem:[%s8897_s1 + $0x268] sm:$0xff]  ;;  %v472_v28 = vrot.slane %v6299_v38, 2  ;;  %v474_v38 = vrot.slane %v6321_v45, 2 }
 0x106   : > { %4828 = vmatprep.subr.bf16.mxu0 %v9099_v1 }
 0x107   : > { %v6748_v47 = vsel %vm453_vm1, %v470_v61, %v472_v28  ;;  %v682_v61 = vld [vmem:[%s8897_s1 + $0x290] sm:$0xff] }
 0x108   : > { %1061 = vmatmul.mubr.f32.gmra.mrb[8].mxu0 %v6304_v39 }
 0x109   : > { %1065 = vmatprep.mubr.f32.mxu0 %v6280_v29  ;;  %4830 = vmatpush1.bf16.msra.mxu0 %v4829_v50  ;;  %v4835_v29 = vpack.c.bf16 %v677_v6, %v676_v11  ;;  %v475_v50 = vrot.slane %v6324_v46, 2  ;;  %v480_v6 = vrot.slane %v6360_v62, 2 }
 0x10a   : > { %4831 = vmatprep.subr.bf16.mxu0 %v9099_v1 }
 0x10c   : > { %1066 = vmatmul.mubr.f32.gmra.mrb[10].mxu0 %v6721_v22 }
 0x10d   : > { %1070 = vmatprep.mubr.f32.mxu0 %v6321_v45  ;;  %4833 = vmatpush1.bf16.msra.mxu0 %v4832_v63  ;;  %v6762_v45 = vsel %vm453_vm1, %v474_v38, %v475_v50  ;;  %v683_v63 = vld [vmem:[%s8897_s1 + $0x298] sm:$0xff]  ;;  %v686_v38 = vld [vmem:[%s8897_s1 + $0x2b0] sm:$0xff] }
 0x10e   : > { %4834 = vmatprep.subr.bf16.mxu0 %v9099_v1  ;;  %v4844_v28 = vpack.c.bf16 %v683_v63, %v682_v61  ;;  %v690_v63 = vld [vmem:[%s8897_s1 + $0x2d0] sm:$0xff] }
 0x110   : > { %1071 = vmatmul.mubr.f32.gmra.mrb[12].mxu0 %v6735_v15 }
 0x111   : > { %1075 = vmatprep.mubr.f32.mxu0 %v6324_v46  ;;  %4836 = vmatpush1.bf16.msra.mxu0 %v4835_v29  ;;  %v477_v46 = vrot.slane %v6341_v53, 2  ;;  %v479_v53 = vrot.slane %v6357_v59, 2  ;;  %v684_v29 = vld [vmem:[%s8897_s1 + $0x2a0] sm:$0xff] }
 0x112   : > { %4837 = vmatprep.subr.bf16.mxu0 %v9099_v1  ;;  %v4847_v57 = vpack.c.bf16 %v685_v16, %v684_v29  ;;  %v692_v16 = vld [vmem:[%s8897_s1 + $0x2e0] sm:$0xff] }
 0x113   : > { %v6775_v11 = vsel %vm453_vm1, %v475_v50, %v477_v46  ;;  %v687_v50 = vld [vmem:[%s8897_s1 + $0x2b8] sm:$0xff]  ;;  %v688_v46 = vld [vmem:[%s8897_s1 + $0x2c0] sm:$0xff] }
 0x114   : > { %1076 = vmatmul.mubr.f32.gmra.mrb[14].mxu0 %v6748_v47  ;;  %v4850_v12 = vpack.c.bf16 %v687_v50, %v686_v38  ;;  %v694_v38 = vld [vmem:[%s8897_s1 + $0x2f0] sm:$0xff]  ;;  %v695_v50 = vld [vmem:[%s8897_s1 + $0x2f8] sm:$0xff] }
 0x115   : > { %1080 = vmatprep.mubr.f32.mxu0 %v6357_v59  ;;  %4839 = vmatpush1.bf16.msra.mxu0 %v4838_v51  ;;  %v6789_v59 = vsel %vm453_vm1, %v479_v53, %v480_v6  ;;  %v691_v53 = vld [vmem:[%s8897_s1 + $0x2d8] sm:$0xff] }
 0x116   : > { %4840 = vmatprep.subr.bf16.mxu0 %v9099_v1  ;;  %v4856_v29 = vpack.c.bf16 %v691_v53, %v690_v63 }
 0x118   : > { %1081 = vmatmul.mubr.f32.gmra.mrb[16].mxu0 %v6762_v45 }
 0x119   : > { %1085 = vmatprep.mubr.f32.mxu0 %v6360_v62  ;;  %4842 = vmatpush1.bf16.msra.mxu0 %v4841_v60  ;;  %v482_v62 = vrot.slane %v6377_v8, 2  ;;  %v484_v8 = vrot.slane %v6393_v20, 2  ;;  %v689_v60 = vld [vmem:[%s8897_s1 + $0x2c8] sm:$0xff] }
 0x11a   : > { %4843 = vmatprep.subr.bf16.mxu0 %v9099_v1  ;;  %v4853_v61 = vpack.c.bf16 %v689_v60, %v688_v46  ;;  %v497_v60 = vrot.slane %v6485_v25, 2 }
 0x11b   : > { %v6802_v51 = vsel %vm453_vm1, %v480_v6, %v482_v62  ;;  %v693_v62 = vld [vmem:[%s8897_s1 + $0x2e8] sm:$0xff] }
 0x11c   : > { %1086 = vmatmul.mubr.f32.gmra.mrb[18].mxu0 %v6775_v11 }
 0x11d   : > { %1090 = vmatprep.mubr.f32.mxu0 %v6393_v20  ;;  %4845 = vmatpush1.bf16.msra.mxu0 %v4844_v28  ;;  %v6816_v20 = vsel %vm453_vm1, %v484_v8, %v485_v10  ;;  %v490_v28 = vrot.slane %v6432_v43, 2 }
 0x11e   : > { %4846 = vmatprep.subr.bf16.mxu0 %v9099_v1 }
 0x120   : > { %1091 = vmatmul.mubr.f32.gmra.mrb[20].mxu0 %v6789_v59 }
 0x121   : > { %1095 = vmatprep.mubr.f32.mxu0 %v6396_v21  ;;  %4848 = vmatpush1.bf16.msra.mxu0 %v4847_v57  ;;  %v487_v21 = vrot.slane %v6413_v31, 2  ;;  %v489_v31 = vrot.slane %v6429_v42, 2  ;;  %v4859_v57 = vpack.c.bf16 %v693_v62, %v692_v16  ;;  %v728_v62 = vld [vmem:[%s8897_s1 + $0x400] sm:$0xff] }
 0x122   : > { %4849 = vmatprep.subr.bf16.mxu0 %v9099_v1 }
 0x123   : > { %v6829_v6 = vsel %vm453_vm1, %v485_v10, %v487_v21  ;;  %v495_v10 = vrot.slane %v6468_v4, 2  ;;  %v500_v21 = vrot.slane %v6498_v36, 2 }
 0x124   : > { %1096 = vmatmul.mubr.f32.gmra.mrb[22].mxu0 %v6802_v51 }
 0x125   : > { %1100 = vmatprep.mubr.f32.mxu0 %v6429_v42  ;;  %4851 = vmatpush1.bf16.msra.mxu0 %v4850_v12  ;;  %v6843_v42 = vsel %vm453_vm1, %v489_v31, %v490_v28  ;;  %v4862_v12 = vpack.c.bf16 %v695_v50, %v694_v38  ;;  %v730_v38 = vld [vmem:[%s8897_s1 + $0x410] sm:$0xff]  ;;  %v731_v50 = vld [vmem:[%s8897_s1 + $0x418] sm:$0xff] }
 0x126   : > { %4852 = vmatprep.subr.bf16.mxu0 %v9099_v1 }
 0x128   : > { %1101 = vmatmul.mubr.f32.gmra.mrb[24].mxu0 %v6816_v20 }
 0x129   : > { %1105 = vmatprep.mubr.f32.mxu0 %v6432_v43  ;;  %4854 = vmatpush1.bf16.msra.mxu0 %v4853_v61  ;;  %v492_v43 = vrot.slane %v6449_v54, 2  ;;  %v494_v54 = vrot.slane %v6465_v3, 2  ;;  %v502_v61 = vrot.slane %v6509_v49, 2  ;;  %v507_v49 = vrot.slane %v6531_v7, 2 }
 0x12a   : > { %4855 = vmatprep.subr.bf16.mxu0 %v9099_v1  ;;  %v512_v7 = vrot.slane %v6553_v44, 2  ;;  %v517_v44 = vrot.slane %v6575_v30, 2  ;;  %v520_v30 = vrot.slane %v6587_v40, 2 }
 0x12b   : > { %v6856_v8 = vsel %vm453_vm1, %v490_v28, %v492_v43  ;;  %v6864_v46 = vsel %vm453_vm1, %v494_v54, %v495_v10  ;;  %v6884_v63 = vsel %vm453_vm1, %v500_v21, %v502_v61  ;;  %v729_v43 = vld [vmem:[%s8897_s1 + $0x408] sm:$0xff]  ;;  %v4916_v54 = vpack.c.bf16 %v731_v50, %v730_v38  ;;  %v734_v61 = vld [vmem:[%s8897_s1 + $0x430] sm:$0xff] }
 0x12c   : > { %1106 = vmatmul.mubr.f32.gmra.mrb[26].mxu0 %v6829_v6 }
 0x12d   : > { %1110 = vmatprep.mubr.f32.mxu0 %v6465_v3  ;;  %4857 = vmatpush1.bf16.msra.mxu0 %v4856_v29  ;;  %v6871_v3 = vsel %vm453_vm1, %v495_v10, %v497_v60 }
 0x12e   : > { %4858 = vmatprep.subr.bf16.mxu0 %v9099_v1 }
 0x130   : > { %1111 = vmatmul.mubr.f32.gmra.mrb[28].mxu0 %v6843_v42 }
 0x131   : > { %1115 = vmatprep.mubr.f32.mxu0 %v6468_v4  ;;  %4860 = vmatpush1.bf16.msra.mxu0 %v4859_v57  ;;  %v499_v4 = vrot.slane %v6495_v34, 2  ;;  %v519_v57 = vrot.slane %v6584_v58, 2 }
 0x132   : > { %4861 = vmatprep.subr.bf16.mxu0 %v9099_v1 }
 0x133   : > { %v6878_v25 = vsel %vm453_vm1, %v499_v4, %v500_v21  ;;  %v6942_v10 = vsel %vm453_vm1, %v519_v57, %v520_v30  ;;  %v525_v21 = vrot.slane %v6609_v26, 2  ;;  %v741_v57 = vld [vmem:[%s8897_s1 + $0x468] sm:$0xff] }
 0x134   : > { %1116 = vmatmul.mubr.f32.gmra.mrb[30].mxu0 %v6856_v8 }
 0x135   : > { %1120 = vmatprep.mubr.f32.mxu0 %v6495_v34  ;;  %4863 = vmatpush1.bf16.msra.mxu0 %v4862_v12  ;;  %v504_v34 = vrot.slane %v6518_v52, 2  ;;  %v733_v12 = vld [vmem:[%s8897_s1 + $0x428] sm:$0xff] }
 0x136   : > { %4864 = vmatprep.subr.bf16.mxu0 %v9099_v1 }
 0x138   : > { %1121 = vmatmul.mubr.f32.gmra.mrb[32].mxu0 %v6864_v46 }
 0x139   : > { %1125 = vmatprep.mubr.f32.mxu0 %v6498_v36  ;;  %v505_v36 = vrot.slane %v6521_v56, 2 }
 0x13b   : > { %v6891_v53 = vsel %vm453_vm1, %v504_v34, %v505_v36  ;;  %v6897_v31 = vsel %vm453_vm1, %v505_v36, %v507_v49  ;;  %v735_v34 = vld [vmem:[%s8897_s1 + $0x438] sm:$0xff]  ;;  %v736_v49 = vld [vmem:[%s8897_s1 + $0x440] sm:$0xff] }
 0x13c   : > { %1126 = vmatmul.mubr.f32.gmra.mrb[34].mxu0 %v6871_v3  ;;  %v4924_v36 = vpack.c.bf16 %v735_v34, %v734_v61  ;;  %v700_v61 = vld [vmem:[%s8897_s1 + $0x320] sm:$0xff]  ;;  %v701_v34 = vld [vmem:[%s8897_s1 + $0x328] sm:$0xff] }
 0x13d   : > { %1130 = vmatprep.mubr.f32.mxu0 %v6518_v52  ;;  %v509_v52 = vrot.slane %v6540_v19, 2 }
 0x140   : > { %1131 = vmatmul.mubr.f32.gmra.mrb[36].mxu0 %v6878_v25 }
 0x141   : > { %1135 = vmatprep.mubr.f32.mxu0 %v6521_v56  ;;  %v510_v56 = vrot.slane %v6543_v14, 2 }
 0x143   : > { %v6904_v28 = vsel %vm453_vm1, %v509_v52, %v510_v56  ;;  %v6910_v29 = vsel %vm453_vm1, %v510_v56, %v512_v7  ;;  %v737_v52 = vld [vmem:[%s8897_s1 + $0x448] sm:$0xff] }
 0x144   : > { %1136 = vmatmul.mubr.f32.gmra.mrb[38].mxu0 %v6884_v63  ;;  %v4928_v56 = vpack.c.bf16 %v737_v52, %v736_v49  ;;  %v706_v49 = vld [vmem:[%s8897_s1 + $0x350] sm:$0xff]  ;;  %v707_v52 = vld [vmem:[%s8897_s1 + $0x358] sm:$0xff] }
 0x145   : > { %1140 = vmatprep.mubr.f32.mxu0 %v6540_v19  ;;  %v514_v19 = vrot.slane %v6562_v32, 2 }
 0x148   : > { %1141 = vmatmul.mubr.f32.gmra.mrb[40].mxu0 %v6891_v53 }
 0x149   : > { %1145 = vmatprep.mubr.f32.mxu0 %v6543_v14  ;;  %v515_v14 = vrot.slane %v6565_v2, 2 }
 0x14b   : > { %v6917_v16 = vsel %vm453_vm1, %v514_v19, %v515_v14  ;;  %v530_v19 = vrot.slane %v6631_v35, 2 }
 0x14c   : > { %1146 = vmatmul.mubr.f32.gmra.mrb[42].mxu0 %v6897_v31 }
 0x14d   : > { %1150 = vmatprep.mubr.f32.mxu0 %v6562_v32  ;;  %v4912_v32 = vpack.c.bf16 %v729_v43, %v728_v62  ;;  %v6990_v62 = vld [vmem:[%s6087_s8 + $0x180] sm:$0xff] }
 0x14f   : > { %4913 = vmatprep.subr.bf16.mxu1 %v4912_v32 }
 0x150   : > { %1151 = vmatmul.mubr.f32.gmra.mrb[44].mxu0 %v6904_v28  ;;  %4915 = vmatpush3.bf16.msra.mxu1 %v4912_v32  ;;  %v740_v32 = vld [vmem:[%s8897_s1 + $0x460] sm:$0xff] }
 0x151   : > { %1155 = vmatprep.mubr.f32.mxu0 %v6565_v2  ;;  %v6929_v2 = vsel %vm453_vm1, %v515_v14, %v517_v44  ;;  %4917 = vmatprep.subr.bf16.mxu1 %v4916_v54  ;;  %v738_v14 = vld [vmem:[%s8897_s1 + $0x450] sm:$0xff]  ;;  %v739_v44 = vld [vmem:[%s8897_s1 + $0x458] sm:$0xff]  ;;  %v4936_v38 = vpack.c.bf16 %v741_v57, %v740_v32 }
 0x152   : > { %v4932_v43 = vpack.c.bf16 %v739_v44, %v738_v14  ;;  %v711_v14 = vld [vmem:[%s8897_s1 + $0x378] sm:$0xff]  ;;  %v712_v44 = vld [vmem:[%s8897_s1 + $0x380] sm:$0xff]  ;;  %v714_v32 = vld [vmem:[%s8897_s1 + $0x390] sm:$0xff] }
 0x153   : > { %v715_v57 = vld [vmem:[%s8897_s1 + $0x398] sm:$0xff] }
 0x154   : > { %1156 = vmatmul.mubr.f32.gmra.mrb[46].mxu0 %v6910_v29  ;;  %4919 = vmatpush3.bf16.msra.mxu1 %v4916_v54  ;;  %v743_v54 = vld [vmem:[%s8897_s1 + $0x478] sm:$0xff] }
 0x155   : > { %1160 = vmatprep.mubr.f32.mxu0 %v6584_v58  ;;  %v522_v58 = vrot.slane %v6597_v0, 2  ;;  %v524_v0 = vrot.slane %v6606_v27, 2 }
 0x157   : > { %v6954_v4 = vsel %vm453_vm1, %v520_v30, %v522_v58  ;;  %v7005_v30 = vld [vmem:[%s6087_s8 + $0x188] sm:$0xff]  ;;  %v696_v58 = vld [vmem:[%s8897_s1 + $0x300] sm:$0xff] }
 0x158   : > { %1161 = vmatmul.mubr.f32.gmra.mrb[48].mxu0 %v6917_v16 }
 0x159   : > { %1165 = vmatprep.mubr.f32.mxu0 %v6587_v40  ;;  %v732_v40 = vld [vmem:[%s8897_s1 + $0x420] sm:$0xff] }
 0x15a   : > { %v4920_v60 = vpack.c.bf16 %v733_v12, %v732_v40  ;;  %v697_v40 = vld [vmem:[%s8897_s1 + $0x308] sm:$0xff] }
 0x15c   : > { %1166 = vmatmul.mubr.f32.gmra.mrb[50].mxu0 %v6929_v2  ;;  %4921 = vmatprep.subr.bf16.mxu1 %v4920_v60 }
 0x15d   : > { %1170 = vmatprep.mubr.f32.mxu0 %v6606_v27  ;;  %4923 = vmatpush3.bf16.msra.mxu1 %v4920_v60  ;;  %v6967_v27 = vsel %vm453_vm1, %v524_v0, %v525_v21  ;;  %v4865_v60 = vpack.c.bf16 %v697_v40, %v696_v58  ;;  %v698_v0 = vld [vmem:[%s8897_s1 + $0x310] sm:$0xff] }
 0x15e   : > { %4925 = vmatprep.subr.bf16.mxu1 %v4924_v36  ;;  %v9103_v58 = vld [vmem:[#allocation10_spill] sm:$0xff] }
 0x15f   : > { %v718_v40 = vld [vmem:[%s8897_s1 + $0x3b0] sm:$0xff] }
 0x160   : > { %1171 = vmatmul.mubr.f32.gmra.mrb[52].mxu0 %v6942_v10 }
 0x161   : > { %1175 = vmatprep.mubr.f32.mxu0 %v6609_v26  ;;  %v527_v26 = vrot.slane %v6619_v17, 2  ;;  %4927 = vmatpush3.bf16.msra.mxu1 %v4924_v36  ;;  %v529_v17 = vrot.slane %v6628_v37, 2  ;;  %v703_v36 = vld [vmem:[%s8897_s1 + $0x338] sm:$0xff] }
 0x162   : > { %4929 = vmatprep.subr.bf16.mxu1 %v4928_v56 }
 0x163   : > { %v6979_v7 = vsel %vm453_vm1, %v525_v21, %v527_v26  ;;  %v699_v21 = vld [vmem:[%s8897_s1 + $0x318] sm:$0xff]  ;;  %v705_v26 = vld [vmem:[%s8897_s1 + $0x348] sm:$0xff] }
 0x164   : > { %1176 = vmatmul.mubr.f32.gmra.mrb[54].mxu0 %v6954_v4 }
 0x165   : > { %1180 = vmatprep.mubr.f32.mxu0 %v6628_v37  ;;  %4931 = vmatpush3.bf16.msra.mxu1 %v4928_v56  ;;  %v6995_v37 = vsel %vm453_vm1, %v529_v17, %v530_v19  ;;  %v708_v56 = vld [vmem:[%s8897_s1 + $0x360] sm:$0xff]  ;;  %v709_v17 = vld [vmem:[%s8897_s1 + $0x368] sm:$0xff] }
 0x166   : > { %4933 = vmatprep.subr.bf16.mxu1 %v4932_v43 }
 0x168   : > { %1181 = vmatmul.mubr.f32.gmra.mrb[56].mxu0 %v6967_v27 }
 0x169   : > { %1185 = vmatprep.mubr.f32.mxu0 %v6631_v35  ;;  %v532_v35 = vrot.slane %v6641_v23, 2  ;;  %4935 = vmatpush3.bf16.msra.mxu1 %v4932_v43  ;;  %v742_v23 = vld [vmem:[%s8897_s1 + $0x470] sm:$0xff]  ;;  %v713_v43 = vld [vmem:[%s8897_s1 + $0x388] sm:$0xff] }
 0x16a   : > { %4937 = vmatprep.subr.bf16.mxu1 %v4936_v38  ;;  %v4940_v12 = vpack.c.bf16 %v743_v54, %v742_v23  ;;  %v716_v23 = vld [vmem:[%s8897_s1 + $0x3a0] sm:$0xff]  ;;  %v717_v54 = vld [vmem:[%s8897_s1 + $0x3a8] sm:$0xff] }
 0x16b   : > { %v7010_v50 = vsel %vm453_vm1, %v530_v19, %v532_v35  ;;  %v710_v19 = vld [vmem:[%s8897_s1 + $0x370] sm:$0xff]  ;;  %v9101_v35 = vld [vmem:[#allocation8_spill] sm:$0xff] }
 0x16c   : > { %1186 = vmatmul.mubr.f32.gmra.mrb[58].mxu0 %v6979_v7 }
 0x16d   : > { %1190 = vmatprep.mubr.f32.mxu0 %v6990_v62  ;;  %4939 = vmatpush3.bf16.msra.mxu1 %v4936_v38  ;;  %v9102_v38 = vld [vmem:[#allocation9_spill] sm:$0xff] }
 0x16e   : > { %4941 = vmatprep.subr.bf16.mxu1 %v4940_v12 }
 0x170   : > { %1191 = vmatmul.mubr.f32.gmra.mrb[60].mxu0 %v6995_v37 }
 0x171   : > { %1195 = vmatprep.mubr.f32.mxu0 %v7005_v30  ;;  %4943 = vmatpush3.bf16.msra.mxu1 %v4940_v12  ;;  %v719_v12 = vld [vmem:[%s8897_s1 + $0x3b8] sm:$0xff] }
 0x172   : > { %4944 = vmatprep.subr.bf16.mxu1 %v9099_v1 }
 0x174   : > { %1196 = vmatmul.mubr.f32.gmra.mrb[62].mxu0 %v7010_v50  ;;  %4593 = vmatmul.mubr.f32.vlgmr.msra.gmra.mrb[0].mxu1 %v6721_v22 }
 0x175   : > { %1265 = vmatprep.mubr.f32.mxu0 %v6684_v5  ;;  %v4868_v5 = vpack.c.bf16 %v699_v21, %v698_v0  ;;  %4595 = vmatprep.mubr.f32.mxu1 %v6735_v15  ;;  %v720_v0 = vld [vmem:[%s8897_s1 + $0x3c0] sm:$0xff]  ;;  %v721_v21 = vld [vmem:[%s8897_s1 + $0x3c8] sm:$0xff] }
 0x178   : > { %1266 = vmatmul.mubr.f32.vlgmr.msra.gmra.mrb[0].mxu0 %v6227_v9  ;;  %4596 = vmatmul.mubr.f32.gmra.mrb[2].mxu1 %v6748_v47  ;;  %v4871_v9 = vpack.c.bf16 %v701_v34, %v700_v61  ;;  %v722_v61 = vld [vmem:[%s8897_s1 + $0x3d0] sm:$0xff]  ;;  %v723_v34 = vld [vmem:[%s8897_s1 + $0x3d8] sm:$0xff] }
 0x179   : > { %4866 = vmatpush1.bf16.msra.mxu0 %v4865_v60  ;;  %1270 = vmatprep.mubr.f32.mxu0 %v6697_v13  ;;  %v702_v13 = vld [vmem:[%s8897_s1 + $0x330] sm:$0xff]  ;;  %v9104_v60 = vld [vmem:[#allocation11_spill] sm:$0xff] }
 0x17a   : > { %4867 = vmatprep.subr.bf16.mxu0 %v9099_v1  ;;  %4598 = vmatprep.mubr.f32.mxu1 %v6762_v45 }
 0x17c   : > { %1271 = vmatmul.mubr.f32.gmra.mrb[2].mxu0 %v6249_v18  ;;  %4599 = vmatmul.mubr.f32.gmra.mrb[4].mxu1 %v6775_v11  ;;  %v4874_v18 = vpack.c.bf16 %v703_v36, %v702_v13  ;;  %v7167_v13 = vld [vmem:[%s6087_s8 + $0x190] sm:$0x3]  ;;  %v576_v36 = vrot.slane %v6990_v62, 2 }
 0x17d   : > { %1275 = vmatprep.mubr.f32.mxu0 %v6304_v39  ;;  %4869 = vmatpush1.bf16.msra.mxu0 %v4868_v5  ;;  %v704_v39 = vld [vmem:[%s8897_s1 + $0x340] sm:$0xff] }
 0x17e   : > { %4870 = vmatprep.subr.bf16.mxu0 %v9099_v1  ;;  %4601 = vmatprep.mubr.f32.mxu1 %v6789_v59  ;;  %v9105_v5 = vld [vmem:[#allocation12_spill] sm:$0xff] }
 0x180   : > { %1276 = vmatmul.mubr.f32.gmra.mrb[4].mxu0 %v6266_v24  ;;  %4602 = vmatmul.mubr.f32.gmra.mrb[6].mxu1 %v6802_v51 }
 0x181   : > { %1280 = vmatprep.mubr.f32.mxu0 %v6721_v22  ;;  %4872 = vmatpush1.bf16.msra.mxu0 %v4871_v9  ;;  %v4877_v22 = vpack.c.bf16 %v705_v26, %v704_v39  ;;  %v9106_v9 = vld [vmem:[#allocation13_spill] sm:$0xff]  ;;  %v724_v39 = vld [vmem:[%s8897_s1 + $0x3e0] sm:$0xff] }
 0x182   : > { %4873 = vmatprep.subr.bf16.mxu0 %v9099_v1  ;;  %4604 = vmatprep.mubr.f32.mxu1 %v6816_v20  ;;  %v725_v26 = vld [vmem:[%s8897_s1 + $0x3e8] sm:$0xff] }
 0x184   : > { %1281 = vmatmul.mubr.f32.gmra.mrb[6].mxu0 %v6287_v33  ;;  %4605 = vmatmul.mubr.f32.gmra.mrb[8].mxu1 %v6829_v6 }
 0x185   : > { %1285 = vmatprep.mubr.f32.mxu0 %v6735_v15  ;;  %4875 = vmatpush1.bf16.msra.mxu0 %v4874_v18  ;;  %v4880_v15 = vpack.c.bf16 %v707_v52, %v706_v49  ;;  %v577_v18 = vrot.slane %v7005_v30, 2  ;;  %v4907_v49 = vpack.c.bf16 %v725_v26, %v724_v39  ;;  %v5838_v39 = vld [vmem:[%s6087_s8 + $0x128] sm:$0xff] }
 0x186   : > { %4876 = vmatprep.subr.bf16.mxu0 %v9099_v1  ;;  %4607 = vmatprep.mubr.f32.mxu1 %v6843_v42 }
 0x187   : > { %v578_v52 = vsel %vm453_vm1, %v576_v36, %v577_v18  ;;  %v5837_v36 = vld [vmem:[%s6087_s8 + $0x120] sm:$0xff] }
 0x188   : > { %1286 = vmatmul.mubr.f32.gmra.mrb[8].mxu0 %v6310_v41  ;;  %4608 = vmatmul.mubr.f32.gmra.mrb[10].mxu1 %v6856_v8 }
 0x189   : > { %1290 = vmatprep.mubr.f32.mxu0 %v6748_v47  ;;  %4878 = vmatpush1.bf16.msra.mxu0 %v4877_v22  ;;  %v4883_v47 = vpack.c.bf16 %v709_v17, %v708_v56  ;;  %v9107_v22 = vld [vmem:[#allocation14_spill] sm:$0xff]  ;;  %v727_v56 = vld [vmem:[%s8897_s1 + $0x3f8] sm:$0xff] }
 0x18a   : > { %4879 = vmatprep.subr.bf16.mxu0 %v9099_v1  ;;  %4610 = vmatprep.mubr.f32.mxu1 %v6864_v46 }
 0x18c   : > { %1291 = vmatmul.mubr.f32.gmra.mrb[10].mxu0 %v6329_v48  ;;  %4611 = vmatmul.mubr.f32.gmra.mrb[12].mxu1 %v6871_v3 }
 0x18d   : > { %1295 = vmatprep.mubr.f32.mxu0 %v6762_v45  ;;  %4881 = vmatpush1.bf16.msra.mxu0 %v4880_v15  ;;  %v4886_v45 = vpack.c.bf16 %v711_v14, %v710_v19  ;;  %v726_v15 = vld [vmem:[%s8897_s1 + $0x3f0] sm:$0xff]  ;;  %v9109_v19 = vld [vmem:[#allocation16_spill] sm:$0xff]  ;;  %v9110_v14 = vld [vmem:[#allocation17_spill] sm:$0xff] }
 0x18e   : > { %4882 = vmatprep.subr.bf16.mxu0 %v9099_v1  ;;  %4613 = vmatprep.mubr.f32.mxu1 %v6878_v25 }
 0x190   : > { %1296 = vmatmul.mubr.f32.gmra.mrb[12].mxu0 %v6346_v55  ;;  %4614 = vmatmul.mubr.f32.gmra.mrb[14].mxu1 %v6884_v63 }
 0x191   : > { %1300 = vmatprep.mubr.f32.mxu0 %v6775_v11  ;;  %4884 = vmatpush1.bf16.msra.mxu0 %v4883_v47  ;;  %v4889_v11 = vpack.c.bf16 %v713_v43, %v712_v44  ;;  %v9108_v47 = vld [vmem:[#allocation15_spill] sm:$0xff]  ;;  %v9114_v43 = vld [vmem:[#allocation21_spill] sm:$0xff] }
 0x192   : > { %4885 = vmatprep.subr.bf16.mxu0 %v9099_v1  ;;  %4616 = vmatprep.mubr.f32.mxu1 %v6891_v53  ;;  %v9112_v44 = vld [vmem:[#allocation19_spill] sm:$0xff] }
 0x194   : > { %1301 = vmatmul.mubr.f32.gmra.mrb[14].mxu0 %v9101_v35  ;;  %4617 = vmatmul.mubr.f32.gmra.mrb[16].mxu1 %v6897_v31 }
 0x195   : > { %1305 = vmatprep.mubr.f32.mxu0 %v6789_v59  ;;  %4887 = vmatpush1.bf16.msra.mxu0 %v4886_v45  ;;  %v4892_v59 = vpack.c.bf16 %v715_v57, %v714_v32  ;;  %v9111_v45 = vld [vmem:[#allocation18_spill] sm:$0xff] }
 0x196   : > { %4888 = vmatprep.subr.bf16.mxu0 %v9099_v1  ;;  %4619 = vmatprep.mubr.f32.mxu1 %v6904_v28  ;;  %v9123_v32 = vld [vmem:[#allocation30_spill] sm:$0xff] }
 0x198   : > { %1306 = vmatmul.mubr.f32.gmra.mrb[16].mxu0 %v9102_v38  ;;  %4620 = vmatmul.mubr.f32.gmra.mrb[18].mxu1 %v6910_v29 }
 0x199   : > { %1310 = vmatprep.mubr.f32.mxu0 %v6802_v51  ;;  %4890 = vmatpush1.bf16.msra.mxu0 %v4889_v11  ;;  %v4895_v51 = vpack.c.bf16 %v717_v54, %v716_v23  ;;  %v7228_v11 = vld [vmem:[%s6087_s8 + $0x198] sm:$0xff] }
 0x19a   : > { %4891 = vmatprep.subr.bf16.mxu0 %v9099_v1  ;;  %4622 = vmatprep.mubr.f32.mxu1 %v6917_v16  ;;  %v593_v57 = vrot.slane %v7228_v11, 2 }
 0x19c   : > { %1311 = vmatmul.mubr.f32.gmra.mrb[18].mxu0 %v9103_v58  ;;  %4623 = vmatmul.mubr.f32.gmra.mrb[20].mxu1 %v6929_v2 }
 0x19d   : > { %1315 = vmatprep.mubr.f32.mxu0 %v6816_v20  ;;  %4893 = vmatpush1.bf16.msra.mxu0 %v4892_v59  ;;  %v4898_v20 = vpack.c.bf16 %v719_v12, %v718_v40  ;;  %v7241_v59 = vld [vmem:[%s6087_s8 + $0x1a8] sm:$0x3]  ;;  %v5817_v12 = vld [vmem:[%s6087_s8 + $0x30] sm:$0xff] }
 0x19e   : > { %4894 = vmatprep.subr.bf16.mxu0 %v9099_v1  ;;  %4625 = vmatprep.mubr.f32.mxu1 %v6942_v10  ;;  %v596_v23 = vrot.slane %v7241_v59, 2 }
 0x1a0   : > { %1316 = vmatmul.mubr.f32.gmra.mrb[20].mxu0 %v9104_v60  ;;  %4626 = vmatmul.mubr.f32.gmra.mrb[22].mxu1 %v6954_v4 }
 0x1a1   : > { %1320 = vmatprep.mubr.f32.mxu0 %v6829_v6  ;;  %4896 = vmatpush1.bf16.msra.mxu0 %v4895_v51  ;;  %v4901_v6 = vpack.c.bf16 %v721_v21, %v720_v0  ;;  %v5819_v0 = vld [vmem:[%s6087_s8 + $0x48] sm:$0xff]  ;;  %v5820_v21 = vld [vmem:[%s6087_s8 + $0x50] sm:$0xff] }
 0x1a2   : > { %4897 = vmatprep.subr.bf16.mxu0 %v9099_v1  ;;  %4628 = vmatprep.mubr.f32.mxu1 %v6967_v27 }
 0x1a4   : > { %1321 = vmatmul.mubr.f32.gmra.mrb[22].mxu0 %v9105_v5  ;;  %4629 = vmatmul.mubr.f32.gmra.mrb[24].mxu1 %v6979_v7 }
 0x1a5   : > { %1325 = vmatprep.mubr.f32.mxu0 %v6843_v42  ;;  %4899 = vmatpush1.bf16.msra.mxu0 %v4898_v20  ;;  %v4904_v42 = vpack.c.bf16 %v723_v34, %v722_v61  ;;  %v5818_v20 = vld [vmem:[%s6087_s8 + $0x38] sm:$0xff]  ;;  %v5832_v61 = vld [vmem:[%s6087_s8 + $0xe0] sm:$0xff]  ;;  %v5833_v34 = vld [vmem:[%s6087_s8 + $0xf0] sm:$0xff] }
 0x1a6   : > { %4900 = vmatprep.subr.bf16.mxu0 %v9099_v1  ;;  %4631 = vmatprep.mubr.f32.mxu1 %v6995_v37 }
 0x1a8   : > { %1326 = vmatmul.mubr.f32.gmra.mrb[24].mxu0 %v9106_v9  ;;  %4632 = vmatmul.mubr.f32.gmra.mrb[26].mxu1 %v7010_v50 }
 0x1a9   : > { %1330 = vmatprep.mubr.f32.mxu0 %v6856_v8  ;;  %4902 = vmatpush1.bf16.msra.mxu0 %v4901_v6  ;;  %v579_v8 = vrot.slane %v7167_v13, 2  ;;  %v5831_v6 = vld [vmem:[%s6087_s8 + $0xd8] sm:$0xff] }
 0x1aa   : > { %4903 = vmatprep.subr.bf16.mxu0 %v9099_v1  ;;  %4634 = vmatprep.mubr.f32.mxu1 %v578_v52 }
 0x1ab   : > { %v580_v17 = vsel %vm453_vm1, %v577_v18, %v579_v8  ;;  %v5839_v8 = vld [vmem:[%s6087_s8 + $0x138] sm:$0xff] }
 0x1ac   : > { %1331 = vmatmul.mubr.f32.gmra.mrb[26].mxu0 %v9107_v22  ;;  %4635 = vmatmul.mubr.f32.gmra.mrb[28].mxu1 %v580_v17 }
 0x1ad   : > { %1335 = vmatprep.mubr.f32.mxu0 %v6864_v46  ;;  %4905 = vmatpush1.bf16.msra.mxu0 %v4904_v42  ;;  %v4910_v46 = vpack.c.bf16 %v727_v56, %v726_v15  ;;  %v5836_v42 = vld [vmem:[%s6087_s8 + $0x110] sm:$0xff]  ;;  %v5842_v56 = vld [vmem:[%s6087_s8 + $0x158] sm:$0xff] }
 0x1ae   : > { %4906 = vmatprep.subr.bf16.mxu0 %v9099_v1  ;;  %v5841_v15 = vld [vmem:[%s6087_s8 + $0x150] sm:$0xff] }
 0x1b0   : > { %1336 = vmatmul.mubr.f32.gmra.mrb[28].mxu0 %v9108_v47 }
 0x1b1   : > { %1340 = vmatprep.mubr.f32.mxu0 %v6871_v3  ;;  %4908 = vmatpush1.bf16.msra.mxu0 %v4907_v49  ;;  %v9113_v3 = vld [vmem:[#allocation20_spill] sm:$0xff] }
 0x1b2   : > { %4909 = vmatprep.subr.bf16.mxu0 %v9099_v1  ;;  %v5840_v49 = vld [vmem:[%s6087_s8 + $0x140] sm:$0xff] }
 0x1b4   : > { %1341 = vmatmul.mubr.f32.gmra.mrb[30].mxu0 %v9109_v19 }
 0x1b5   : > { %1345 = vmatprep.mubr.f32.mxu0 %v6878_v25  ;;  %4911 = vmatpush1.bf16.msra.mxu0 %v4910_v46  ;;  %v9115_v25 = vld [vmem:[#allocation22_spill] sm:$0xff]  ;;  %v5843_v46 = vld [vmem:[%s6087_s8 + $0x168] sm:$0xff] }
 0x1b8   : > { %1346 = vmatmul.mubr.f32.gmra.mrb[32].mxu0 %v9110_v14 }
 0x1b9   : > { %1350 = vmatprep.mubr.f32.mxu0 %v6884_v63  ;;  %v9116_v63 = vld [vmem:[#allocation23_spill] sm:$0xff] }
 0x1bc   : > { %1351 = vmatmul.mubr.f32.gmra.mrb[34].mxu0 %v9111_v45 }
 0x1bd   : > { %1355 = vmatprep.mubr.f32.mxu0 %v6891_v53  ;;  %v9117_v53 = vld [vmem:[#allocation24_spill] sm:$0xff] }
 0x1c0   : > { %1356 = vmatmul.mubr.f32.gmra.mrb[36].mxu0 %v9112_v44 }
 0x1c1   : > { %1360 = vmatprep.mubr.f32.mxu0 %v6897_v31  ;;  %v9118_v31 = vld [vmem:[#allocation25_spill] sm:$0xff] }
 0x1c4   : > { %1361 = vmatmul.mubr.f32.gmra.mrb[38].mxu0 %v9113_v3 }
 0x1c5   : > { %1365 = vmatprep.mubr.f32.mxu0 %v6904_v28  ;;  %v9119_v28 = vld [vmem:[#allocation26_spill] sm:$0xff] }
 0x1c8   : > { %1366 = vmatmul.mubr.f32.gmra.mrb[40].mxu0 %v9114_v43 }
 0x1c9   : > { %1370 = vmatprep.mubr.f32.mxu0 %v6910_v29  ;;  %v9120_v29 = vld [vmem:[#allocation27_spill] sm:$0xff] }
 0x1cc   : > { %1371 = vmatmul.mubr.f32.gmra.mrb[42].mxu0 %v9115_v25 }
 0x1cd   : > { %1375 = vmatprep.mubr.f32.mxu0 %v6917_v16  ;;  %v9121_v16 = vld [vmem:[#allocation28_spill] sm:$0xff] }
 0x1d0   : > { %1376 = vmatmul.mubr.f32.gmra.mrb[44].mxu0 %v9116_v63 }
 0x1d1   : > { %1380 = vmatprep.mubr.f32.mxu0 %v6929_v2  ;;  %v9122_v2 = vld [vmem:[#allocation29_spill] sm:$0xff] }
 0x1d4   : > { %1381 = vmatmul.mubr.f32.gmra.mrb[46].mxu0 %v9117_v53 }
 0x1d5   : > { %1385 = vmatprep.mubr.f32.mxu0 %v6942_v10  ;;  %v569_v10 = vrot.slane %v6990_v62, 1 }
 0x1d8   : > { %1386 = vmatmul.mubr.f32.gmra.mrb[48].mxu0 %v9118_v31 }
 0x1d9   : > { %1390 = vmatprep.mubr.f32.mxu0 %v6954_v4  ;;  %v570_v4 = vrot.slane %v7005_v30, 1 }
 0x1dc   : > { %1391 = vmatmul.mubr.f32.gmra.mrb[50].mxu0 %v9119_v28 }
 0x1dd   : > { %1395 = vmatprep.mubr.f32.mxu0 %v6967_v27  ;;  %v7231_v27 = vld [vmem:[%s6087_s8 + $0x1a0] sm:$0xff] }
 0x1e0   : > { %1396 = vmatmul.mubr.f32.gmra.mrb[52].mxu0 %v9120_v29 }
 0x1e1   : > { %1400 = vmatprep.mubr.f32.mxu0 %v6979_v7  ;;  %v7235_v7 = vsel %vm340_vm0, %v569_v10, %v570_v4 }
 0x1e4   : > { %1401 = vmatmul.mubr.f32.gmra.mrb[54].mxu0 %v9121_v16 }
 0x1e5   : > { %1405 = vmatprep.mubr.f32.mxu0 %v6995_v37  ;;  %v572_v37 = vrot.slane %v7167_v13, 1  ;;  %v5835_v13 = vld [vmem:[%s6087_s8 + $0x108] sm:$0xff] }
 0x1e7   : > { %v7248_v40 = vsel %vm340_vm0, %v570_v4, %v572_v37 }
 0x1e8   : > { %1406 = vmatmul.mubr.f32.gmra.mrb[56].mxu0 %v9122_v2 }
 0x1e9   : > { %1410 = vmatprep.mubr.f32.mxu0 %v7010_v50  ;;  %v594_v50 = vrot.slane %v7231_v27, 2 }
 0x1eb   : > { %v595_v54 = vsel %vm453_vm1, %v593_v57, %v594_v50  ;;  %v597_v51 = vsel %vm453_vm1, %v594_v50, %v596_v23 }
 0x1ec   : > { %1411 = vmatmul.mubr.f32.gmra.mrb[58].mxu0 %v9123_v32  ;;  %4637 = vmatprep.mubr.f32.mxu1 %v595_v54 }
 0x1ed   : > { %1415 = vmatprep.mubr.f32.mxu0 %v578_v52  ;;  %4638 = vmatmul.mubr.f32.gmra.mrb[30].mxu1 %v597_v51  ;;  %v2636_v51 = vld [vmem:[#allocation2] sm:$0xff] }
 0x1f0   : > { %1416 = vmatmul.mubr.f32.gmra.mrb[60].mxu0 %v7235_v7 }
 0x1f1   : > { %1420 = vmatprep.mubr.f32.mxu0 %v580_v17 }
 0x1f4   : > { %1421 = vmatmul.mubr.f32.gmra.mrb[62].mxu0 %v7248_v40 }
 0x1f5   : > { %1490 = vmatprep.mubr.f32.mxu0 %v6266_v24  ;;  %v5821_v24 = vld [vmem:[%s6087_s8 + $0x60] sm:$0xff] }
 0x1f8   : > { %1491 = vmatmul.mubr.f32.vlgmr.msra.gmra.mrb[0].mxu0 %v5817_v12 }
 0x1f9   : > { %1495 = vmatprep.mubr.f32.mxu0 %v6287_v33  ;;  %v5822_v33 = vld [vmem:[%s6087_s8 + $0x68] sm:$0xff] }
 0x1fc   : > { %1496 = vmatmul.mubr.f32.gmra.mrb[2].mxu0 %v5818_v20  ;;  %v2638_v20 = vld [vmem:[#allocation2 + $0x10] sm:$0xff] }
 0x1fd   : > { %1500 = vmatprep.mubr.f32.mxu0 %v6310_v41  ;;  %v5823_v41 = vld [vmem:[%s6087_s8 + $0x78] sm:$0xff] }
 0x200   : > { %1501 = vmatmul.mubr.f32.gmra.mrb[4].mxu0 %v5819_v0  ;;  %v2639_v0 = vld [vmem:[#allocation2 + $0x18] sm:$0xff] }
 0x201   : > { %1505 = vmatprep.mubr.f32.mxu0 %v6329_v48  ;;  %v5824_v48 = vld [vmem:[%s6087_s8 + $0x80] sm:$0xff] }
 0x204   : > { %1506 = vmatmul.mubr.f32.gmra.mrb[6].mxu0 %v5820_v21  ;;  %v4948_v21 = vpack.c.bf16 %v2639_v0, %v2638_v20 }
 0x205   : > { %1510 = vmatprep.mubr.f32.mxu0 %v6346_v55  ;;  %v5825_v55 = vld [vmem:[%s6087_s8 + $0x90] sm:$0xff] }
 0x208   : > { %1511 = vmatmul.mubr.f32.gmra.mrb[8].mxu0 %v5821_v24 }
 0x209   : > { %1515 = vmatprep.mubr.f32.mxu0 %v9101_v35  ;;  %v5826_v35 = vld [vmem:[%s6087_s8 + $0x98] sm:$0xff] }
 0x20c   : > { %1516 = vmatmul.mubr.f32.gmra.mrb[10].mxu0 %v5822_v33 }
 0x20d   : > { %1520 = vmatprep.mubr.f32.mxu0 %v9102_v38  ;;  %v5827_v38 = vld [vmem:[%s6087_s8 + $0xa8] sm:$0xff] }
 0x210   : > { %1521 = vmatmul.mubr.f32.gmra.mrb[12].mxu0 %v5823_v41  ;;  %v2640_v41 = vld [vmem:[#allocation2 + $0x20] sm:$0xff] }
 0x211   : > { %1525 = vmatprep.mubr.f32.mxu0 %v9103_v58  ;;  %v5828_v58 = vld [vmem:[%s6087_s8 + $0xb0] sm:$0xff] }
 0x214   : > { %1526 = vmatmul.mubr.f32.gmra.mrb[14].mxu0 %v5824_v48  ;;  %v2641_v48 = vld [vmem:[#allocation2 + $0x28] sm:$0xff] }
 0x215   : > { %1530 = vmatprep.mubr.f32.mxu0 %v9104_v60  ;;  %v5829_v60 = vld [vmem:[%s6087_s8 + $0xc0] sm:$0xff] }
 0x218   : > { %1531 = vmatmul.mubr.f32.gmra.mrb[16].mxu0 %v5825_v55  ;;  %v4951_v55 = vpack.c.bf16 %v2641_v48, %v2640_v41 }
 0x219   : > { %1535 = vmatprep.mubr.f32.mxu0 %v9105_v5  ;;  %v5830_v5 = vld [vmem:[%s6087_s8 + $0xc8] sm:$0xff] }
 0x21c   : > { %1536 = vmatmul.mubr.f32.gmra.mrb[18].mxu0 %v5826_v35  ;;  %v2642_v35 = vld [vmem:[#allocation2 + $0x30] sm:$0xff] }
 0x21d   : > { %1540 = vmatprep.mubr.f32.mxu0 %v9106_v9  ;;  %v5834_v9 = vld [vmem:[%s6087_s8 + $0xf8] sm:$0xff] }
 0x220   : > { %1541 = vmatmul.mubr.f32.gmra.mrb[20].mxu0 %v5827_v38  ;;  %v2643_v38 = vld [vmem:[#allocation2 + $0x38] sm:$0xff] }
 0x221   : > { %1545 = vmatprep.mubr.f32.mxu0 %v9107_v22 }
 0x224   : > { %1546 = vmatmul.mubr.f32.gmra.mrb[22].mxu0 %v5828_v58  ;;  %v4954_v58 = vpack.c.bf16 %v2643_v38, %v2642_v35 }
 0x225   : > { %1550 = vmatprep.mubr.f32.mxu0 %v9108_v47 }
 0x228   : > { %1551 = vmatmul.mubr.f32.gmra.mrb[24].mxu0 %v5829_v60 }
 0x229   : > { %1555 = vmatprep.mubr.f32.mxu0 %v9109_v19  ;;  %v5844_v19 = vld [vmem:[%s6087_s8 + $0x170] sm:$0xff] }
 0x22c   : > { %1556 = vmatmul.mubr.f32.gmra.mrb[26].mxu0 %v5830_v5 }
 0x22d   : > { %1560 = vmatprep.mubr.f32.mxu0 %v9110_v14 }
 0x230   : > { %1561 = vmatmul.mubr.f32.gmra.mrb[28].mxu0 %v5831_v6  ;;  %v2644_v6 = vld [vmem:[#allocation2 + $0x40] sm:$0xff] }
 0x231   : > { %1565 = vmatprep.mubr.f32.mxu0 %v9111_v45 }
 0x234   : > { %1566 = vmatmul.mubr.f32.gmra.mrb[30].mxu0 %v5832_v61  ;;  %v2645_v61 = vld [vmem:[#allocation2 + $0x48] sm:$0xff] }
 0x235   : > { %1570 = vmatprep.mubr.f32.mxu0 %v9112_v44  ;;  %v586_v44 = vrot.slane %v7228_v11, 1 }
 0x238   : > { %1571 = vmatmul.mubr.f32.gmra.mrb[32].mxu0 %v5833_v34  ;;  %v4957_v34 = vpack.c.bf16 %v2645_v61, %v2644_v6 }
 0x239   : > { %1575 = vmatprep.mubr.f32.mxu0 %v9113_v3  ;;  %v587_v3 = vrot.slane %v7231_v27, 1 }
 0x23c   : > { %1576 = vmatmul.mubr.f32.gmra.mrb[34].mxu0 %v5834_v9  ;;  %v7389_v9 = vld [vmem:[%s8898_s2] ss:$0 sm:$0xff] }
 0x23d   : > { %1580 = vmatprep.mubr.f32.mxu0 %v9114_v43  ;;  %v588_v43 = vsel %vm340_vm0, %v586_v44, %v587_v3 }
 0x240   : > { %1581 = vmatmul.mubr.f32.gmra.mrb[36].mxu0 %v5835_v13  ;;  %v2646_v13 = vld [vmem:[#allocation2 + $0x50] sm:$0xff] }
 0x241   : > { %1585 = vmatprep.mubr.f32.mxu0 %v9115_v25  ;;  %v589_v25 = vrot.slane %v7241_v59, 1 }
 0x244   : > { %1586 = vmatmul.mubr.f32.gmra.mrb[38].mxu0 %v5836_v42  ;;  %v2647_v42 = vld [vmem:[#allocation2 + $0x58] sm:$0xff] }
 0x245   : > { %1590 = vmatprep.mubr.f32.mxu0 %v9116_v63 }
 0x247   : > { %v7294_v18 = vpop.f32.mrb[0].mxu1 }
 0x248   : > { %1591 = vmatmul.mubr.f32.gmra.mrb[40].mxu0 %v5837_v36  ;;  %v7297_v26 = vpop.f32.mrb[1].mxu1  ;;  %v4960_v36 = vpack.c.bf16 %v2647_v42, %v2646_v13 }
 0x249   : > { %1595 = vmatprep.mubr.f32.mxu0 %v9117_v53 }
 0x24b   : > { %v7302_v22 = vpop.f32.mrb[2].mxu1 }
 0x24c   : > { %1596 = vmatmul.mubr.f32.gmra.mrb[42].mxu0 %v5838_v39  ;;  %v7305_v52 = vpop.f32.mrb[3].mxu1 }
 0x24d   : > { %1600 = vmatprep.mubr.f32.mxu0 %v9118_v31  ;;  %v590_v31 = vsel %vm340_vm0, %v587_v3, %v589_v25 }
 0x24f   : > { %v7311_v17 = vpop.f32.mrb[4].mxu1 }
 0x250   : > { %1601 = vmatmul.mubr.f32.gmra.mrb[44].mxu0 %v5839_v8  ;;  %v7314_v47 = vpop.f32.mrb[5].mxu1 }
 0x251   : > { %1605 = vmatprep.mubr.f32.mxu0 %v9119_v28 }
 0x253   : > { %v7319_v14 = vpop.f32.mrb[6].mxu1 }
 0x254   : > { %1606 = vmatmul.mubr.f32.gmra.mrb[46].mxu0 %v5840_v49  ;;  %v7322_v45 = vpop.f32.mrb[7].mxu1 }
 0x255   : > { %1610 = vmatprep.mubr.f32.mxu0 %v9120_v29 }
 0x257   : > { %v7331_v63 = vpop.f32.mrb[8].mxu1 }
 0x258   : > { %1611 = vmatmul.mubr.f32.gmra.mrb[48].mxu0 %v5841_v15  ;;  %v7333_v53 = vpop.f32.mrb[9].mxu1  ;;  %v2648_v15 = vld [vmem:[#allocation2 + $0x60] sm:$0xff] }
 0x259   : > { %1615 = vmatprep.mubr.f32.mxu0 %v9121_v16 }
 0x25c   : > { %1616 = vmatmul.mubr.f32.gmra.mrb[50].mxu0 %v5842_v56  ;;  %v2649_v56 = vld [vmem:[#allocation2 + $0x68] sm:$0xff] }
 0x25d   : > { %1620 = vmatprep.mubr.f32.mxu0 %v9122_v2 }
 0x260   : > { %1621 = vmatmul.mubr.f32.gmra.mrb[52].mxu0 %v5843_v46 }
 0x261   : > { %1625 = vmatprep.mubr.f32.mxu0 %v9123_v32 }
 0x264   : > { %1626 = vmatmul.mubr.f32.gmra.mrb[54].mxu0 %v5844_v19  ;;  %v4963_v19 = vpack.c.bf16 %v2649_v56, %v2648_v15  ;;  %v2657_v15 = vld [vmem:[#allocation2 + $0xa8] sm:$0xff] }
 0x265   : > { %1630 = vmatprep.mubr.f32.mxu0 %v7235_v7 }
 0x268   : > { %1631 = vmatmul.mubr.f32.gmra.mrb[56].mxu0 %v6990_v62  ;;  %v7338_v62 = vpop.f32.mrb[10].mxu1 }
 0x269   : > { %1635 = vmatprep.mubr.f32.mxu0 %v7248_v40  ;;  %v7340_v28 = vpop.f32.mrb[11].mxu1  ;;  %v2637_v40 = vld [vmem:[#allocation2 + $0x8] sm:$0xff] }
 0x26a   : > { %v7342_v29 = vpop.f32.mrb[12].mxu1  ;;  %v4945_v12 = vpack.c.bf16 %v2637_v40, %v2636_v51  ;;  %v2651_v51 = vld [vmem:[#allocation2 + $0x78] sm:$0xff]  ;;  %v2652_v40 = vld [vmem:[#allocation2 + $0x80] sm:$0xff] }
 0x26b   : > { %v7344_v16 = vpop.f32.mrb[13].mxu1 }
 0x26c   : > { %1636 = vmatmul.mubr.f32.gmra.mrb[58].mxu0 %v7005_v30  ;;  %v7346_v30 = vpop.f32.mrb[14].mxu1  ;;  %4946 = vmatpush1.bf16.msra.mxu1 %v4945_v12 }
 0x26d   : > { %1640 = vmatprep.mubr.f32.mxu0 %v588_v43  ;;  %v7348_v2 = vpop.f32.mrb[15].mxu1  ;;  %4947 = vmatprep.subr.bf16.mxu1 %v9099_v1 }
 0x26e   : > { %v7350_v10 = vpop.f32.mrb[16].mxu1 }
 0x26f   : > { %v7352_v4 = vpop.f32.mrb[17].mxu1 }
 0x270   : > { %1641 = vmatmul.mubr.f32.gmra.mrb[60].mxu0 %v7228_v11  ;;  %v7354_v11 = vpop.f32.mrb[18].mxu1  ;;  %4949 = vmatpush1.bf16.msra.mxu1 %v4948_v21  ;;  %v2653_v21 = vld [vmem:[#allocation2 + $0x88] sm:$0xff] }
 0x271   : > { %1645 = vmatprep.mubr.f32.mxu0 %v590_v31  ;;  %v7356_v32 = vpop.f32.mrb[19].mxu1  ;;  %4950 = vmatprep.subr.bf16.mxu1 %v9099_v1  ;;  %v2650_v31 = vld [vmem:[#allocation2 + $0x70] sm:$0xff]  ;;  %v4969_v38 = vpack.c.bf16 %v2653_v21, %v2652_v40 }
 0x272   : > { %v4966_v0 = vpack.c.bf16 %v2651_v51, %v2650_v31 }
 0x274   : > { %1646 = vmatmul.mubr.f32.gmra.mrb[62].mxu0 %v7231_v27  ;;  %v7358_v27 = vpop.f32.mrb[20].mxu1  ;;  %4952 = vmatpush1.bf16.msra.mxu1 %v4951_v55 }
 0x275   : > { %v7360_v7 = vpop.f32.mrb[21].mxu1  ;;  %4953 = vmatprep.subr.bf16.mxu1 %v9099_v1 }
 0x276   : > { %v7362_v37 = vpop.f32.mrb[22].mxu1 }
 0x277   : > { %v7364_v57 = vpop.f32.mrb[23].mxu1 }
 0x278   : > { %v7366_v50 = vpop.f32.mrb[24].mxu1  ;;  %4955 = vmatpush1.bf16.msra.mxu1 %v4954_v58  ;;  %v2654_v58 = vld [vmem:[#allocation2 + $0x90] sm:$0xff] }
 0x279   : > { %v7368_v59 = vpop.f32.mrb[25].mxu1  ;;  %4956 = vmatprep.subr.bf16.mxu1 %v9099_v1 }
 0x27b   : > { %v7370_v23 = vpop.f32.mrb[26].mxu1 }
 0x27c   : > { %v7372_v54 = vpop.f32.mrb[27].mxu1  ;;  %4958 = vmatpush1.bf16.msra.mxu1 %v4957_v34 }
 0x27d   : > { %4959 = vmatprep.subr.bf16.mxu1 %v9099_v1 }
 0x27f   : > { %v7375_v24 = vpop.f32.mrb[28].mxu1 }
 0x280   : > { %v7377_v33 = vpop.f32.mrb[29].mxu1  ;;  %4961 = vmatpush1.bf16.msra.mxu1 %v4960_v36 }
 0x281   : > { %4962 = vmatprep.subr.bf16.mxu1 %v9099_v1 }
 0x284   : > { %4964 = vmatpush1.bf16.msra.mxu1 %v4963_v19 }
 0x285   : > { %4965 = vmatprep.subr.bf16.mxu1 %v9099_v1 }
 0x288   : > { %4967 = vmatpush1.bf16.msra.mxu1 %v4966_v0 }
 0x289   : > { %4968 = vmatprep.subr.bf16.mxu1 %v9099_v1 }
 0x28c   : > { %4970 = vmatpush1.bf16.msra.mxu1 %v4969_v38 }
 0x28d   : > { %4971 = vmatprep.subr.bf16.mxu1 %v9099_v1 }
 0x2c0   : > { %v7381_v60 = vpop.f32.mrb[30].mxu1 }
 0x2c1   : > { %v7383_v5 = vpop.f32.mrb[31].mxu1 }
 0x2cb   : > { %v1492_v39 = vpop.f32.mrb[0].mxu0 }
 0x2cc   : > { %v5184_v8 = vadd.f32 %v7389_v9, %v1492_v39  ;;  %v1494_v49 = vpop.f32.mrb[1].mxu0 }
 0x2cd   : > { %v2656_v49 = vld [vmem:[#allocation2 + $0xa0] sm:$0xff] }
 0x2ce   : > { %v1718_v46 = vadd.f32 %v5184_v8, %v7297_v26 }
 0x2cf   : > { %v1497_v44 = vpop.f32.mrb[2].mxu0 }
 0x2d0   : > { %v1908_v3 = vmul.f32 0.2, %v1718_v46  ;;  %v5185_v43 = vadd.f32 %v7389_v9, %v1497_v44  ;;  %v1499_v25 = vpop.f32.mrb[3].mxu0  ;;  %vm1876_vm2 = vcmp.gt.f32.partialorder %v1718_v46, 0.0 }
 0x2d1   : > { %v4975_v25 = vpack.c.bf16 %v2657_v15, %v2656_v49 }
 0x2d2   : > { %v1723_v12 = vadd.f32 %v5185_v43, %v7294_v18  ;;  %v7398_v20 = vsel %vm1876_vm2, %v1718_v46, %v1908_v3  ;;  %v2655_v18 = vld [vmem:[#allocation2 + $0x98] sm:$0xff] }
 0x2d3   : > { %v1502_v26 = vpop.f32.mrb[4].mxu0  ;;  %v1972_v41 = vmul.f32 %v7398_v20, %v7398_v20  ;;  %v4972_v8 = vpack.c.bf16 %v2655_v18, %v2654_v58 }
 0x2d4   : > { %v5186_v48 = vadd.f32 %v7389_v9, %v1502_v26  ;;  %v1504_v55 = vpop.f32.mrb[5].mxu0  ;;  %vm1877_vm3 = vcmp.gt.f32.partialorder %v1723_v12, 0.0  ;;  %v1909_v35 = vmul.f32 0.2, %v1723_v12  ;;  %v2658_v26 = vld [vmem:[#allocation2 + $0xb0] sm:$0xff] }
 0x2d5   : > { %2004 = vadd.xlane.f32.xlu0 %v1972_v41  ;;  %4973 = vmatpush1.bf16.msra.mxu1 %v4972_v8  ;;  %v2659_v41 = vld [vmem:[#allocation2 + $0xb8] sm:$0xff] }
 0x2d6   : > { %v1728_v6 = vadd.f32 %v5186_v48, %v7305_v52  ;;  %v7405_v61 = vsel %vm1877_vm3, %v1723_v12, %v1909_v35  ;;  %4974 = vmatprep.subr.bf16.mxu1 %v9099_v1  ;;  %v4978_v55 = vpack.c.bf16 %v2659_v41, %v2658_v26 }
 0x2d7   : > { %v1507_v34 = vpop.f32.mrb[6].mxu0  ;;  %v1973_v13 = vmul.f32 %v7405_v61, %v7405_v61 }
 0x2d8   : > { %v1910_v42 = vmul.f32 0.2, %v1728_v6  ;;  %v5187_v36 = vadd.f32 %v7389_v9, %v1507_v34  ;;  %v1509_v39 = vpop.f32.mrb[7].mxu0  ;;  %vm1878_vm4 = vcmp.gt.f32.partialorder %v1728_v6, 0.0  ;;  %v2764_v34 = vld [vmem:[#allocation2 + $0x400] sm:$0xff] }
 0x2d9   : > { %2006 = vadd.xlane.f32.xlu0 %v1973_v13  ;;  %4976 = vmatpush1.bf16.msra.mxu1 %v4975_v25  ;;  %v2765_v13 = vld [vmem:[#allocation2 + $0x408] sm:$0xff]  ;;  %v2662_v25 = vld [vmem:[#allocation2 + $0xd0] sm:$0xff] }
 0x2da   : > { %v1733_v52 = vadd.f32 %v5187_v36, %v7302_v22  ;;  %v7412_v56 = vsel %vm1878_vm4, %v1728_v6, %v1910_v42  ;;  %4977 = vmatprep.subr.bf16.mxu1 %v9099_v1  ;;  %v7432_v42 = vpack.c.bf16 %v2765_v13, %v2764_v34  ;;  %v2661_v36 = vld [vmem:[#allocation2 + $0xc8] sm:$0xff] }
 0x2db   : > { %v1512_v46 = vpop.f32.mrb[8].mxu0  ;;  %v1974_v19 = vmul.f32 %v7412_v56, %v7412_v56 }
 0x2dc   : > { %v5188_v44 = vadd.f32 %v7389_v9, %v1512_v46  ;;  %v1514_v3 = vpop.f32.mrb[9].mxu0  ;;  %vm1879_vm5 = vcmp.gt.f32.partialorder %v1733_v52, 0.0  ;;  %v1911_v43 = vmul.f32 0.2, %v1733_v52  ;;  %9124 = vst [vmem:[#allocation8_spill] sm:$0xff] %v7432_v42  ;;  %5137 = vmatprep.subr.bf16.mxu0 %v7432_v42 }
 0x2dd   : > { %2008 = vadd.xlane.f32.xlu1 %v1974_v19  ;;  %4979 = vmatpush1.bf16.msra.mxu1 %v4978_v55  ;;  %v2766_v3 = vld [vmem:[#allocation2 + $0x410] sm:$0xff]  ;;  %v2768_v55 = vld [vmem:[#allocation2 + $0x420] sm:$0xff] }
 0x2de   : > { %v1738_v31 = vadd.f32 %v5188_v44, %v7314_v47  ;;  %v7419_v51 = vsel %vm1879_vm5, %v1733_v52, %v1911_v43  ;;  %4980 = vmatprep.subr.bf16.mxu1 %v9099_v1  ;;  %5139 = vmatpush3.bf16.msra.mxu0 %v7432_v42  ;;  %v2767_v43 = vld [vmem:[#allocation2 + $0x418] sm:$0xff] }
 0x2df   : > { %v1517_v22 = vpop.f32.mrb[10].mxu0  ;;  %v1975_v40 = vmul.f32 %v7419_v51, %v7419_v51 }
 0x2e0   : > { %v1912_v12 = vmul.f32 0.2, %v1738_v31  ;;  %v5189_v0 = vadd.f32 %v7389_v9, %v1517_v22  ;;  %v1519_v21 = vpop.f32.mrb[11].mxu0  ;;  %vm1880_vm6 = vcmp.gt.f32.partialorder %v1738_v31, 0.0 }
 0x2e1   : > { %2010 = vadd.xlane.f32.xlu1 %v1975_v40 }
 0x2e2   : > { %v1743_v48 = vadd.f32 %v5189_v0, %v7311_v17  ;;  %v7426_v47 = vsel %vm1880_vm6, %v1738_v31, %v1912_v12  ;;  %v2660_v17 = vld [vmem:[#allocation2 + $0xc0] sm:$0xff]  ;;  %v2663_v31 = vld [vmem:[#allocation2 + $0xd8] sm:$0xff] }
 0x2e3   : > { %v1522_v35 = vpop.f32.mrb[12].mxu0  ;;  %v1976_v38 = vmul.f32 %v7426_v47, %v7426_v47  ;;  %v4981_v49 = vpack.c.bf16 %v2661_v36, %v2660_v17  ;;  %v4984_v12 = vpack.c.bf16 %v2663_v31, %v2662_v25 }
 0x2e4   : > { %v5190_v58 = vadd.f32 %v7389_v9, %v1522_v35  ;;  %v1524_v18 = vpop.f32.mrb[13].mxu0  ;;  %vm1881_vm7 = vcmp.gt.f32.partialorder %v1743_v48, 0.0  ;;  %v1913_v6 = vmul.f32 0.2, %v1743_v48  ;;  %v2769_v35 = vld [vmem:[#allocation2 + $0x428] sm:$0xff] }
 0x2e5   : > { %2012 = vadd.xlane.f32.xlu0 %v1976_v38  ;;  %4982 = vmatpush1.bf16.msra.mxu1 %v4981_v49  ;;  %v2664_v38 = vld [vmem:[#allocation2 + $0xe0] sm:$0xff] }
 0x2e6   : > { %v1748_v39 = vadd.f32 %v5190_v58, %v7322_v45  ;;  %v7435_v8 = vsel %vm1881_vm7, %v1743_v48, %v1913_v6  ;;  %4983 = vmatprep.subr.bf16.mxu1 %v9099_v1  ;;  %v7443_v45 = vpack.c.bf16 %v2767_v43, %v2766_v3  ;;  %v2665_v58 = vld [vmem:[#allocation2 + $0xe8] sm:$0xff] }
 0x2e7   : > { %v1527_v15 = vpop.f32.mrb[14].mxu0  ;;  %v1977_v52 = vmul.f32 %v7435_v8, %v7435_v8  ;;  %v4987_v34 = vpack.c.bf16 %v2665_v58, %v2664_v38 }
 0x2e8   : > { %v1914_v46 = vmul.f32 0.2, %v1748_v39  ;;  %v5191_v19 = vadd.f32 %v7389_v9, %v1527_v15  ;;  %v1529_v44 = vpop.f32.mrb[15].mxu0  ;;  %vm1882_vm8 = vcmp.gt.f32.partialorder %v1748_v39, 0.0  ;;  %9125 = vst [vmem:[#allocation9_spill] sm:$0xff] %v7443_v45  ;;  %5141 = vmatprep.subr.bf16.mxu0 %v7443_v45  ;;  %v2770_v15 = vld [vmem:[#allocation2 + $0x430] sm:$0xff] }
 0x2e9   : > { %2014 = vadd.xlane.f32.xlu1 %v1977_v52  ;;  %4985 = vmatpush1.bf16.msra.mxu1 %v4984_v12  ;;  %v2771_v52 = vld [vmem:[#allocation2 + $0x438] sm:$0xff]  ;;  %v5945_v44 = vmov 0.0  }
 0x2ea   : > { %v1753_v22 = vadd.f32 %v5191_v19, %v7319_v14  ;;  %v7446_v40 = vsel %vm1882_vm8, %v1748_v39, %v1914_v46  ;;  %5143 = vmatpush3.bf16.msra.mxu0 %v7443_v45  ;;  %4986 = vmatprep.subr.bf16.mxu1 %v9099_v1  ;;  %v7454_v14 = vpack.c.bf16 %v2769_v35, %v2768_v55  ;;  %v2666_v46 = vld [vmem:[#allocation2 + $0xf0] sm:$0xff]  ;;  %v2667_v19 = vld [vmem:[#allocation2 + $0xf8] sm:$0xff]  ;;  %v7467_v3 = vrot.slane %v5945_v44, 7  ;;  %v2772_v55 = vld [vmem:[#allocation2 + $0x440] sm:$0xff] }
 0x2eb   : > { %v1532_v0 = vpop.f32.mrb[16].mxu0  ;;  %v1978_v21 = vmul.f32 %v7446_v40, %v7446_v40  ;;  %v4990_v31 = vpack.c.bf16 %v2667_v19, %v2666_v46  ;;  %v2773_v35 = vld [vmem:[#allocation2 + $0x448] sm:$0xff]  ;;  %v2774_v46 = vld [vmem:[#allocation2 + $0x450] sm:$0xff]  ;;  %v2775_v19 = vld [vmem:[#allocation2 + $0x458] sm:$0xff] }
 0x2ec   : > { %v5192_v26 = vadd.f32 %v7389_v9, %v1532_v0  ;;  %v1534_v41 = vpop.f32.mrb[17].mxu0  ;;  %vm1883_vm9 = vcmp.gt.f32.partialorder %v1753_v22, 0.0  ;;  %v1915_v48 = vmul.f32 0.2, %v1753_v22  ;;  %9126 = vst [vmem:[#allocation10_spill] sm:$0xff] %v7454_v14  ;;  %5145 = vmatprep.subr.bf16.mxu0 %v7454_v14  ;;  %9128 = vst [vmem:[#allocation12_spill] sm:$0xff] %v7467_v3 }
 0x2ed   : > { %2016 = vadd.xlane.f32.xlu0 %v1978_v21  ;;  %4988 = vmatpush1.bf16.msra.mxu1 %v4987_v34  ;;  %v7477_v0 = vsel %vm2229_vm11, 0.0, %v7467_v3  ;;  %v2397_v21 = vrot.slane %v7467_v3, 1 }
 0x2ee   : > { %v1758_v18 = vadd.f32 %v5192_v26, %v7333_v53  ;;  %v7457_v6 = vsel %vm1883_vm9, %v1753_v22, %v1915_v48  ;;  %5147 = vmatpush3.bf16.msra.mxu0 %v7454_v14  ;;  %4989 = vmatprep.subr.bf16.mxu1 %v9099_v1  ;;  %v7465_v53 = vpack.c.bf16 %v2771_v52, %v2770_v15  ;;  %v2396_v48 = vrot.slane %v7477_v0, 1 }
 0x2ef   : > { %v1537_v13 = vpop.f32.mrb[18].mxu0  ;;  %v1979_v17 = vmul.f32 %v7457_v6, %v7457_v6 }
 0x2f0   : > { %v1916_v36 = vmul.f32 0.2, %v1758_v18  ;;  %v5193_v39 = vadd.f32 %v7389_v9, %v1537_v13  ;;  %v1539_v49 = vpop.f32.mrb[19].mxu0  ;;  %vm1884_vm10 = vcmp.gt.f32.partialorder %v1758_v18, 0.0  ;;  %9127 = vst [vmem:[#allocation11_spill] sm:$0xff] %v7465_v53  ;;  %5149 = vmatprep.subr.bf16.mxu0 %v7465_v53  ;;  %v7495_v13 = vpack.c.bf16 %v2773_v35, %v2772_v55 }
 0x2f1   : > { %2018 = vadd.xlane.f32.xlu1 %v1979_v17  ;;  %4991 = vmatpush1.bf16.msra.mxu1 %v4990_v31 }
 0x2f2   : > { %v1763_v43 = vadd.f32 %v5193_v39, %v7331_v63  ;;  %v7470_v25 = vsel %vm1884_vm10, %v1758_v18, %v1916_v36  ;;  %5151 = vmatpush3.bf16.msra.mxu0 %v7465_v53  ;;  %4992 = vmatprep.subr.bf16.mxu1 %v9099_v1  ;;  %v7488_v18 = vsel %vm340_vm0, %v2396_v48, %v2397_v21 }
 0x2f3   : > { %v1542_v22 = vpop.f32.mrb[20].mxu0  ;;  %v1980_v12 = vmul.f32 %v7470_v25, %v7470_v25  ;;  %9129 = vst [vmem:[#allocation13_spill] sm:$0xff] %v7488_v18  ;;  %9132 = vst [vmem:[#allocation14_spill] sm:$0xff] %v7495_v13  ;;  %2851 = vmatprep.mubr.f32.mxu1 %v7488_v18  ;;  %5153 = vmatprep.subr.bf16.mxu0 %v7495_v13 }
 0x2f4   : > { %v5194_v26 = vadd.f32 %v7389_v9, %v1542_v22  ;;  %v1544_v41 = vpop.f32.mrb[21].mxu0  ;;  %vm1885_vm12 = vcmp.gt.f32.partialorder %v1763_v43, 0.0  ;;  %v1917_v63 = vmul.f32 0.2, %v1763_v43  ;;  %4363 = vmatmul.mubr.msk.f32.vlgmr.msra.gmra.mrb[32].mxu1 %vm7491_vm13, %v7467_v3  ;;  %v7517_v22 = vpack.c.bf16 %v2775_v19, %v2774_v46  ;;  %v2779_v46 = vld [vmem:[#allocation2 + $0x478] sm:$0xff] }
 0x2f5   : > { %2020 = vadd.xlane.f32.xlu0 %v1980_v12 }
 0x2f6   : > { %v1768_v38 = vadd.f32 %v5194_v26, %v7340_v28  ;;  %v7485_v58 = vsel %vm1885_vm12, %v1763_v43, %v1917_v63  ;;  %v7502_v28 = vsel %vm2229_vm11, %v7467_v3, 0.0  ;;  %5155 = vmatpush3.bf16.msra.mxu0 %v7495_v13  ;;  %9134 = vst [vmem:[#allocation16_spill] sm:$0xff] %v7517_v22 }
 0x2f7   : > { %v1547_v17 = vpop.f32.mrb[22].mxu0  ;;  %v1981_v36 = vmul.f32 %v7485_v58, %v7485_v58  ;;  %v2399_v52 = vrot.slane %v7502_v28, 1  ;;  %5157 = vmatprep.subr.bf16.mxu0 %v7517_v22 }
 0x2f8   : > { %v1918_v39 = vmul.f32 0.2, %v1768_v38  ;;  %v5195_v49 = vadd.f32 %v7389_v9, %v1547_v17  ;;  %v1549_v15 = vpop.f32.mrb[23].mxu0  ;;  %vm1886_vm14 = vcmp.gt.f32.partialorder %v1768_v38, 0.0 }
 0x2f9   : > { %2022 = vadd.xlane.f32.xlu1 %v1981_v36  ;;  %v7515_v31 = vsel %vm340_vm0, %v2397_v21, %v2399_v52  ;;  %v2777_v21 = vld [vmem:[#allocation2 + $0x468] sm:$0xff]  ;;  %v2778_v52 = vld [vmem:[#allocation2 + $0x470] sm:$0xff] }
 0x2fa   : > { %v1773_v44 = vadd.f32 %v5195_v49, %v7338_v62  ;;  %v7512_v43 = vsel %vm1886_vm14, %v1768_v38, %v1918_v39  ;;  %9133 = vst [vmem:[#allocation15_spill] sm:$0xff] %v7515_v31  ;;  %2856 = vmatprep.mubr.f32.mxu1 %v7515_v31  ;;  %v2776_v62 = vld [vmem:[#allocation2 + $0x460] sm:$0xff]  ;;  %5159 = vmatpush3.bf16.msra.mxu0 %v7517_v22 }
 0x2fb   : > { %v1552_v12 = vpop.f32.mrb[24].mxu0  ;;  %v1982_v26 = vmul.f32 %v7512_v43, %v7512_v43  ;;  %2857 = vmatmul.mubr.f32.gmra.mrb[34].mxu1 %v7467_v3  ;;  %v7526_v55 = vpack.c.bf16 %v2777_v21, %v2776_v62  ;;  %v7536_v19 = vpack.c.bf16 %v2779_v46, %v2778_v52 }
 0x2fc   : > { %v5196_v41 = vadd.f32 %v7389_v9, %v1552_v12  ;;  %v1554_v63 = vpop.f32.mrb[25].mxu0  ;;  %vm1887_vm15 = vcmp.gt.f32.partialorder %v1773_v44, 0.0  ;;  %v1919_v48 = vmul.f32 0.2, %v1773_v44 }
 0x2fd   : > { %2024 = vadd.xlane.f32.xlu0 %v1982_v26  ;;  %9135 = vst [vmem:[#allocation17_spill] sm:$0xff] %v7526_v55  ;;  %5161 = vmatprep.subr.bf16.mxu0 %v7526_v55  ;;  %9136 = vst [vmem:[#allocation18_spill] sm:$0xff] %v7536_v19 }
 0x2fe   : > { %v1778_v35 = vadd.f32 %v5196_v41, %v7344_v16  ;;  %v7529_v38 = vsel %vm1887_vm15, %v1773_v44, %v1919_v48  ;;  %5163 = vmatpush3.bf16.msra.mxu0 %v7526_v55 }
 0x2ff   : > { %v1557_v17 = vpop.f32.mrb[26].mxu0  ;;  %v1983_v36 = vmul.f32 %v7529_v38, %v7529_v38  ;;  %5165 = vmatprep.subr.bf16.mxu0 %v7536_v19 }
 0x300   : > { %v1920_v39 = vmul.f32 0.2, %v1778_v35  ;;  %v5197_v49 = vadd.f32 %v7389_v9, %v1557_v17  ;;  %v1559_v15 = vpop.f32.mrb[27].mxu0  ;;  %vm1888_vm2 = vcmp.gt.f32.partialorder %v1778_v35, 0.0 }
 0x301   : > { %2026 = vadd.xlane.f32.xlu1 %v1983_v36  ;;  %v2669_v15 = vld [vmem:[#allocation2 + $0x108] sm:$0xff] }
 0x302   : > { %v1783_v16 = vadd.f32 %v5197_v49, %v7342_v29  ;;  %v7539_v44 = vsel %vm1888_vm2, %v1778_v35, %v1920_v39  ;;  %5167 = vmatpush3.bf16.msra.mxu0 %v7536_v19  ;;  %v2668_v49 = vld [vmem:[#allocation2 + $0x100] sm:$0xff] }
 0x303   : > { %v1562_v12 = vpop.f32.mrb[28].mxu0  ;;  %v1984_v26 = vmul.f32 %v7539_v44, %v7539_v44  ;;  %v4993_v52 = vpack.c.bf16 %v2669_v15, %v2668_v49  ;;  %v2671_v49 = vld [vmem:[#allocation2 + $0x118] sm:$0xff] }
 0x304   : > { %v5198_v41 = vadd.f32 %v7389_v9, %v1562_v12  ;;  %v1564_v63 = vpop.f32.mrb[29].mxu0  ;;  %vm1889_vm3 = vcmp.gt.f32.partialorder %v1783_v16, 0.0  ;;  %v1921_v48 = vmul.f32 0.2, %v1783_v16 }
 0x305   : > { %2028 = vadd.xlane.f32.xlu0 %v1984_v26  ;;  %4994 = vmatpush1.bf16.msra.mxu1 %v4993_v52 }
 0x306   : > { %v1788_v62 = vadd.f32 %v5198_v41, %v7348_v2  ;;  %v7547_v21 = vsel %vm1889_vm3, %v1783_v16, %v1921_v48  ;;  %4995 = vmatprep.subr.bf16.mxu1 %v9099_v1 }
 0x307   : > { %v1567_v29 = vpop.f32.mrb[30].mxu0  ;;  %v1985_v35 = vmul.f32 %v7547_v21, %v7547_v21 }
 0x308   : > { %v1922_v17 = vmul.f32 0.2, %v1788_v62  ;;  %v5199_v36 = vadd.f32 %v7389_v9, %v1567_v29  ;;  %v1569_v39 = vpop.f32.mrb[31].mxu0  ;;  %vm1890_vm4 = vcmp.gt.f32.partialorder %v1788_v62, 0.0 }
 0x309   : > { %2030 = vadd.xlane.f32.xlu1 %v1985_v35  ;;  %v2670_v39 = vld [vmem:[#allocation2 + $0x110] sm:$0xff] }
 0x30a   : > { %v1793_v46 = vadd.f32 %v5199_v36, %v7346_v30  ;;  %v7553_v12 = vsel %vm1890_vm4, %v1788_v62, %v1922_v17  ;;  %v4996_v15 = vpack.c.bf16 %v2671_v49, %v2670_v39  ;;  %v2673_v39 = vld [vmem:[#allocation2 + $0x128] sm:$0xff] }
 0x30b   : > { %v1572_v2 = vpop.f32.mrb[32].mxu0  ;;  %v1986_v16 = vmul.f32 %v7553_v12, %v7553_v12 }
 0x30c   : > { %v5200_v26 = vadd.f32 %v7389_v9, %v1572_v2  ;;  %v1574_v41 = vpop.f32.mrb[33].mxu0  ;;  %vm1891_vm5 = vcmp.gt.f32.partialorder %v1793_v46, 0.0  ;;  %v1923_v63 = vmul.f32 0.2, %v1793_v46  ;;  %4997 = vmatpush1.bf16.msra.mxu1 %v4996_v15 }
 0x30d   : > { %2032 = vadd.xlane.f32.xlu0 %v1986_v16  ;;  %4998 = vmatprep.subr.bf16.mxu1 %v9099_v1 }
 0x30e   : > { %v1798_v48 = vadd.f32 %v5200_v26, %v7352_v4  ;;  %v7560_v29 = vsel %vm1891_vm5, %v1793_v46, %v1923_v63 }
 0x30f   : > { %v1577_v30 = vpop.f32.mrb[34].mxu0  ;;  %v1987_v62 = vmul.f32 %v7560_v29, %v7560_v29 }
 0x310   : > { %v1924_v35 = vmul.f32 0.2, %v1798_v48  ;;  %v5201_v17 = vadd.f32 %v7389_v9, %v1577_v30  ;;  %v1579_v36 = vpop.f32.mrb[35].mxu0  ;;  %vm1892_vm6 = vcmp.gt.f32.partialorder %v1798_v48, 0.0 }
 0x311   : > { %2034 = vadd.xlane.f32.xlu1 %v1987_v62  ;;  %v2672_v36 = vld [vmem:[#allocation2 + $0x120] sm:$0xff] }
 0x312   : > { %v1803_v52 = vadd.f32 %v5201_v17, %v7350_v10  ;;  %v7566_v2 = vsel %vm1892_vm6, %v1798_v48, %v1924_v35  ;;  %v4999_v49 = vpack.c.bf16 %v2673_v39, %v2672_v36  ;;  %v2675_v36 = vld [vmem:[#allocation2 + $0x138] sm:$0xff] }
 0x313   : > { %v1582_v4 = vpop.f32.mrb[36].mxu0  ;;  %v1988_v46 = vmul.f32 %v7566_v2, %v7566_v2 }
 0x314   : > { %v5202_v16 = vadd.f32 %v7389_v9, %v1582_v4  ;;  %v1584_v26 = vpop.f32.mrb[37].mxu0  ;;  %vm1893_vm7 = vcmp.gt.f32.partialorder %v1803_v52, 0.0  ;;  %v1925_v41 = vmul.f32 0.2, %v1803_v52  ;;  %5000 = vmatpush1.bf16.msra.mxu1 %v4999_v49 }
 0x315   : > { %2036 = vadd.xlane.f32.xlu0 %v1988_v46  ;;  %5001 = vmatprep.subr.bf16.mxu1 %v9099_v1 }
 0x316   : > { %v1808_v63 = vadd.f32 %v5202_v16, %v7356_v32  ;;  %v7573_v30 = vsel %vm1893_vm7, %v1803_v52, %v1925_v41 }
 0x317   : > { %v1587_v10 = vpop.f32.mrb[38].mxu0  ;;  %v1989_v48 = vmul.f32 %v7573_v30, %v7573_v30 }
 0x318   : > { %v1926_v62 = vmul.f32 0.2, %v1808_v63  ;;  %v5203_v35 = vadd.f32 %v7389_v9, %v1587_v10  ;;  %v1589_v17 = vpop.f32.mrb[39].mxu0  ;;  %vm1894_vm8 = vcmp.gt.f32.partialorder %v1808_v63, 0.0 }
 0x319   : > { %2038 = vadd.xlane.f32.xlu1 %v1989_v48  ;;  %v2674_v17 = vld [vmem:[#allocation2 + $0x130] sm:$0xff] }
 0x31a   : > { %v1813_v15 = vadd.f32 %v5203_v35, %v7354_v11  ;;  %v7579_v4 = vsel %vm1894_vm8, %v1808_v63, %v1926_v62  ;;  %v5002_v39 = vpack.c.bf16 %v2675_v36, %v2674_v17  ;;  %v2677_v17 = vld [vmem:[#allocation2 + $0x148] sm:$0xff] }
 0x31b   : > { %v1592_v32 = vpop.f32.mrb[40].mxu0  ;;  %v1990_v52 = vmul.f32 %v7579_v4, %v7579_v4 }
 0x31c   : > { %v5204_v46 = vadd.f32 %v7389_v9, %v1592_v32  ;;  %v1594_v16 = vpop.f32.mrb[41].mxu0  ;;  %vm1895_vm9 = vcmp.gt.f32.partialorder %v1813_v15, 0.0  ;;  %v1927_v26 = vmul.f32 0.2, %v1813_v15  ;;  %5003 = vmatpush1.bf16.msra.mxu1 %v5002_v39 }
 0x31d   : > { %2040 = vadd.xlane.f32.xlu0 %v1990_v52  ;;  %5004 = vmatprep.subr.bf16.mxu1 %v9099_v1 }
 0x31e   : > { %v1818_v41 = vadd.f32 %v5204_v46, %v7360_v7  ;;  %v7586_v10 = vsel %vm1895_vm9, %v1813_v15, %v1927_v26 }
 0x31f   : > { %v1597_v11 = vpop.f32.mrb[42].mxu0  ;;  %v1991_v63 = vmul.f32 %v7586_v10, %v7586_v10 }
 0x320   : > { %v1928_v48 = vmul.f32 0.2, %v1818_v41  ;;  %v5205_v62 = vadd.f32 %v7389_v9, %v1597_v11  ;;  %v1599_v35 = vpop.f32.mrb[43].mxu0  ;;  %vm1896_vm10 = vcmp.gt.f32.partialorder %v1818_v41, 0.0 }
 0x321   : > { %2042 = vadd.xlane.f32.xlu1 %v1991_v63  ;;  %v2676_v35 = vld [vmem:[#allocation2 + $0x140] sm:$0xff] }
 0x322   : > { %v1823_v49 = vadd.f32 %v5205_v62, %v7358_v27  ;;  %v7592_v32 = vsel %vm1896_vm10, %v1818_v41, %v1928_v48  ;;  %v5005_v36 = vpack.c.bf16 %v2677_v17, %v2676_v35  ;;  %v2679_v35 = vld [vmem:[#allocation2 + $0x158] sm:$0xff] }
 0x323   : > { %v1602_v7 = vpop.f32.mrb[44].mxu0  ;;  %v1992_v15 = vmul.f32 %v7592_v32, %v7592_v32 }
 0x324   : > { %v5206_v52 = vadd.f32 %v7389_v9, %v1602_v7  ;;  %v1604_v46 = vpop.f32.mrb[45].mxu0  ;;  %vm1897_vm12 = vcmp.gt.f32.partialorder %v1823_v49, 0.0  ;;  %v1929_v16 = vmul.f32 0.2, %v1823_v49  ;;  %5006 = vmatpush1.bf16.msra.mxu1 %v5005_v36 }
 0x325   : > { %2044 = vadd.xlane.f32.xlu0 %v1992_v15  ;;  %5007 = vmatprep.subr.bf16.mxu1 %v9099_v1 }
 0x326   : > { %v1828_v26 = vadd.f32 %v5206_v52, %v7364_v57  ;;  %v7599_v11 = vsel %vm1897_vm12, %v1823_v49, %v1929_v16 }
 0x327   : > { %v1607_v27 = vpop.f32.mrb[46].mxu0  ;;  %v1993_v41 = vmul.f32 %v7599_v11, %v7599_v11 }
 0x328   : > { %v1930_v63 = vmul.f32 0.2, %v1828_v26  ;;  %v5207_v48 = vadd.f32 %v7389_v9, %v1607_v27  ;;  %v1609_v62 = vpop.f32.mrb[47].mxu0  ;;  %vm1898_vm14 = vcmp.gt.f32.partialorder %v1828_v26, 0.0 }
 0x329   : > { %2046 = vadd.xlane.f32.xlu1 %v1993_v41  ;;  %v2678_v62 = vld [vmem:[#allocation2 + $0x150] sm:$0xff] }
 0x32a   : > { %v1833_v39 = vadd.f32 %v5207_v48, %v7362_v37  ;;  %v7605_v7 = vsel %vm1898_vm14, %v1828_v26, %v1930_v63  ;;  %v5008_v17 = vpack.c.bf16 %v2679_v35, %v2678_v62  ;;  %v2681_v62 = vld [vmem:[#allocation2 + $0x168] sm:$0xff] }
 0x32b   : > { %v1612_v57 = vpop.f32.mrb[48].mxu0  ;;  %v1994_v49 = vmul.f32 %v7605_v7, %v7605_v7 }
 0x32c   : > { %v5208_v15 = vadd.f32 %v7389_v9, %v1612_v57  ;;  %v1614_v52 = vpop.f32.mrb[49].mxu0  ;;  %vm1899_vm15 = vcmp.gt.f32.partialorder %v1833_v39, 0.0  ;;  %v1931_v46 = vmul.f32 0.2, %v1833_v39  ;;  %5009 = vmatpush1.bf16.msra.mxu1 %v5008_v17 }
 0x32d   : > { %2048 = vadd.xlane.f32.xlu0 %v1994_v49  ;;  %5010 = vmatprep.subr.bf16.mxu1 %v9099_v1 }
 0x32e   : > { %v1838_v16 = vadd.f32 %v5208_v15, %v7368_v59  ;;  %v7612_v27 = vsel %vm1899_vm15, %v1833_v39, %v1931_v46 }
 0x32f   : > { %v1617_v37 = vpop.f32.mrb[50].mxu0  ;;  %v1995_v26 = vmul.f32 %v7612_v27, %v7612_v27 }
 0x330   : > { %v1932_v41 = vmul.f32 0.2, %v1838_v16  ;;  %v5209_v63 = vadd.f32 %v7389_v9, %v1617_v37  ;;  %v1619_v48 = vpop.f32.mrb[51].mxu0  ;;  %vm1900_vm2 = vcmp.gt.f32.partialorder %v1838_v16, 0.0 }
 0x331   : > { %2050 = vadd.xlane.f32.xlu1 %v1995_v26  ;;  %v2680_v48 = vld [vmem:[#allocation2 + $0x160] sm:$0xff] }
 0x332   : > { %v1843_v36 = vadd.f32 %v5209_v63, %v7366_v50  ;;  %v7618_v57 = vsel %vm1900_vm2, %v1838_v16, %v1932_v41  ;;  %v5011_v35 = vpack.c.bf16 %v2681_v62, %v2680_v48  ;;  %v2683_v48 = vld [vmem:[#allocation2 + $0x178] sm:$0xff] }
 0x333   : > { %v1622_v59 = vpop.f32.mrb[52].mxu0  ;;  %v1996_v39 = vmul.f32 %v7618_v57, %v7618_v57 }
 0x334   : > { %v5210_v49 = vadd.f32 %v7389_v9, %v1622_v59  ;;  %v1624_v15 = vpop.f32.mrb[53].mxu0  ;;  %vm1901_vm3 = vcmp.gt.f32.partialorder %v1843_v36, 0.0  ;;  %v1933_v52 = vmul.f32 0.2, %v1843_v36  ;;  %5012 = vmatpush1.bf16.msra.mxu1 %v5011_v35 }
 0x335   : > { %2052 = vadd.xlane.f32.xlu0 %v1996_v39  ;;  %5013 = vmatprep.subr.bf16.mxu1 %v9099_v1 }
 0x336   : > { %v1848_v46 = vadd.f32 %v5210_v49, %v7372_v54  ;;  %v7625_v37 = vsel %vm1901_vm3, %v1843_v36, %v1933_v52 }
 0x337   : > { %v1627_v50 = vpop.f32.mrb[54].mxu0  ;;  %v1997_v16 = vmul.f32 %v7625_v37, %v7625_v37 }
 0x338   : > { %v1934_v26 = vmul.f32 0.2, %v1848_v46  ;;  %v5211_v41 = vadd.f32 %v7389_v9, %v1627_v50  ;;  %v1629_v63 = vpop.f32.mrb[55].mxu0  ;;  %vm1902_vm4 = vcmp.gt.f32.partialorder %v1848_v46, 0.0 }
 0x339   : > { %2054 = vadd.xlane.f32.xlu1 %v1997_v16  ;;  %v2682_v63 = vld [vmem:[#allocation2 + $0x170] sm:$0xff] }
 0x33a   : > { %v1853_v17 = vadd.f32 %v5211_v41, %v7370_v23  ;;  %v7631_v59 = vsel %vm1902_vm4, %v1848_v46, %v1934_v26  ;;  %v5014_v62 = vpack.c.bf16 %v2683_v48, %v2682_v63  ;;  %v2685_v63 = vld [vmem:[#allocation2 + $0x188] sm:$0xff] }
 0x33b   : > { %v1632_v54 = vpop.f32.mrb[56].mxu0  ;;  %v1998_v36 = vmul.f32 %v7631_v59, %v7631_v59 }
 0x33c   : > { %v5212_v39 = vadd.f32 %v7389_v9, %v1632_v54  ;;  %v1634_v49 = vpop.f32.mrb[57].mxu0  ;;  %vm1903_vm5 = vcmp.gt.f32.partialorder %v1853_v17, 0.0  ;;  %v1935_v15 = vmul.f32 0.2, %v1853_v17  ;;  %5015 = vmatpush1.bf16.msra.mxu1 %v5014_v62 }
 0x33d   : > { %2056 = vadd.xlane.f32.xlu0 %v1998_v36  ;;  %5016 = vmatprep.subr.bf16.mxu1 %v9099_v1 }
 0x33e   : > { %v1858_v52 = vadd.f32 %v5212_v39, %v7377_v33  ;;  %v7638_v50 = vsel %vm1903_vm5, %v1853_v17, %v1935_v15 }
 0x33f   : > { %v1637_v23 = vpop.f32.mrb[58].mxu0  ;;  %v1999_v46 = vmul.f32 %v7638_v50, %v7638_v50 }
 0x340   : > { %v1936_v16 = vmul.f32 0.2, %v1858_v52  ;;  %v5213_v26 = vadd.f32 %v7389_v9, %v1637_v23  ;;  %v1639_v41 = vpop.f32.mrb[59].mxu0  ;;  %vm1904_vm6 = vcmp.gt.f32.partialorder %v1858_v52, 0.0 }
 0x341   : > { %2058 = vadd.xlane.f32.xlu1 %v1999_v46  ;;  %v2684_v41 = vld [vmem:[#allocation2 + $0x180] sm:$0xff] }
 0x342   : > { %v1863_v35 = vadd.f32 %v5213_v26, %v7375_v24  ;;  %v7644_v54 = vsel %vm1904_vm6, %v1858_v52, %v1936_v16  ;;  %v5017_v48 = vpack.c.bf16 %v2685_v63, %v2684_v41 }
 0x343   : > { %v1642_v33 = vpop.f32.mrb[60].mxu0  ;;  %v2000_v17 = vmul.f32 %v7644_v54, %v7644_v54 }
 0x344   : > { %v5214_v36 = vadd.f32 %v7389_v9, %v1642_v33  ;;  %v1644_v39 = vpop.f32.mrb[61].mxu0  ;;  %vm1905_vm7 = vcmp.gt.f32.partialorder %v1863_v35, 0.0  ;;  %v1937_v49 = vmul.f32 0.2, %v1863_v35  ;;  %5018 = vmatpush1.bf16.msra.mxu1 %v5017_v48 }
 0x345   : > { %2060 = vadd.xlane.f32.xlu0 %v2000_v17  ;;  %5019 = vmatprep.subr.bf16.mxu1 %v9099_v1  ;;  %v2687_v39 = vld [vmem:[#allocation2 + $0x198] sm:$0xff] }
 0x346   : > { %v1868_v15 = vadd.f32 %v5214_v36, %v7383_v5  ;;  %v7651_v23 = vsel %vm1905_vm7, %v1863_v35, %v1937_v49  ;;  %v2686_v36 = vld [vmem:[#allocation2 + $0x190] sm:$0xff]  ;;  %v2688_v49 = vld [vmem:[#allocation2 + $0x1a0] sm:$0xff] }
 0x347   : > { %v1647_v24 = vpop.f32.mrb[62].mxu0  ;;  %v2001_v52 = vmul.f32 %v7651_v23, %v7651_v23 }
 0x348   : > { %v1938_v46 = vmul.f32 0.2, %v1868_v15  ;;  %v5215_v16 = vadd.f32 %v7389_v9, %v1647_v24  ;;  %v1649_v26 = vpop.f32.mrb[63].mxu0  ;;  %vm1906_vm8 = vcmp.gt.f32.partialorder %v1868_v15, 0.0 }
 0x349   : > { %2062 = vadd.xlane.f32.xlu1 %v2001_v52  ;;  %v2690_v52 = vld [vmem:[#allocation2 + $0x1b0] sm:$0xff] }
 0x34a   : > { %v1873_v62 = vadd.f32 %v5215_v16, %v7381_v60  ;;  %v7657_v33 = vsel %vm1906_vm8, %v1868_v15, %v1938_v46  ;;  %v5020_v60 = vpack.c.bf16 %v2687_v39, %v2686_v36  ;;  %v2689_v15 = vld [vmem:[#allocation2 + $0x1a8] sm:$0xff]  ;;  %v2691_v46 = vld [vmem:[#allocation2 + $0x1b8] sm:$0xff]  ;;  %v2694_v36 = vld [vmem:[#allocation2 + $0x1d0] sm:$0xff] }
 0x34b   : > { %9137 = vst [vmem:[#allocation19_spill] sm:$0xff] %v7657_v33  ;;  %v2002_v5 = vmul.f32 %v7657_v33, %v7657_v33  ;;  %v5023_v24 = vpack.c.bf16 %v2689_v15, %v2688_v49  ;;  %v5026_v16 = vpack.c.bf16 %v2691_v46, %v2690_v52  ;;  %v2695_v39 = vld [vmem:[#allocation2 + $0x1d8] sm:$0xff]  ;;  %v2697_v52 = vld [vmem:[#allocation2 + $0x1e8] sm:$0xff] }
 0x34c   : > { %vm1907_vm9 = vcmp.gt.f32.partialorder %v1873_v62, 0.0  ;;  %v1939_v35 = vmul.f32 0.2, %v1873_v62  ;;  %5021 = vmatpush1.bf16.msra.mxu1 %v5020_v60  ;;  %v5032_v49 = vpack.c.bf16 %v2695_v39, %v2694_v36 }
 0x34d   : > { %2064 = vadd.xlane.f32.xlu0 %v2002_v5  ;;  %5022 = vmatprep.subr.bf16.mxu1 %v9099_v1  ;;  %v2693_v5 = vld [vmem:[#allocation2 + $0x1c8] sm:$0xff] }
 0x34e   : > { %v7662_v9 = vsel %vm1907_vm9, %v1873_v62, %v1939_v35  ;;  %v2692_v62 = vld [vmem:[#allocation2 + $0x1c0] sm:$0xff] }
 0x34f   : > { %9138 = vst [vmem:[#allocation20_spill] sm:$0xff] %v7662_v9  ;;  %v2003_v17 = vmul.f32 %v7662_v9, %v7662_v9 }
 0x350   : > { %5024 = vmatpush1.bf16.msra.mxu1 %v5023_v24  ;;  %v2696_v24 = vld [vmem:[#allocation2 + $0x1e0] sm:$0xff] }
 0x351   : > { %2066 = vadd.xlane.f32.xlu1 %v2003_v17  ;;  %5025 = vmatprep.subr.bf16.mxu1 %v9099_v1  ;;  %v5029_v17 = vpack.c.bf16 %v2693_v5, %v2692_v62  ;;  %v2699_v62 = vld [vmem:[#allocation2 + $0x1f8] sm:$0xff] }
 0x354   : > { %5027 = vmatpush1.bf16.msra.mxu1 %v5026_v16 }
 0x355   : > { %5028 = vmatprep.subr.bf16.mxu1 %v9099_v1 }
 0x358   : > { %5030 = vmatpush1.bf16.msra.mxu1 %v5029_v17 }
 0x359   : > { %5031 = vmatprep.subr.bf16.mxu1 %v9099_v1 }
 0x35c   : > { %5033 = vmatpush1.bf16.msra.mxu1 %v5032_v49 }
 0x35d   : > { %5034 = vmatprep.subr.bf16.mxu1 %v9099_v1 }
 0x362   : > { %v2005_v26 = vpop.xlane.xlu0 %2004 }
 0x363   : > { %v2068_v41 = vmul.f32 0.125, %v2005_v26  ;;  %v5035_v26 = vpack.c.bf16 %v2697_v52, %v2696_v24 }
 0x365   : > { %v2100_v63 = vadd.f32 1e-08, %v2068_v41  ;;  %5036 = vmatpush1.bf16.msra.mxu1 %v5035_v26 }
 0x366   : > { %v2007_v48 = vpop.xlane.xlu0 %2006  ;;  %5037 = vmatprep.subr.bf16.mxu1 %v9099_v1 }
 0x367   : > { %5689 = vrsqrt.f32 %v2100_v63  ;;  %v2069_v35 = vmul.f32 0.125, %v2007_v48  ;;  %v2698_v48 = vld [vmem:[#allocation2 + $0x1f0] sm:$0xff] }
 0x368   : > { %v5038_v17 = vpack.c.bf16 %v2699_v62, %v2698_v48 }
 0x369   : > { %v2101_v60 = vadd.f32 1e-08, %v2069_v35 }
 0x36a   : > { %v2009_v15 = vpop.xlane.xlu1 %2008  ;;  %5039 = vmatpush1.bf16.msra.mxu1 %v5038_v17 }
 0x36b   : > { %5691 = vrsqrt.f32 %v2101_v60  ;;  %v2070_v46 = vmul.f32 0.125, %v2009_v15  ;;  %5040 = vmatprep.subr.bf16.mxu1 %v9099_v1 }
 0x36d   : > { %v2102_v16 = vadd.f32 1e-08, %v2070_v46 }
 0x36e   : > { %v2011_v41 = vpop.xlane.xlu1 %2010 }
 0x36f   : > { %5693 = vrsqrt.f32 %v2102_v16  ;;  %v2071_v63 = vmul.f32 0.125, %v2011_v41 }
 0x371   : > { %v5690_v5 = vpop.eup %5689  ;;  %v2103_v35 = vadd.f32 1e-08, %v2071_v63 }
 0x372   : > { %v2164_v36 = vmul.f32 %v5690_v5, %v7398_v20  ;;  %v2013_v39 = vpop.xlane.xlu0 %2012 }
 0x373   : > { %5695 = vrsqrt.f32 %v2103_v35  ;;  %v2072_v60 = vmul.f32 0.125, %v2013_v39 }
 0x374   : > { %v7673_v49 = vrot.slane %v2164_v36, 7 }
 0x375   : > { %v5692_v15 = vpop.eup %5691  ;;  %v2104_v24 = vadd.f32 1e-08, %v2072_v60 }
 0x376   : > { %v2165_v52 = vmul.f32 %v5692_v15, %v7405_v61  ;;  %v2015_v46 = vpop.xlane.xlu1 %2014  ;;  %v7679_v20 = vsel %vm2229_vm11, 0.0, %v7673_v49 }
 0x377   : > { %5697 = vrsqrt.f32 %v2104_v24  ;;  %v2073_v16 = vmul.f32 0.125, %v2015_v46  ;;  %v2401_v61 = vrot.slane %v7679_v20, 1 }
 0x378   : > { %v2233_v26 = vrot.slane %v2165_v52, 7 }
 0x379   : > { %v5694_v41 = vpop.eup %5693  ;;  %v2105_v63 = vadd.f32 1e-08, %v2073_v16 }
 0x37a   : > { %v2166_v48 = vmul.f32 %v5694_v41, %v7412_v56  ;;  %v2017_v62 = vpop.xlane.xlu0 %2016  ;;  %v7684_v5 = vsel %vm2229_vm11, %v7673_v49, %v2233_v26  ;;  %v7688_v35 = vsel %vm2229_vm11, %v2233_v26, 0.0 }
 0x37b   : > { %5699 = vrsqrt.f32 %v2105_v63  ;;  %v2074_v17 = vmul.f32 0.125, %v2017_v62  ;;  %v2402_v36 = vrot.slane %v7684_v5, 1  ;;  %v2404_v39 = vrot.slane %v7688_v35, 1 }
 0x37c   : > { %v7692_v60 = vrot.slane %v2166_v48, 7 }
 0x37d   : > { %v5696_v15 = vpop.eup %5695  ;;  %v2106_v56 = vadd.f32 1e-08, %v2074_v17  ;;  %v7695_v24 = vsel %vm340_vm0, %v2401_v61, %v2402_v36  ;;  %v7705_v41 = vsel %vm340_vm0, %v2402_v36, %v2404_v39 }
 0x37e   : > { %9139 = vst [vmem:[#allocation21_spill] sm:$0xff] %v7695_v24  ;;  %v2167_v52 = vmul.f32 %v5696_v15, %v7419_v51  ;;  %v2019_v46 = vpop.xlane.xlu1 %2018  ;;  %2861 = vmatprep.mubr.f32.mxu1 %v7695_v24  ;;  %v2332_v16 = vsel %vm2229_vm11, 0.0, %v7692_v60  ;;  %9140 = vst [vmem:[#allocation22_spill] sm:$0xff] %v7705_v41 }
 0x37f   : > { %5701 = vrsqrt.f32 %v2106_v56  ;;  %v2075_v26 = vmul.f32 0.125, %v2019_v46  ;;  %4365 = vmatmul.mubr.msk.f32.gmra.mrb[36].mxu1 %vm7491_vm13, %v7673_v49  ;;  %v2518_v62 = vrot.slane %v2332_v16, 2  ;;  %v2406_v56 = vrot.slane %v2332_v16, 1 }
 0x380   : > { %v2236_v63 = vrot.slane %v2167_v52, 7  ;;  %2866 = vmatprep.mubr.f32.mxu1 %v7705_v41 }
 0x381   : > { %v5698_v48 = vpop.eup %5697  ;;  %v2107_v51 = vadd.f32 1e-08, %v2075_v26 }
 0x382   : > { %v2168_v61 = vmul.f32 %v5698_v48, %v7426_v47  ;;  %v2021_v17 = vpop.xlane.xlu0 %2020  ;;  %v7711_v15 = vsel %vm2229_vm11, %v7692_v60, %v2236_v63  ;;  %v2349_v46 = vsel %vm2229_vm11, %v2236_v63, 0.0 }
 0x383   : > { %5703 = vrsqrt.f32 %v2107_v51  ;;  %v2076_v31 = vmul.f32 0.125, %v2021_v17  ;;  %2867 = vmatmul.mubr.f32.gmra.mrb[38].mxu1 %v7684_v5  ;;  %v2519_v36 = vrot.slane %v7711_v15, 2  ;;  %v2407_v39 = vrot.slane %v7711_v15, 1 }
 0x384   : > { %v7717_v52 = vrot.slane %v2168_v61, 7  ;;  %v2521_v26 = vrot.slane %v2349_v46, 2  ;;  %v2409_v47 = vrot.slane %v2349_v46, 1 }
 0x385   : > { %v5700_v48 = vpop.eup %5699  ;;  %v2108_v18 = vadd.f32 1e-08, %v2076_v31  ;;  %v7720_v19 = vsel %vm453_vm1, %v2518_v62, %v2519_v36  ;;  %v7723_v16 = vsel %vm340_vm0, %v2406_v56, %v2407_v39 }
 0x386   : > { %9141 = vst [vmem:[#allocation23_spill] sm:$0xff] %v7723_v16  ;;  %v2169_v63 = vmul.f32 %v5700_v48, %v7435_v8  ;;  %4672 = vmatprep.mubr.f32.mxu0 %v7720_v19  ;;  %v2023_v51 = vpop.xlane.xlu1 %2022  ;;  %2871 = vmatprep.mubr.f32.mxu1 %v7723_v16  ;;  %v7729_v61 = vsel %vm453_vm1, %v2519_v36, %v2521_v26  ;;  %v2333_v17 = vsel %vm2229_vm11, 0.0, %v7717_v52 }
 0x387   : > { %5705 = vrsqrt.f32 %v2108_v18  ;;  %v2077_v31 = vmul.f32 0.125, %v2023_v51  ;;  %4367 = vmatmul.mubr.msk.f32.gmra.mrb[40].mxu1 %vm7491_vm13, %v7692_v60  ;;  %4673 = vmatmul.mubr.f32.vlgmr.msra.gmra.mrb[64].mxu0 %v7729_v61  ;;  %v7738_v8 = vsel %vm340_vm0, %v2407_v39, %v2409_v47  ;;  %v2411_v36 = vrot.slane %v2333_v17, 1 }
 0x388   : > { %9142 = vst [vmem:[#allocation24_spill] sm:$0xff] %v7738_v8  ;;  %v2239_v62 = vrot.slane %v2169_v63, 7  ;;  %2876 = vmatprep.mubr.f32.mxu1 %v7738_v8  ;;  %v2523_v51 = vrot.slane %v2333_v17, 2 }
 0x389   : > { %v5702_v56 = vpop.eup %5701  ;;  %v2109_v46 = vadd.f32 1e-08, %v2077_v31 }
 0x38a   : > { %v2170_v26 = vmul.f32 %v5702_v56, %v7446_v40  ;;  %v2025_v48 = vpop.xlane.xlu0 %2024  ;;  %v7744_v18 = vsel %vm2229_vm11, %v7717_v52, %v2239_v62  ;;  %v2350_v55 = vsel %vm2229_vm11, %v2239_v62, 0.0 }
 0x38b   : > { %5707 = vrsqrt.f32 %v2109_v46  ;;  %v2078_v22 = vmul.f32 0.125, %v2025_v48  ;;  %2877 = vmatmul.mubr.f32.gmra.mrb[42].mxu1 %v7711_v15  ;;  %v2412_v39 = vrot.slane %v7744_v18, 1  ;;  %v2524_v47 = vrot.slane %v7744_v18, 2 }
 0x38c   : > { %v7750_v63 = vrot.slane %v2170_v26, 7  ;;  %v2526_v31 = vrot.slane %v2350_v55, 2  ;;  %v2414_v40 = vrot.slane %v2350_v55, 1 }
 0x38d   : > { %v5704_v56 = vpop.eup %5703  ;;  %v2110_v13 = vadd.f32 1e-08, %v2078_v22  ;;  %v7753_v53 = vsel %vm340_vm0, %v2411_v36, %v2412_v39  ;;  %v7756_v17 = vsel %vm453_vm1, %v2523_v51, %v2524_v47 }
 0x38e   : > { %9143 = vst [vmem:[#allocation25_spill] sm:$0xff] %v7753_v53  ;;  %v2171_v62 = vmul.f32 %v5704_v56, %v7457_v6  ;;  %v2027_v46 = vpop.xlane.xlu1 %2026  ;;  %2881 = vmatprep.mubr.f32.mxu1 %v7753_v53  ;;  %4675 = vmatprep.mubr.f32.mxu0 %v7756_v17  ;;  %v7762_v26 = vsel %vm453_vm1, %v2524_v47, %v2526_v31  ;;  %v2334_v55 = vsel %vm2229_vm11, 0.0, %v7750_v63 }
 0x38f   : > { %5709 = vrsqrt.f32 %v2110_v13  ;;  %v2079_v22 = vmul.f32 0.125, %v2027_v46  ;;  %4369 = vmatmul.mubr.msk.f32.gmra.mrb[44].mxu1 %vm7491_vm13, %v7717_v52  ;;  %4676 = vmatmul.mubr.f32.gmra.mrb[66].mxu0 %v7762_v26  ;;  %v7771_v6 = vsel %vm340_vm0, %v2412_v39, %v2414_v40  ;;  %v2416_v47 = vrot.slane %v2334_v55, 1 }
 0x390   : > { %9144 = vst [vmem:[#allocation26_spill] sm:$0xff] %v7771_v6  ;;  %v2242_v36 = vrot.slane %v2171_v62, 7  ;;  %2886 = vmatprep.mubr.f32.mxu1 %v7771_v6  ;;  %v2528_v46 = vrot.slane %v2334_v55, 2 }
 0x391   : > { %v5706_v48 = vpop.eup %5705  ;;  %v2111_v51 = vadd.f32 1e-08, %v2079_v22 }
 0x392   : > { %v2172_v31 = vmul.f32 %v5706_v48, %v7470_v25  ;;  %v2029_v56 = vpop.xlane.xlu0 %2028  ;;  %v7777_v13 = vsel %vm2229_vm11, %v7750_v63, %v2242_v36  ;;  %v2351_v14 = vsel %vm2229_vm11, %v2242_v36, 0.0 }
 0x393   : > { %5711 = vrsqrt.f32 %v2111_v51  ;;  %v2080_v45 = vmul.f32 0.125, %v2029_v56  ;;  %2887 = vmatmul.mubr.f32.gmra.mrb[46].mxu1 %v7744_v18  ;;  %v2417_v39 = vrot.slane %v7777_v13, 1  ;;  %v2529_v40 = vrot.slane %v7777_v13, 2 }
 0x394   : > { %v7783_v62 = vrot.slane %v2172_v31, 7  ;;  %v2531_v22 = vrot.slane %v2351_v14, 2  ;;  %v2419_v25 = vrot.slane %v2351_v14, 1 }
 0x395   : > { %v5708_v48 = vpop.eup %5707  ;;  %v2112_v42 = vadd.f32 1e-08, %v2080_v45  ;;  %v7786_v6 = vsel %vm340_vm0, %v2416_v47, %v2417_v39  ;;  %v7789_v55 = vsel %vm453_vm1, %v2528_v46, %v2529_v40 }
 0x396   : > { %9145 = vst [vmem:[#allocation27_spill] sm:$0xff] %v7786_v6  ;;  %v2173_v36 = vmul.f32 %v5708_v48, %v7485_v58  ;;  %v2031_v51 = vpop.xlane.xlu1 %2030  ;;  %2891 = vmatprep.mubr.f32.mxu1 %v7786_v6  ;;  %4678 = vmatprep.mubr.f32.mxu0 %v7789_v55  ;;  %v7795_v31 = vsel %vm453_vm1, %v2529_v40, %v2531_v22  ;;  %v2335_v14 = vsel %vm2229_vm11, 0.0, %v7783_v62 }
 0x397   : > { %5713 = vrsqrt.f32 %v2112_v42  ;;  %v2081_v45 = vmul.f32 0.125, %v2031_v51  ;;  %4371 = vmatmul.mubr.msk.f32.gmra.mrb[48].mxu1 %vm7491_vm13, %v7750_v63  ;;  %4679 = vmatmul.mubr.f32.gmra.mrb[68].mxu0 %v7795_v31  ;;  %v7804_v58 = vsel %vm340_vm0, %v2417_v39, %v2419_v25  ;;  %v2421_v40 = vrot.slane %v2335_v14, 1 }
 0x398   : > { %9146 = vst [vmem:[#allocation28_spill] sm:$0xff] %v7804_v58  ;;  %v2245_v47 = vrot.slane %v2173_v36, 7  ;;  %2896 = vmatprep.mubr.f32.mxu1 %v7804_v58  ;;  %v2533_v51 = vrot.slane %v2335_v14, 2 }
 0x399   : > { %v5710_v56 = vpop.eup %5709  ;;  %v2113_v46 = vadd.f32 1e-08, %v2081_v45 }
 0x39a   : > { %v2174_v22 = vmul.f32 %v5710_v56, %v7512_v43  ;;  %v2033_v48 = vpop.xlane.xlu0 %2032  ;;  %v7810_v42 = vsel %vm2229_vm11, %v7783_v62, %v2245_v47  ;;  %v2352_v6 = vsel %vm2229_vm11, %v2245_v47, 0.0 }
 0x39b   : > { %5715 = vrsqrt.f32 %v2113_v46  ;;  %v2082_v53 = vmul.f32 0.125, %v2033_v48  ;;  %2897 = vmatmul.mubr.f32.gmra.mrb[50].mxu1 %v7777_v13  ;;  %v2422_v39 = vrot.slane %v7810_v42, 1  ;;  %v2534_v25 = vrot.slane %v7810_v42, 2 }
 0x39c   : > { %v7816_v36 = vrot.slane %v2174_v22, 7  ;;  %v2536_v45 = vrot.slane %v2352_v6, 2  ;;  %v2424_v43 = vrot.slane %v2352_v6, 1 }
 0x39d   : > { %v5712_v56 = vpop.eup %5711  ;;  %v2114_v58 = vadd.f32 1e-08, %v2082_v53  ;;  %v7819_v8 = vsel %vm340_vm0, %v2421_v40, %v2422_v39  ;;  %v7822_v14 = vsel %vm453_vm1, %v2533_v51, %v2534_v25 }
 0x39e   : > { %9147 = vst [vmem:[#allocation29_spill] sm:$0xff] %v7819_v8  ;;  %v2175_v47 = vmul.f32 %v5712_v56, %v7529_v38  ;;  %v2035_v46 = vpop.xlane.xlu1 %2034  ;;  %2901 = vmatprep.mubr.f32.mxu1 %v7819_v8  ;;  %4681 = vmatprep.mubr.f32.mxu0 %v7822_v14  ;;  %v7828_v22 = vsel %vm453_vm1, %v2534_v25, %v2536_v45  ;;  %v2336_v6 = vsel %vm2229_vm11, 0.0, %v7816_v36 }
 0x39f   : > { %5717 = vrsqrt.f32 %v2114_v58  ;;  %v2083_v53 = vmul.f32 0.125, %v2035_v46  ;;  %4373 = vmatmul.mubr.msk.f32.gmra.mrb[52].mxu1 %vm7491_vm13, %v7783_v62  ;;  %4682 = vmatmul.mubr.f32.gmra.mrb[70].mxu0 %v7828_v22  ;;  %v7837_v38 = vsel %vm340_vm0, %v2422_v39, %v2424_v43  ;;  %v2426_v25 = vrot.slane %v2336_v6, 1 }
 0x3a0   : > { %9148 = vst [vmem:[#allocation30_spill] sm:$0xff] %v7837_v38  ;;  %v2248_v40 = vrot.slane %v2175_v47, 7  ;;  %2906 = vmatprep.mubr.f32.mxu1 %v7837_v38  ;;  %v2538_v46 = vrot.slane %v2336_v6, 2 }
 0x3a1   : > { %v5714_v48 = vpop.eup %5713  ;;  %v2115_v51 = vadd.f32 1e-08, %v2083_v53 }
 0x3a2   : > { %v2176_v45 = vmul.f32 %v5714_v48, %v7539_v44  ;;  %v2037_v56 = vpop.xlane.xlu0 %2036  ;;  %v7843_v58 = vsel %vm2229_vm11, %v7816_v36, %v2248_v40  ;;  %v2353_v8 = vsel %vm2229_vm11, %v2248_v40, 0.0 }
 0x3a3   : > { %5719 = vrsqrt.f32 %v2115_v51  ;;  %v2084_v16 = vmul.f32 0.125, %v2037_v56  ;;  %2907 = vmatmul.mubr.f32.gmra.mrb[54].mxu1 %v7810_v42  ;;  %v2427_v39 = vrot.slane %v7843_v58, 1  ;;  %v2539_v43 = vrot.slane %v7843_v58, 2 }
 0x3a4   : > { %v7849_v47 = vrot.slane %v2176_v45, 7  ;;  %v2541_v53 = vrot.slane %v2353_v8, 2  ;;  %v2429_v44 = vrot.slane %v2353_v8, 1 }
 0x3a5   : > { %v5716_v48 = vpop.eup %5715  ;;  %v2116_v38 = vadd.f32 1e-08, %v2084_v16  ;;  %v7852_v41 = vsel %vm340_vm0, %v2426_v25, %v2427_v39  ;;  %v7855_v6 = vsel %vm453_vm1, %v2538_v46, %v2539_v43 }
 0x3a6   : > { %9149 = vst [vmem:[#allocation31_spill] sm:$0xff] %v7852_v41  ;;  %v2177_v40 = vmul.f32 %v5716_v48, %v7547_v21  ;;  %v2039_v51 = vpop.xlane.xlu1 %2038  ;;  %2911 = vmatprep.mubr.f32.mxu1 %v7852_v41  ;;  %4684 = vmatprep.mubr.f32.mxu0 %v7855_v6  ;;  %v7861_v45 = vsel %vm453_vm1, %v2539_v43, %v2541_v53  ;;  %v2337_v8 = vsel %vm2229_vm11, 0.0, %v7849_v47 }
 0x3a7   : > { %5721 = vrsqrt.f32 %v2116_v38  ;;  %v2085_v16 = vmul.f32 0.125, %v2039_v51  ;;  %4375 = vmatmul.mubr.msk.f32.gmra.mrb[56].mxu1 %vm7491_vm13, %v7816_v36  ;;  %4685 = vmatmul.mubr.f32.gmra.mrb[72].mxu0 %v7861_v45  ;;  %v7870_v21 = vsel %vm340_vm0, %v2427_v39, %v2429_v44  ;;  %v2431_v43 = vrot.slane %v2337_v8, 1 }
 0x3a8   : > { %9150 = vst [vmem:[#allocation32_spill] sm:$0xff] %v7870_v21  ;;  %v2251_v25 = vrot.slane %v2177_v40, 7  ;;  %2916 = vmatprep.mubr.f32.mxu1 %v7870_v21  ;;  %v2543_v51 = vrot.slane %v2337_v8, 2 }
 0x3a9   : > { %v5718_v56 = vpop.eup %5717  ;;  %v2117_v46 = vadd.f32 1e-08, %v2085_v16 }
 0x3aa   : > { %v2178_v53 = vmul.f32 %v5718_v56, %v7553_v12  ;;  %v2041_v48 = vpop.xlane.xlu0 %2040  ;;  %v7876_v38 = vsel %vm2229_vm11, %v7849_v47, %v2251_v25  ;;  %v2354_v41 = vsel %vm2229_vm11, %v2251_v25, 0.0 }
 0x3ab   : > { %5723 = vrsqrt.f32 %v2117_v46  ;;  %v2086_v24 = vmul.f32 0.125, %v2041_v48  ;;  %2917 = vmatmul.mubr.f32.gmra.mrb[58].mxu1 %v7843_v58  ;;  %v2432_v39 = vrot.slane %v7876_v38, 1  ;;  %v2544_v44 = vrot.slane %v7876_v38, 2 }
 0x3ac   : > { %v7882_v40 = vrot.slane %v2178_v53, 7  ;;  %v2546_v16 = vrot.slane %v2354_v41, 2  ;;  %v2434_v12 = vrot.slane %v2354_v41, 1 }
 0x3ad   : > { %v5720_v56 = vpop.eup %5719  ;;  %v2118_v21 = vadd.f32 1e-08, %v2086_v24  ;;  %v7885_v9 = vsel %vm340_vm0, %v2431_v43, %v2432_v39  ;;  %v7888_v8 = vsel %vm453_vm1, %v2543_v51, %v2544_v44 }
 0x3ae   : > { %9151 = vst [vmem:[#allocation33_spill] sm:$0xff] %v7885_v9  ;;  %v2179_v25 = vmul.f32 %v5720_v56, %v7560_v29  ;;  %v2043_v46 = vpop.xlane.xlu1 %2042  ;;  %2921 = vmatprep.mubr.f32.mxu1 %v7885_v9  ;;  %4687 = vmatprep.mubr.f32.mxu0 %v7888_v8  ;;  %v7894_v53 = vsel %vm453_vm1, %v2544_v44, %v2546_v16  ;;  %v2338_v41 = vsel %vm2229_vm11, 0.0, %v7882_v40 }
 0x3af   : > { %9152 = vst [vmem:[#allocation34_spill] sm:$0xff] %v7894_v53  ;;  %5725 = vrsqrt.f32 %v2118_v21  ;;  %v2087_v24 = vmul.f32 0.125, %v2043_v46  ;;  %4377 = vmatmul.mubr.msk.f32.gmra.mrb[60].mxu1 %vm7491_vm13, %v7849_v47  ;;  %4688 = vmatmul.mubr.f32.gmra.mrb[74].mxu0 %v7894_v53  ;;  %v7903_v29 = vsel %vm340_vm0, %v2432_v39, %v2434_v12  ;;  %v2436_v44 = vrot.slane %v2338_v41, 1 }
 0x3b0   : > { %9153 = vst [vmem:[#allocation35_spill] sm:$0xff] %v7903_v29  ;;  %v2254_v43 = vrot.slane %v2179_v25, 7  ;;  %2926 = vmatprep.mubr.f32.mxu1 %v7903_v29  ;;  %v2548_v46 = vrot.slane %v2338_v41, 2 }
 0x3b1   : > { %v5722_v48 = vpop.eup %5721  ;;  %v2119_v51 = vadd.f32 1e-08, %v2087_v24 }
 0x3b2   : > { %v2180_v16 = vmul.f32 %v5722_v48, %v7566_v2  ;;  %v2045_v56 = vpop.xlane.xlu0 %2044  ;;  %v7909_v21 = vsel %vm2229_vm11, %v7882_v40, %v2254_v43  ;;  %v2355_v9 = vsel %vm2229_vm11, %v2254_v43, 0.0 }
 0x3b3   : > { %5727 = vrsqrt.f32 %v2119_v51  ;;  %v2088_v33 = vmul.f32 0.125, %v2045_v56  ;;  %2927 = vmatmul.mubr.f32.gmra.mrb[62].mxu1 %v7876_v38  ;;  %v2437_v39 = vrot.slane %v7909_v21, 1  ;;  %v2549_v12 = vrot.slane %v7909_v21, 2 }
 0x3b4   : > { %v7915_v25 = vrot.slane %v2180_v16, 7  ;;  %v2551_v24 = vrot.slane %v2355_v9, 2  ;;  %v2439_v2 = vrot.slane %v2355_v9, 1 }
 0x3b5   : > { %v5724_v48 = vpop.eup %5723  ;;  %v2120_v29 = vadd.f32 1e-08, %v2088_v33  ;;  %v7918_v53 = vsel %vm340_vm0, %v2436_v44, %v2437_v39  ;;  %v7921_v41 = vsel %vm453_vm1, %v2548_v46, %v2549_v12 }
 0x3b6   : > { %9154 = vst [vmem:[#allocation36_spill] sm:$0xff] %v7918_v53  ;;  %9155 = vst [vmem:[#allocation37_spill] sm:$0xff] %v7921_v41  ;;  %v2181_v43 = vmul.f32 %v5724_v48, %v7573_v30  ;;  %v2047_v51 = vpop.xlane.xlu1 %2046  ;;  %2931 = vmatprep.mubr.f32.mxu1 %v7918_v53  ;;  %4690 = vmatprep.mubr.f32.mxu0 %v7921_v41  ;;  %v7927_v16 = vsel %vm453_vm1, %v2549_v12, %v2551_v24  ;;  %v2339_v9 = vsel %vm2229_vm11, 0.0, %v7915_v25 }
 0x3b7   : > { %9156 = vst [vmem:[#allocation38_spill] sm:$0xff] %v7927_v16  ;;  %5729 = vrsqrt.f32 %v2120_v29  ;;  %v2089_v33 = vmul.f32 0.125, %v2047_v51  ;;  %4379 = vmatmul.mubr.msk.f32.gmra.mrb[64].mxu1 %vm7491_vm13, %v7882_v40  ;;  %4691 = vmatmul.mubr.f32.gmra.mrb[76].mxu0 %v7927_v16  ;;  %v7936_v30 = vsel %vm340_vm0, %v2437_v39, %v2439_v2  ;;  %v2441_v12 = vrot.slane %v2339_v9, 1 }
 0x3b8   : > { %9157 = vst [vmem:[#allocation39_spill] sm:$0xff] %v7936_v30  ;;  %v2257_v44 = vrot.slane %v2181_v43, 7  ;;  %2936 = vmatprep.mubr.f32.mxu1 %v7936_v30  ;;  %v2553_v51 = vrot.slane %v2339_v9, 2 }
 0x3b9   : > { %v5726_v56 = vpop.eup %5725  ;;  %v2121_v46 = vadd.f32 1e-08, %v2089_v33 }
 0x3ba   : > { %v2182_v24 = vmul.f32 %v5726_v56, %v7579_v4  ;;  %v2049_v48 = vpop.xlane.xlu0 %2048  ;;  %v7942_v29 = vsel %vm2229_vm11, %v7915_v25, %v2257_v44  ;;  %v2356_v53 = vsel %vm2229_vm11, %v2257_v44, 0.0 }
 0x3bb   : > { %5731 = vrsqrt.f32 %v2121_v46  ;;  %v2090_v16 = vmul.f32 0.125, %v2049_v48  ;;  %2937 = vmatmul.mubr.f32.gmra.mrb[66].mxu1 %v7909_v21  ;;  %v2442_v39 = vrot.slane %v7942_v29, 1  ;;  %v2554_v2 = vrot.slane %v7942_v29, 2 }
 0x3bc   : > { %v7948_v43 = vrot.slane %v2182_v24, 7  ;;  %v2556_v33 = vrot.slane %v2356_v53, 2  ;;  %v2444_v4 = vrot.slane %v2356_v53, 1 }
 0x3bd   : > { %v5728_v56 = vpop.eup %5727  ;;  %v2122_v30 = vadd.f32 1e-08, %v2090_v16  ;;  %v7951_v41 = vsel %vm340_vm0, %v2441_v12, %v2442_v39  ;;  %v7954_v9 = vsel %vm453_vm1, %v2553_v51, %v2554_v2 }
 0x3be   : > { %9158 = vst [vmem:[#allocation40_spill] sm:$0xff] %v7951_v41  ;;  %9159 = vst [vmem:[#allocation41_spill] sm:$0xff] %v7954_v9  ;;  %v2183_v44 = vmul.f32 %v5728_v56, %v7586_v10  ;;  %v2051_v46 = vpop.xlane.xlu1 %2050  ;;  %2941 = vmatprep.mubr.f32.mxu1 %v7951_v41  ;;  %4693 = vmatprep.mubr.f32.mxu0 %v7954_v9  ;;  %v7960_v24 = vsel %vm453_vm1, %v2554_v2, %v2556_v33  ;;  %v2340_v53 = vsel %vm2229_vm11, 0.0, %v7948_v43 }
 0x3bf   : > { %9160 = vst [vmem:[#allocation42_spill] sm:$0xff] %v7960_v24  ;;  %5733 = vrsqrt.f32 %v2122_v30  ;;  %v2091_v16 = vmul.f32 0.125, %v2051_v46  ;;  %4381 = vmatmul.mubr.msk.f32.gmra.mrb[68].mxu1 %vm7491_vm13, %v7915_v25  ;;  %4694 = vmatmul.mubr.f32.gmra.mrb[78].mxu0 %v7960_v24  ;;  %v7969_v10 = vsel %vm340_vm0, %v2442_v39, %v2444_v4  ;;  %v2446_v2 = vrot.slane %v2340_v53, 1 }
 0x3c0   : > { %9161 = vst [vmem:[#allocation43_spill] sm:$0xff] %v7969_v10  ;;  %v2260_v12 = vrot.slane %v2183_v44, 7  ;;  %2946 = vmatprep.mubr.f32.mxu1 %v7969_v10  ;;  %v2558_v46 = vrot.slane %v2340_v53, 2 }
 0x3c1   : > { %v5730_v48 = vpop.eup %5729  ;;  %v2123_v51 = vadd.f32 1e-08, %v2091_v16 }
 0x3c2   : > { %v2184_v33 = vmul.f32 %v5730_v48, %v7592_v32  ;;  %v2053_v56 = vpop.xlane.xlu0 %2052  ;;  %v7975_v30 = vsel %vm2229_vm11, %v7948_v43, %v2260_v12  ;;  %v2357_v41 = vsel %vm2229_vm11, %v2260_v12, 0.0 }
 0x3c3   : > { %9162 = vst [vmem:[#allocation44_spill] sm:$0xff] %v7975_v30  ;;  %5735 = vrsqrt.f32 %v2123_v51  ;;  %v2092_v24 = vmul.f32 0.125, %v2053_v56  ;;  %2947 = vmatmul.mubr.f32.gmra.mrb[70].mxu1 %v7942_v29  ;;  %v2447_v39 = vrot.slane %v7975_v30, 1  ;;  %v2559_v4 = vrot.slane %v7975_v30, 2 }
 0x3c4   : > { %v7981_v44 = vrot.slane %v2184_v33, 7  ;;  %v2561_v16 = vrot.slane %v2357_v41, 2  ;;  %v2449_v32 = vrot.slane %v2357_v41, 1 }
 0x3c5   : > { %v5732_v48 = vpop.eup %5731  ;;  %v2124_v10 = vadd.f32 1e-08, %v2092_v24  ;;  %v7984_v9 = vsel %vm340_vm0, %v2446_v2, %v2447_v39  ;;  %v7987_v53 = vsel %vm453_vm1, %v2558_v46, %v2559_v4 }
 0x3c6   : > { %9163 = vst [vmem:[#allocation45_spill] sm:$0xff] %v7981_v44  ;;  %9164 = vst [vmem:[#allocation46_spill] sm:$0xff] %v7984_v9  ;;  %v2185_v12 = vmul.f32 %v5732_v48, %v7599_v11  ;;  %v2055_v51 = vpop.xlane.xlu1 %2054  ;;  %2951 = vmatprep.mubr.f32.mxu1 %v7984_v9  ;;  %4696 = vmatprep.mubr.f32.mxu0 %v7987_v53  ;;  %v7993_v33 = vsel %vm453_vm1, %v2559_v4, %v2561_v16  ;;  %v2341_v41 = vsel %vm2229_vm11, 0.0, %v7981_v44 }
 0x3c7   : > { %9165 = vst [vmem:[#allocation47_spill] sm:$0xff] %v7987_v53  ;;  %9166 = vst [vmem:[#allocation48_spill] sm:$0xff] %v7993_v33  ;;  %5737 = vrsqrt.f32 %v2124_v10  ;;  %v2093_v24 = vmul.f32 0.125, %v2055_v51  ;;  %4383 = vmatmul.mubr.msk.f32.gmra.mrb[72].mxu1 %vm7491_vm13, %v7948_v43  ;;  %4697 = vmatmul.mubr.f32.gmra.mrb[80].mxu0 %v7993_v33  ;;  %v8002_v11 = vsel %vm340_vm0, %v2447_v39, %v2449_v32  ;;  %v2451_v4 = vrot.slane %v2341_v41, 1 }
 0x3c8   : > { %9167 = vst [vmem:[#allocation49_spill] sm:$0xff] %v8002_v11  ;;  %v2263_v2 = vrot.slane %v2185_v12, 7  ;;  %2956 = vmatprep.mubr.f32.mxu1 %v8002_v11  ;;  %v2563_v51 = vrot.slane %v2341_v41, 2 }
 0x3c9   : > { %v5734_v56 = vpop.eup %5733  ;;  %v2125_v46 = vadd.f32 1e-08, %v2093_v24 }
 0x3ca   : > { %v2186_v16 = vmul.f32 %v5734_v56, %v7605_v7  ;;  %v2057_v48 = vpop.xlane.xlu0 %2056  ;;  %v8008_v10 = vsel %vm2229_vm11, %v7981_v44, %v2263_v2  ;;  %v2358_v9 = vsel %vm2229_vm11, %v2263_v2, 0.0 }
 0x3cb   : > { %9168 = vst [vmem:[#allocation50_spill] sm:$0xff] %v8008_v10  ;;  %5739 = vrsqrt.f32 %v2125_v46  ;;  %v2094_v33 = vmul.f32 0.125, %v2057_v48  ;;  %2957 = vmatmul.mubr.f32.gmra.mrb[74].mxu1 %v7975_v30  ;;  %v2452_v39 = vrot.slane %v8008_v10, 1  ;;  %v2564_v32 = vrot.slane %v8008_v10, 2 }
 0x3cc   : > { %v8014_v12 = vrot.slane %v2186_v16, 7  ;;  %v2566_v24 = vrot.slane %v2358_v9, 2  ;;  %v2454_v7 = vrot.slane %v2358_v9, 1 }
 0x3cd   : > { %v5736_v56 = vpop.eup %5735  ;;  %v2126_v11 = vadd.f32 1e-08, %v2094_v33  ;;  %v8017_v53 = vsel %vm340_vm0, %v2451_v4, %v2452_v39  ;;  %v8020_v41 = vsel %vm453_vm1, %v2563_v51, %v2564_v32 }
 0x3ce   : > { %9169 = vst [vmem:[#allocation51_spill] sm:$0xff] %v8014_v12  ;;  %9170 = vst [vmem:[#allocation52_spill] sm:$0xff] %v8017_v53  ;;  %v2187_v2 = vmul.f32 %v5736_v56, %v7612_v27  ;;  %v2059_v46 = vpop.xlane.xlu1 %2058  ;;  %2961 = vmatprep.mubr.f32.mxu1 %v8017_v53  ;;  %4699 = vmatprep.mubr.f32.mxu0 %v8020_v41  ;;  %v8026_v16 = vsel %vm453_vm1, %v2564_v32, %v2566_v24  ;;  %v2342_v9 = vsel %vm2229_vm11, 0.0, %v8014_v12 }
 0x3cf   : > { %9171 = vst [vmem:[#allocation53_spill] sm:$0xff] %v8020_v41  ;;  %9172 = vst [vmem:[#allocation54_spill] sm:$0xff] %v8026_v16  ;;  %5741 = vrsqrt.f32 %v2126_v11  ;;  %v2095_v33 = vmul.f32 0.125, %v2059_v46  ;;  %4385 = vmatmul.mubr.msk.f32.gmra.mrb[76].mxu1 %vm7491_vm13, %v7981_v44  ;;  %4700 = vmatmul.mubr.f32.gmra.mrb[82].mxu0 %v8026_v16  ;;  %v8035_v27 = vsel %vm340_vm0, %v2452_v39, %v2454_v7  ;;  %v2456_v32 = vrot.slane %v2342_v9, 1 }
 0x3d0   : > { %9173 = vst [vmem:[#allocation55_spill] sm:$0xff] %v8035_v27  ;;  %v2266_v4 = vrot.slane %v2187_v2, 7  ;;  %2966 = vmatprep.mubr.f32.mxu1 %v8035_v27  ;;  %v2568_v46 = vrot.slane %v2342_v9, 2 }
 0x3d1   : > { %v5738_v48 = vpop.eup %5737  ;;  %v2127_v51 = vadd.f32 1e-08, %v2095_v33 }
 0x3d2   : > { %v2188_v24 = vmul.f32 %v5738_v48, %v7618_v57  ;;  %v2061_v56 = vpop.xlane.xlu0 %2060  ;;  %v8041_v11 = vsel %vm2229_vm11, %v8014_v12, %v2266_v4  ;;  %v2359_v53 = vsel %vm2229_vm11, %v2266_v4, 0.0 }
 0x3d3   : > { %9174 = vst [vmem:[#allocation56_spill] sm:$0xff] %v8041_v11  ;;  %5743 = vrsqrt.f32 %v2127_v51  ;;  %v2096_v16 = vmul.f32 0.125, %v2061_v56  ;;  %2967 = vmatmul.mubr.f32.gmra.mrb[78].mxu1 %v8008_v10  ;;  %v2457_v39 = vrot.slane %v8041_v11, 1  ;;  %v2569_v7 = vrot.slane %v8041_v11, 2 }
 0x3d4   : > { %v8047_v2 = vrot.slane %v2188_v24, 7  ;;  %v2571_v33 = vrot.slane %v2359_v53, 2  ;;  %v2459_v57 = vrot.slane %v2359_v53, 1 }
 0x3d5   : > { %v5740_v48 = vpop.eup %5739  ;;  %v2128_v27 = vadd.f32 1e-08, %v2096_v16  ;;  %v8050_v41 = vsel %vm340_vm0, %v2456_v32, %v2457_v39  ;;  %v8053_v9 = vsel %vm453_vm1, %v2568_v46, %v2569_v7 }
 0x3d6   : > { %9175 = vst [vmem:[#allocation57_spill] sm:$0xff] %v8047_v2  ;;  %9176 = vst [vmem:[#allocation58_spill] sm:$0xff] %v8050_v41  ;;  %v2189_v4 = vmul.f32 %v5740_v48, %v7625_v37  ;;  %v2063_v51 = vpop.xlane.xlu1 %2062  ;;  %2971 = vmatprep.mubr.f32.mxu1 %v8050_v41  ;;  %4702 = vmatprep.mubr.f32.mxu0 %v8053_v9  ;;  %v8059_v24 = vsel %vm453_vm1, %v2569_v7, %v2571_v33  ;;  %v2343_v37 = vsel %vm2229_vm11, 0.0, %v8047_v2 }
 0x3d7   : > { %5745 = vrsqrt.f32 %v2128_v27  ;;  %v2097_v53 = vmul.f32 0.125, %v2063_v51  ;;  %4387 = vmatmul.mubr.msk.f32.gmra.mrb[80].mxu1 %vm7491_vm13, %v8014_v12  ;;  %4703 = vmatmul.mubr.f32.gmra.mrb[84].mxu0 %v8059_v24  ;;  %v8066_v16 = vsel %vm340_vm0, %v2457_v39, %v2459_v57  ;;  %v2461_v33 = vrot.slane %v2343_v37, 1 }
 0x3d8   : > { %9177 = vst [vmem:[#allocation59_spill] sm:$0xff] %v8066_v16  ;;  %v2269_v32 = vrot.slane %v2189_v4, 7  ;;  %2976 = vmatprep.mubr.f32.mxu1 %v8066_v16  ;;  %v2573_v57 = vrot.slane %v2343_v37, 2 }
 0x3d9   : > { %v5742_v56 = vpop.eup %5741  ;;  %v2129_v46 = vadd.f32 1e-08, %v2097_v53 }
 0x3da   : > { %v2190_v27 = vmul.f32 %v5742_v56, %v7631_v59  ;;  %v8074_v7 = vsel %vm2229_vm11, %v8047_v2, %v2269_v32  ;;  %v2360_v48 = vsel %vm2229_vm11, %v2269_v32, 0.0 }
 0x3db   : > { %9178 = vst [vmem:[#allocation60_spill] sm:$0xff] %v8074_v7  ;;  %5747 = vrsqrt.f32 %v2129_v46  ;;  %2977 = vmatmul.mubr.f32.gmra.mrb[82].mxu1 %v8041_v11  ;;  %v2462_v39 = vrot.slane %v8074_v7, 1  ;;  %v2574_v4 = vrot.slane %v8074_v7, 2  ;;  %v2576_v53 = vrot.slane %v2360_v48, 2 }
 0x3dc   : > { %v8080_v51 = vrot.slane %v2190_v27, 7  ;;  %v2464_v16 = vrot.slane %v2360_v48, 1 }
 0x3dd   : > { %v5744_v59 = vpop.eup %5743  ;;  %v8083_v56 = vsel %vm340_vm0, %v2461_v33, %v2462_v39  ;;  %v8086_v41 = vsel %vm453_vm1, %v2573_v57, %v2574_v4  ;;  %v8092_v37 = vsel %vm453_vm1, %v2574_v4, %v2576_v53 }
 0x3de   : > { %9179 = vst [vmem:[#allocation61_spill] sm:$0xff] %v8080_v51  ;;  %9180 = vst [vmem:[#allocation62_spill] sm:$0xff] %v8083_v56  ;;  %v2191_v32 = vmul.f32 %v5744_v59, %v7638_v50  ;;  %2981 = vmatprep.mubr.f32.mxu1 %v8083_v56  ;;  %4705 = vmatprep.mubr.f32.mxu0 %v8086_v41  ;;  %v8099_v46 = vsel %vm340_vm0, %v2462_v39, %v2464_v16  ;;  %v8104_v50 = vsel %vm2229_vm11, 0.0, %v8080_v51  ;;  %v2700_v56 = vld [vmem:[#allocation2 + $0x200] sm:$0xff] }
 0x3df   : > { %4389 = vmatmul.mubr.msk.f32.gmra.mrb[84].mxu1 %vm7491_vm13, %v8047_v2  ;;  %4706 = vmatmul.mubr.f32.gmra.mrb[86].mxu0 %v8092_v37  ;;  %9181 = vst [vmem:[#allocation63_spill] sm:$0xff] %v8099_v46  ;;  %v2466_v16 = vrot.slane %v8104_v50, 1 }
 0x3e0   : > { %v2272_v27 = vrot.slane %v2191_v32, 7  ;;  %2986 = vmatprep.mubr.f32.mxu1 %v8099_v46 }
 0x3e1   : > { %v5746_v33 = vpop.eup %5745 }
 0x3e2   : > { %v2192_v48 = vmul.f32 %v5746_v33, %v7644_v54  ;;  %v8109_v57 = vsel %vm2229_vm11, %v8080_v51, %v2272_v27  ;;  %v8112_v4 = vsel %vm2229_vm11, %v2272_v27, 0.0 }
 0x3e3   : > { %9182 = vst [vmem:[#allocation64_spill] sm:$0xff] %v8109_v57  ;;  %2987 = vmatmul.mubr.f32.gmra.mrb[86].mxu1 %v8074_v7  ;;  %v2467_v39 = vrot.slane %v8109_v57, 1  ;;  %v2469_v53 = vrot.slane %v8112_v4, 1 }
 0x3e4   : > { %v8118_v59 = vrot.slane %v2192_v48, 7 }
 0x3e5   : > { %v5748_v32 = vpop.eup %5747  ;;  %v8121_v54 = vsel %vm340_vm0, %v2466_v16, %v2467_v39  ;;  %v8129_v27 = vsel %vm340_vm0, %v2467_v39, %v2469_v53 }
 0x3e6   : > { %9183 = vst [vmem:[#allocation65_spill] sm:$0xff] %v8118_v59  ;;  %9184 = vst [vmem:[#allocation66_spill] sm:$0xff] %v8121_v54  ;;  %v2193_v33 = vmul.f32 %v5748_v32, %v7651_v23  ;;  %2991 = vmatprep.mubr.f32.mxu1 %v8121_v54  ;;  %v8134_v48 = vsel %vm2229_vm11, 0.0, %v8118_v59  ;;  %v2509_v54 = vrot.slane %v7467_v3, 2 }
 0x3e7   : > { %4391 = vmatmul.mubr.msk.f32.gmra.mrb[88].mxu1 %vm7491_vm13, %v8080_v51  ;;  %9185 = vst [vmem:[#allocation67_spill] sm:$0xff] %v8129_v27  ;;  %9186 = vst [vmem:[#allocation68_spill] sm:$0xff] %v8134_v48  ;;  %v2471_v32 = vrot.slane %v8134_v48, 1  ;;  %v2705_v48 = vld [vmem:[#allocation2 + $0x228] sm:$0xff] }
 0x3e8   : > { %v2275_v46 = vrot.slane %v2193_v33, 7  ;;  %2996 = vmatprep.mubr.f32.mxu1 %v8129_v27  ;;  %v2508_v27 = vrot.slane %v7477_v0, 2  ;;  %v2703_v0 = vld [vmem:[#allocation2 + $0x218] sm:$0xff] }
 0x3ea   : > { %v8138_v16 = vsel %vm2229_vm11, %v8118_v59, %v2275_v46  ;;  %v8141_v23 = vsel %vm2229_vm11, %v2275_v46, 0.0 }
 0x3eb   : > { %9187 = vst [vmem:[#allocation69_spill] sm:$0xff] %v8138_v16  ;;  %9188 = vst [vmem:[#allocation70_spill] sm:$0xff] %v8141_v23  ;;  %2997 = vmatmul.mubr.f32.gmra.mrb[90].mxu1 %v8109_v57  ;;  %v2472_v39 = vrot.slane %v8138_v16, 1  ;;  %v2474_v53 = vrot.slane %v8141_v23, 1  ;;  %v2701_v23 = vld [vmem:[#allocation2 + $0x208] sm:$0xff] }
 0x3ed   : > { %v8148_v33 = vsel %vm340_vm0, %v2471_v32, %v2472_v39  ;;  %v8155_v46 = vsel %vm340_vm0, %v2472_v39, %v2474_v53  ;;  %v8165_v32 = vsel %vm453_vm1, %v2508_v27, %v2509_v54  ;;  %v2511_v39 = vrot.slane %v7502_v28, 2  ;;  %v2702_v53 = vld [vmem:[#allocation2 + $0x210] sm:$0xff] }
 0x3ee   : > { %9189 = vst [vmem:[#allocation71_spill] sm:$0xff] %v8148_v33  ;;  %3001 = vmatprep.mubr.f32.mxu1 %v8148_v33  ;;  %9190 = vst [vmem:[#allocation72_spill] sm:$0xff] %v8155_v46  ;;  %v5041_v33 = vpack.c.bf16 %v2701_v23, %v2700_v56  ;;  %v2514_v27 = vrot.slane %v7684_v5, 2  ;;  %v2513_v28 = vrot.slane %v7679_v20, 2  ;;  %v2707_v23 = vld [vmem:[#allocation2 + $0x238] sm:$0xff]  ;;  %v2708_v20 = vld [vmem:[#allocation2 + $0x240] sm:$0xff] }
 0x3ef   : > { %4393 = vmatmul.mubr.msk.f32.gmra.mrb[92].mxu1 %vm7491_vm13, %v8118_v59  ;;  %9191 = vst [vmem:[#allocation73_spill] sm:$0xff] %v8165_v32  ;;  %v8171_v3 = vsel %vm453_vm1, %v2509_v54, %v2511_v39  ;;  %v2706_v54 = vld [vmem:[#allocation2 + $0x230] sm:$0xff]  ;;  %v2516_v39 = vrot.slane %v7688_v35, 2 }
 0x3f0   : > { %3006 = vmatprep.mubr.f32.mxu1 %v8155_v46  ;;  %9192 = vst [vmem:[#allocation74_spill] sm:$0xff] %v8171_v3  ;;  %v5044_v46 = vpack.c.bf16 %v2703_v0, %v2702_v53  ;;  %v2710_v53 = vld [vmem:[#allocation2 + $0x250] sm:$0xff]  ;;  %v2711_v0 = vld [vmem:[#allocation2 + $0x258] sm:$0xff] }
 0x3f3   : > { %3007 = vmatmul.mubr.f32.gmra.mrb[94].mxu1 %v8138_v16 }
 0x3f4   : > { %4395 = vmatprep.mubr.msk.f32.mxu1 %vm7491_vm13, %v7673_v49  ;;  %v2704_v49 = vld [vmem:[#allocation2 + $0x220] sm:$0xff] }
 0x3f5   : > { %v5047_v56 = vpack.c.bf16 %v2705_v48, %v2704_v49  ;;  %v8189_v48 = vsel %vm453_vm1, %v2514_v27, %v2516_v39  ;;  %v5056_v49 = vpack.c.bf16 %v2711_v0, %v2710_v53  ;;  %v2719_v53 = vld [vmem:[#allocation2 + $0x298] sm:$0xff] }
 0x3f7   : > { %3077 = vmatmul.mubr.f32.vlgmr.msra.gmra.mrb[32].mxu1 %v8165_v32  ;;  %v9286_v34 = vld [vmem:[#allocation74_spill] sm:$0xff] }
 0x3f8   : > { %3081 = vmatprep.mubr.f32.mxu1 %v7684_v5  ;;  %5042 = vmatpush1.bf16.msra.mxu1 %v5041_v33  ;;  %v8182_v33 = vsel %vm453_vm1, %v2513_v28, %v2514_v27  ;;  %v5050_v5 = vpack.c.bf16 %v2707_v23, %v2706_v54  ;;  %v2712_v27 = vld [vmem:[#allocation2 + $0x260] sm:$0xff]  ;;  %v2713_v28 = vld [vmem:[#allocation2 + $0x268] sm:$0xff]  ;;  %v2714_v54 = vld [vmem:[#allocation2 + $0x270] sm:$0xff] }
 0x3f9   : > { %5043 = vmatprep.subr.bf16.mxu1 %v9099_v1  ;;  %v2715_v23 = vld [vmem:[#allocation2 + $0x278] sm:$0xff] }
 0x3fa   : > { %v5062_v39 = vpack.c.bf16 %v2715_v23, %v2714_v54  ;;  %v2723_v54 = vld [vmem:[#allocation2 + $0x2b8] sm:$0xff] }
 0x3fb   : > { %3082 = vmatmul.mubr.f32.gmra.mrb[34].mxu1 %v8171_v3 }
 0x3fc   : > { %4397 = vmatprep.mubr.msk.f32.mxu1 %vm7491_vm13, %v7692_v60  ;;  %5045 = vmatpush1.bf16.msra.mxu1 %v5044_v46  ;;  %v2709_v46 = vld [vmem:[#allocation2 + $0x248] sm:$0xff] }
 0x3fd   : > { %5046 = vmatprep.subr.bf16.mxu1 %v9099_v1  ;;  %v5053_v35 = vpack.c.bf16 %v2709_v46, %v2708_v20  ;;  %v2717_v20 = vld [vmem:[#allocation2 + $0x288] sm:$0xff] }
 0x3ff   : > { %3087 = vmatmul.mubr.f32.gmra.mrb[36].mxu1 %v8182_v33 }
 0x400   : > { %3091 = vmatprep.mubr.f32.mxu1 %v7711_v15  ;;  %5048 = vmatpush1.bf16.msra.mxu1 %v5047_v56  ;;  %v5059_v56 = vpack.c.bf16 %v2713_v28, %v2712_v27  ;;  %v2721_v27 = vld [vmem:[#allocation2 + $0x2a8] sm:$0xff] }
 0x401   : > { %5049 = vmatprep.subr.bf16.mxu1 %v9099_v1 }
 0x403   : > { %3092 = vmatmul.mubr.f32.gmra.mrb[38].mxu1 %v8189_v48 }
 0x404   : > { %4399 = vmatprep.mubr.msk.f32.mxu1 %vm7491_vm13, %v7717_v52  ;;  %5051 = vmatpush1.bf16.msra.mxu1 %v5050_v5  ;;  %v2716_v5 = vld [vmem:[#allocation2 + $0x280] sm:$0xff] }
 0x405   : > { %5052 = vmatprep.subr.bf16.mxu1 %v9099_v1  ;;  %v5065_v46 = vpack.c.bf16 %v2717_v20, %v2716_v5  ;;  %v2725_v5 = vld [vmem:[#allocation2 + $0x2c8] sm:$0xff] }
 0x407   : > { %3097 = vmatmul.mubr.f32.gmra.mrb[40].mxu1 %v7720_v19 }
 0x408   : > { %3101 = vmatprep.mubr.f32.mxu1 %v7744_v18  ;;  %5054 = vmatpush1.bf16.msra.mxu1 %v5053_v35  ;;  %v2718_v35 = vld [vmem:[#allocation2 + $0x290] sm:$0xff] }
 0x409   : > { %5055 = vmatprep.subr.bf16.mxu1 %v9099_v1  ;;  %v5068_v0 = vpack.c.bf16 %v2719_v53, %v2718_v35  ;;  %v2727_v35 = vld [vmem:[#allocation2 + $0x2d8] sm:$0xff] }
 0x40b   : > { %3102 = vmatmul.mubr.f32.gmra.mrb[42].mxu1 %v7729_v61 }
 0x40c   : > { %4401 = vmatprep.mubr.msk.f32.mxu1 %vm7491_vm13, %v7750_v63  ;;  %5057 = vmatpush1.bf16.msra.mxu1 %v5056_v49  ;;  %v2720_v49 = vld [vmem:[#allocation2 + $0x2a0] sm:$0xff] }
 0x40d   : > { %5058 = vmatprep.subr.bf16.mxu1 %v9099_v1  ;;  %v5071_v28 = vpack.c.bf16 %v2721_v27, %v2720_v49  ;;  %v2729_v49 = vld [vmem:[#allocation2 + $0x2e8] sm:$0xff] }
 0x40f   : > { %3107 = vmatmul.mubr.f32.gmra.mrb[44].mxu1 %v7756_v17 }
 0x410   : > { %3111 = vmatprep.mubr.f32.mxu1 %v7777_v13  ;;  %5060 = vmatpush1.bf16.msra.mxu1 %v5059_v56  ;;  %v2722_v56 = vld [vmem:[#allocation2 + $0x2b0] sm:$0xff] }
 0x411   : > { %5061 = vmatprep.subr.bf16.mxu1 %v9099_v1  ;;  %v5074_v23 = vpack.c.bf16 %v2723_v54, %v2722_v56  ;;  %v2731_v56 = vld [vmem:[#allocation2 + $0x2f8] sm:$0xff] }
 0x413   : > { %3112 = vmatmul.mubr.f32.gmra.mrb[46].mxu1 %v7762_v26 }
 0x414   : > { %4403 = vmatprep.mubr.msk.f32.mxu1 %vm7491_vm13, %v7783_v62  ;;  %5063 = vmatpush1.bf16.msra.mxu1 %v5062_v39  ;;  %v2724_v39 = vld [vmem:[#allocation2 + $0x2c0] sm:$0xff] }
 0x415   : > { %5064 = vmatprep.subr.bf16.mxu1 %v9099_v1  ;;  %v5077_v20 = vpack.c.bf16 %v2725_v5, %v2724_v39  ;;  %v9194_v39 = vld [vmem:[#allocation37_spill] sm:$0xff]  ;;  %v9195_v5 = vld [vmem:[#allocation38_spill] sm:$0xff] }
 0x417   : > { %3117 = vmatmul.mubr.f32.gmra.mrb[48].mxu1 %v7789_v55 }
 0x418   : > { %3121 = vmatprep.mubr.f32.mxu1 %v7810_v42  ;;  %5066 = vmatpush1.bf16.msra.mxu1 %v5065_v46  ;;  %v2726_v46 = vld [vmem:[#allocation2 + $0x2d0] sm:$0xff] }
 0x419   : > { %5067 = vmatprep.subr.bf16.mxu1 %v9099_v1  ;;  %v5080_v53 = vpack.c.bf16 %v2727_v35, %v2726_v46  ;;  %v9197_v46 = vld [vmem:[#allocation42_spill] sm:$0xff]  ;;  %v9198_v35 = vld [vmem:[#allocation47_spill] sm:$0xff] }
 0x41b   : > { %3122 = vmatmul.mubr.f32.gmra.mrb[50].mxu1 %v7795_v31 }
 0x41c   : > { %4405 = vmatprep.mubr.msk.f32.mxu1 %vm7491_vm13, %v7816_v36  ;;  %5069 = vmatpush1.bf16.msra.mxu1 %v5068_v0  ;;  %v2728_v0 = vld [vmem:[#allocation2 + $0x2e0] sm:$0xff] }
 0x41d   : > { %5070 = vmatprep.subr.bf16.mxu1 %v9099_v1  ;;  %v5083_v27 = vpack.c.bf16 %v2729_v49, %v2728_v0  ;;  %v2065_v0 = vpop.xlane.xlu0 %2064  ;;  %v2067_v49 = vpop.xlane.xlu1 %2066 }
 0x41f   : > { %3127 = vmatmul.mubr.f32.gmra.mrb[52].mxu1 %v7822_v14 }
 0x420   : > { %3131 = vmatprep.mubr.f32.mxu1 %v7843_v58  ;;  %5072 = vmatpush1.bf16.msra.mxu1 %v5071_v28  ;;  %v2730_v28 = vld [vmem:[#allocation2 + $0x2f0] sm:$0xff] }
 0x421   : > { %5073 = vmatprep.subr.bf16.mxu1 %v9099_v1  ;;  %v5086_v54 = vpack.c.bf16 %v2731_v56, %v2730_v28  ;;  %v2098_v28 = vmul.f32 0.125, %v2065_v0  ;;  %v2099_v56 = vmul.f32 0.125, %v2067_v49 }
 0x423   : > { %3132 = vmatmul.mubr.f32.gmra.mrb[54].mxu1 %v7828_v22  ;;  %v2130_v3 = vadd.f32 1e-08, %v2098_v28  ;;  %v2131_v32 = vadd.f32 1e-08, %v2099_v56  ;;  %v2579_v28 = vrot.slane %v8109_v57, 2 }
 0x424   : > { %4407 = vmatprep.mubr.msk.f32.mxu1 %vm7491_vm13, %v7849_v47  ;;  %5075 = vmatpush1.bf16.msra.mxu1 %v5074_v23  ;;  %v9193_v23 = vld [vmem:[#allocation34_spill] sm:$0xff] }
 0x425   : > { %5076 = vmatprep.subr.bf16.mxu1 %v9099_v1  ;;  %5749 = vrsqrt.f32 %v2130_v3 }
 0x426   : > { %5751 = vrsqrt.f32 %v2131_v32 }
 0x427   : > { %3137 = vmatmul.mubr.f32.gmra.mrb[56].mxu1 %v7855_v6 }
 0x428   : > { %3141 = vmatprep.mubr.f32.mxu1 %v7876_v38  ;;  %5078 = vmatpush1.bf16.msra.mxu1 %v5077_v20  ;;  %v9196_v20 = vld [vmem:[#allocation41_spill] sm:$0xff] }
 0x429   : > { %5079 = vmatprep.subr.bf16.mxu1 %v9099_v1 }
 0x42b   : > { %3142 = vmatmul.mubr.f32.gmra.mrb[58].mxu1 %v7861_v45 }
 0x42c   : > { %4409 = vmatprep.mubr.msk.f32.mxu1 %vm7491_vm13, %v7882_v40  ;;  %5081 = vmatpush1.bf16.msra.mxu1 %v5080_v53  ;;  %v9199_v53 = vld [vmem:[#allocation48_spill] sm:$0xff] }
 0x42d   : > { %5082 = vmatprep.subr.bf16.mxu1 %v9099_v1 }
 0x42f   : > { %3147 = vmatmul.mubr.f32.gmra.mrb[60].mxu1 %v7888_v8  ;;  %v5750_v3 = vpop.eup %5749 }
 0x430   : > { %3151 = vmatprep.mubr.f32.mxu1 %v7909_v21  ;;  %5084 = vmatpush1.bf16.msra.mxu1 %v5083_v27  ;;  %v9200_v27 = vld [vmem:[#allocation53_spill] sm:$0xff]  ;;  %v5752_v56 = vpop.eup %5751 }
 0x431   : > { %5085 = vmatprep.subr.bf16.mxu1 %v9099_v1 }
 0x433   : > { %3152 = vmatmul.mubr.f32.gmra.mrb[62].mxu1 %v9193_v23 }
 0x434   : > { %4411 = vmatprep.mubr.msk.f32.mxu1 %vm7491_vm13, %v7915_v25  ;;  %5087 = vmatpush1.bf16.msra.mxu1 %v5086_v54  ;;  %v9201_v54 = vld [vmem:[#allocation54_spill] sm:$0xff] }
 0x435   : > { %5088 = vmatprep.subr.bf16.mxu1 %v9099_v1 }
 0x437   : > { %3157 = vmatmul.mubr.f32.gmra.mrb[64].mxu1 %v9194_v39 }
 0x438   : > { %3161 = vmatprep.mubr.f32.mxu1 %v7942_v29 }
 0x43b   : > { %3162 = vmatmul.mubr.f32.gmra.mrb[66].mxu1 %v9195_v5 }
 0x43c   : > { %4413 = vmatprep.mubr.msk.f32.mxu1 %vm7491_vm13, %v7948_v43 }
 0x43f   : > { %3167 = vmatmul.mubr.f32.gmra.mrb[68].mxu1 %v9196_v20 }
 0x440   : > { %3171 = vmatprep.mubr.f32.mxu1 %v7975_v30  ;;  %v9217_v30 = vld [vmem:[#allocation22_spill] sm:$0xff] }
 0x443   : > { %3172 = vmatmul.mubr.f32.gmra.mrb[70].mxu1 %v9197_v46 }
 0x444   : > { %4415 = vmatprep.mubr.msk.f32.mxu1 %vm7491_vm13, %v7981_v44 }
 0x447   : > { %3177 = vmatmul.mubr.f32.gmra.mrb[72].mxu1 %v9198_v35 }
 0x448   : > { %3181 = vmatprep.mubr.f32.mxu1 %v8008_v10  ;;  %v2735_v10 = vld [vmem:[#allocation2 + $0x318] sm:$0xff] }
 0x44b   : > { %3182 = vmatmul.mubr.f32.gmra.mrb[74].mxu1 %v9199_v53 }
 0x44c   : > { %4417 = vmatprep.mubr.msk.f32.mxu1 %vm7491_vm13, %v8014_v12 }
 0x44f   : > { %3187 = vmatmul.mubr.f32.gmra.mrb[76].mxu1 %v9200_v27 }
 0x450   : > { %3191 = vmatprep.mubr.f32.mxu1 %v8041_v11  ;;  %v2734_v11 = vld [vmem:[#allocation2 + $0x310] sm:$0xff] }
 0x451   : > { %v5092_v44 = vpack.c.bf16 %v2735_v10, %v2734_v11  ;;  %v2740_v11 = vld [vmem:[#allocation2 + $0x340] sm:$0xff] }
 0x453   : > { %3192 = vmatmul.mubr.f32.gmra.mrb[78].mxu1 %v9201_v54 }
 0x454   : > { %4419 = vmatprep.mubr.msk.f32.mxu1 %vm7491_vm13, %v8047_v2 }
 0x457   : > { %3197 = vmatmul.mubr.f32.gmra.mrb[80].mxu1 %v8053_v9 }
 0x458   : > { %3201 = vmatprep.mubr.f32.mxu1 %v8074_v7 }
 0x45a   : > { %v8270_v12 = vpop.f32.mrb[64].mxu0 }
 0x45b   : > { %9202 = vst [vmem:[#allocation34_spill] sm:$0xff] %v8270_v12  ;;  %3202 = vmatmul.mubr.f32.gmra.mrb[82].mxu1 %v8059_v24  ;;  %v8273_v0 = vpop.f32.mrb[65].mxu0  ;;  %v2578_v12 = vrot.slane %v8104_v50, 2 }
 0x45c   : > { %9203 = vst [vmem:[#allocation37_spill] sm:$0xff] %v8273_v0  ;;  %4421 = vmatprep.mubr.msk.f32.mxu1 %vm7491_vm13, %v8080_v51  ;;  %v2581_v51 = vrot.slane %v8112_v4, 2 }
 0x45d   : > { %v8291_v0 = vsel %vm453_vm1, %v2578_v12, %v2579_v28  ;;  %v2584_v12 = vrot.slane %v8138_v16, 2 }
 0x45f   : > { %3207 = vmatmul.mubr.f32.gmra.mrb[84].mxu1 %v8086_v41 }
 0x460   : > { %3211 = vmatprep.mubr.f32.mxu1 %v8109_v57  ;;  %v9207_v57 = vld [vmem:[#allocation20_spill] sm:$0xff] }
 0x461   : > { %v8297_v2 = vmul.f32 %v5752_v56, %v9207_v57  ;;  %v9210_v57 = vld [vmem:[#allocation68_spill] sm:$0xff] }
 0x462   : > { %v8280_v49 = vpop.f32.mrb[66].mxu0 }
 0x463   : > { %9204 = vst [vmem:[#allocation38_spill] sm:$0xff] %v8280_v49  ;;  %3212 = vmatmul.mubr.f32.gmra.mrb[86].mxu1 %v8092_v37  ;;  %v8284_v32 = vpop.f32.mrb[67].mxu0  ;;  %v9206_v49 = vld [vmem:[#allocation19_spill] sm:$0xff] }
 0x464   : > { %9205 = vst [vmem:[#allocation41_spill] sm:$0xff] %v8284_v32  ;;  %4423 = vmatprep.mubr.msk.f32.mxu1 %vm7491_vm13, %v8118_v59  ;;  %v2194_v7 = vmul.f32 %v5750_v3, %v9206_v49  ;;  %v8303_v59 = vsel %vm453_vm1, %v2579_v28, %v2581_v51  ;;  %v9065_v49 = vrot.slane %v8297_v2, 7  ;;  %v2583_v3 = vrot.slane %v9210_v57, 2  ;;  %v9211_v51 = vld [vmem:[#allocation70_spill] sm:$0xff] }
 0x466   : > { %v8305_v50 = vrot.slane %v2194_v7, 7  ;;  %v8317_v56 = vsel %vm453_vm1, %v2583_v3, %v2584_v12  ;;  %v2586_v7 = vrot.slane %v9211_v51, 2 }
 0x467   : > { %3217 = vmatmul.mubr.f32.gmra.mrb[88].mxu1 %v8291_v0 }
 0x468   : > { %3221 = vmatprep.mubr.f32.mxu1 %v8138_v16  ;;  %v8325_v28 = vsel %vm2229_vm11, %v8305_v50, %v9065_v49  ;;  %v8331_v57 = vsel %vm453_vm1, %v2584_v12, %v2586_v7  ;;  %v9215_v49 = vld [vmem:[#allocation21_spill] sm:$0xff] }
 0x469   : > { %9213 = vst [vmem:[#allocation53_spill] sm:$0xff] %v8331_v57  ;;  %v2737_v12 = vld [vmem:[#allocation2 + $0x328] sm:$0xff] }
 0x46a   : > { %v8300_v32 = vpop.f32.mrb[68].mxu0 }
 0x46b   : > { %9208 = vst [vmem:[#allocation42_spill] sm:$0xff] %v8300_v32  ;;  %3222 = vmatmul.mubr.f32.gmra.mrb[90].mxu1 %v8303_v59  ;;  %v8309_v4 = vpop.f32.mrb[69].mxu0  ;;  %v2732_v32 = vld [vmem:[#allocation2 + $0x300] sm:$0xff] }
 0x46c   : > { %9209 = vst [vmem:[#allocation47_spill] sm:$0xff] %v8309_v4  ;;  %4425 = vmatprep.mubr.msk.f32.mxu1 %vm7491_vm13, %v8305_v50  ;;  %v2733_v4 = vld [vmem:[#allocation2 + $0x308] sm:$0xff] }
 0x46d   : > { %v5089_v51 = vpack.c.bf16 %v2733_v4, %v2732_v32  ;;  %v2738_v32 = vld [vmem:[#allocation2 + $0x330] sm:$0xff]  ;;  %v9219_v4 = vld [vmem:[#allocation23_spill] sm:$0xff] }
 0x46f   : > { %3227 = vmatmul.mubr.f32.gmra.mrb[92].mxu1 %v8317_v56 }
 0x470   : > { %3231 = vmatprep.mubr.f32.mxu1 %v8325_v28 }
 0x472   : > { %v8328_v16 = vpop.f32.mrb[70].mxu0 }
 0x473   : > { %9212 = vst [vmem:[#allocation48_spill] sm:$0xff] %v8328_v16  ;;  %3232 = vmatmul.mubr.f32.gmra.mrb[94].mxu1 %v8331_v57  ;;  %v8334_v3 = vpop.f32.mrb[71].mxu0  ;;  %v2736_v16 = vld [vmem:[#allocation2 + $0x320] sm:$0xff] }
 0x474   : > { %9214 = vst [vmem:[#allocation54_spill] sm:$0xff] %v8334_v3  ;;  %3301 = vmatprep.mubr.f32.mxu1 %v8182_v33  ;;  %v5095_v33 = vpack.c.bf16 %v2737_v12, %v2736_v16  ;;  %v2742_v16 = vld [vmem:[#allocation2 + $0x350] sm:$0xff]  ;;  %v9223_v12 = vld [vmem:[#allocation25_spill] sm:$0xff] }
 0x477   : > { %3302 = vmatmul.mubr.f32.vlgmr.msra.gmra.mrb[32].mxu1 %v9215_v49 }
 0x478   : > { %3306 = vmatprep.mubr.f32.mxu1 %v8189_v48  ;;  %5090 = vmatpush1.bf16.msra.mxu1 %v5089_v51  ;;  %v2739_v48 = vld [vmem:[#allocation2 + $0x338] sm:$0xff]  ;;  %v9221_v51 = vld [vmem:[#allocation24_spill] sm:$0xff] }
 0x479   : > { %5091 = vmatprep.subr.bf16.mxu1 %v9099_v1  ;;  %v5098_v10 = vpack.c.bf16 %v2739_v48, %v2738_v32  ;;  %v2744_v32 = vld [vmem:[#allocation2 + $0x360] sm:$0xff]  ;;  %v2745_v48 = vld [vmem:[#allocation2 + $0x368] sm:$0xff] }
 0x47a   : > { %v8340_v7 = vpop.f32.mrb[72].mxu0 }
 0x47b   : > { %9216 = vst [vmem:[#allocation19_spill] sm:$0xff] %v8340_v7  ;;  %3307 = vmatmul.mubr.f32.gmra.mrb[34].mxu1 %v9217_v30  ;;  %v8343_v3 = vpop.f32.mrb[73].mxu0  ;;  %v2741_v30 = vld [vmem:[#allocation2 + $0x348] sm:$0xff] }
 0x47c   : > { %9218 = vst [vmem:[#allocation20_spill] sm:$0xff] %v8343_v3  ;;  %3311 = vmatprep.mubr.f32.mxu1 %v7720_v19  ;;  %5093 = vmatpush1.bf16.msra.mxu1 %v5092_v44  ;;  %v5101_v44 = vpack.c.bf16 %v2741_v30, %v2740_v11  ;;  %v2746_v11 = vld [vmem:[#allocation2 + $0x370] sm:$0xff]  ;;  %v9227_v30 = vld [vmem:[#allocation27_spill] sm:$0xff] }
 0x47d   : > { %5094 = vmatprep.subr.bf16.mxu1 %v9099_v1 }
 0x47f   : > { %3312 = vmatmul.mubr.f32.gmra.mrb[36].mxu1 %v9219_v4 }
 0x480   : > { %3316 = vmatprep.mubr.f32.mxu1 %v7729_v61  ;;  %5096 = vmatpush1.bf16.msra.mxu1 %v5095_v33  ;;  %v2743_v61 = vld [vmem:[#allocation2 + $0x358] sm:$0xff] }
 0x481   : > { %5097 = vmatprep.subr.bf16.mxu1 %v9099_v1  ;;  %v5104_v33 = vpack.c.bf16 %v2743_v61, %v2742_v16  ;;  %v2748_v16 = vld [vmem:[#allocation2 + $0x380] sm:$0xff]  ;;  %v2749_v61 = vld [vmem:[#allocation2 + $0x388] sm:$0xff] }
 0x482   : > { %v8350_v49 = vpop.f32.mrb[74].mxu0 }
 0x483   : > { %9220 = vst [vmem:[#allocation68_spill] sm:$0xff] %v8350_v49  ;;  %3317 = vmatmul.mubr.f32.gmra.mrb[38].mxu1 %v9221_v51  ;;  %v8353_v19 = vpop.f32.mrb[75].mxu0 }
 0x484   : > { %9222 = vst [vmem:[#allocation70_spill] sm:$0xff] %v8353_v19  ;;  %3321 = vmatprep.mubr.f32.mxu1 %v7756_v17  ;;  %5099 = vmatpush1.bf16.msra.mxu1 %v5098_v10  ;;  %v9225_v19 = vld [vmem:[#allocation26_spill] sm:$0xff]  ;;  %v5107_v10 = vpack.c.bf16 %v2745_v48, %v2744_v32  ;;  %v9231_v48 = vld [vmem:[#allocation29_spill] sm:$0xff] }
 0x485   : > { %5100 = vmatprep.subr.bf16.mxu1 %v9099_v1  ;;  %v2750_v32 = vld [vmem:[#allocation2 + $0x390] sm:$0xff] }
 0x487   : > { %3322 = vmatmul.mubr.f32.gmra.mrb[40].mxu1 %v9223_v12 }
 0x488   : > { %3326 = vmatprep.mubr.f32.mxu1 %v7762_v26  ;;  %5102 = vmatpush1.bf16.msra.mxu1 %v5101_v44  ;;  %v2747_v26 = vld [vmem:[#allocation2 + $0x378] sm:$0xff] }
 0x489   : > { %5103 = vmatprep.subr.bf16.mxu1 %v9099_v1  ;;  %v5110_v44 = vpack.c.bf16 %v2747_v26, %v2746_v11  ;;  %v2752_v11 = vld [vmem:[#allocation2 + $0x3a0] sm:$0xff]  ;;  %v2753_v26 = vld [vmem:[#allocation2 + $0x3a8] sm:$0xff] }
 0x48a   : > { %v8360_v49 = vpop.f32.mrb[76].mxu0 }
 0x48b   : > { %9224 = vst [vmem:[#allocation21_spill] sm:$0xff] %v8360_v49  ;;  %3327 = vmatmul.mubr.f32.gmra.mrb[42].mxu1 %v9225_v19  ;;  %v8363_v17 = vpop.f32.mrb[77].mxu0 }
 0x48c   : > { %9226 = vst [vmem:[#allocation22_spill] sm:$0xff] %v8363_v17  ;;  %3331 = vmatprep.mubr.f32.mxu1 %v7789_v55  ;;  %5105 = vmatpush1.bf16.msra.mxu1 %v5104_v33  ;;  %v9229_v17 = vld [vmem:[#allocation28_spill] sm:$0xff]  ;;  %v5113_v33 = vpack.c.bf16 %v2749_v61, %v2748_v16  ;;  %v2754_v16 = vld [vmem:[#allocation2 + $0x3b0] sm:$0xff]  ;;  %v9235_v61 = vld [vmem:[#allocation31_spill] sm:$0xff] }
 0x48d   : > { %5106 = vmatprep.subr.bf16.mxu1 %v9099_v1 }
 0x48f   : > { %3332 = vmatmul.mubr.f32.gmra.mrb[44].mxu1 %v9227_v30 }
 0x490   : > { %3336 = vmatprep.mubr.f32.mxu1 %v7795_v31  ;;  %5108 = vmatpush1.bf16.msra.mxu1 %v5107_v10  ;;  %v2751_v31 = vld [vmem:[#allocation2 + $0x398] sm:$0xff] }
 0x491   : > { %5109 = vmatprep.subr.bf16.mxu1 %v9099_v1  ;;  %v5116_v10 = vpack.c.bf16 %v2751_v31, %v2750_v32  ;;  %v2756_v32 = vld [vmem:[#allocation2 + $0x3c0] sm:$0xff]  ;;  %v2757_v31 = vld [vmem:[#allocation2 + $0x3c8] sm:$0xff] }
 0x492   : > { %v8370_v49 = vpop.f32.mrb[78].mxu0 }
 0x493   : > { %9228 = vst [vmem:[#allocation23_spill] sm:$0xff] %v8370_v49  ;;  %3337 = vmatmul.mubr.f32.gmra.mrb[46].mxu1 %v9229_v17  ;;  %v8373_v55 = vpop.f32.mrb[79].mxu0 }
 0x494   : > { %9230 = vst [vmem:[#allocation24_spill] sm:$0xff] %v8373_v55  ;;  %3341 = vmatprep.mubr.f32.mxu1 %v7822_v14  ;;  %5111 = vmatpush1.bf16.msra.mxu1 %v5110_v44  ;;  %v9233_v55 = vld [vmem:[#allocation30_spill] sm:$0xff]  ;;  %v5119_v44 = vpack.c.bf16 %v2753_v26, %v2752_v11  ;;  %v9239_v26 = vld [vmem:[#allocation33_spill] sm:$0xff] }
 0x495   : > { %5112 = vmatprep.subr.bf16.mxu1 %v9099_v1  ;;  %v2758_v11 = vld [vmem:[#allocation2 + $0x3d0] sm:$0xff] }
 0x497   : > { %3342 = vmatmul.mubr.f32.gmra.mrb[48].mxu1 %v9231_v48 }
 0x498   : > { %3346 = vmatprep.mubr.f32.mxu1 %v7828_v22  ;;  %5114 = vmatpush1.bf16.msra.mxu1 %v5113_v33  ;;  %v2755_v22 = vld [vmem:[#allocation2 + $0x3b8] sm:$0xff] }
 0x499   : > { %5115 = vmatprep.subr.bf16.mxu1 %v9099_v1  ;;  %v5122_v33 = vpack.c.bf16 %v2755_v22, %v2754_v16  ;;  %v2760_v16 = vld [vmem:[#allocation2 + $0x3e0] sm:$0xff]  ;;  %v2761_v22 = vld [vmem:[#allocation2 + $0x3e8] sm:$0xff] }
 0x49a   : > { %v8380_v49 = vpop.f32.mrb[80].mxu0 }
 0x49b   : > { %9232 = vst [vmem:[#allocation25_spill] sm:$0xff] %v8380_v49  ;;  %3347 = vmatmul.mubr.f32.gmra.mrb[50].mxu1 %v9233_v55  ;;  %v8383_v14 = vpop.f32.mrb[81].mxu0 }
 0x49c   : > { %9234 = vst [vmem:[#allocation26_spill] sm:$0xff] %v8383_v14  ;;  %3351 = vmatprep.mubr.f32.mxu1 %v7855_v6  ;;  %5117 = vmatpush1.bf16.msra.mxu1 %v5116_v10  ;;  %v9237_v14 = vld [vmem:[#allocation32_spill] sm:$0xff]  ;;  %v5125_v10 = vpack.c.bf16 %v2757_v31, %v2756_v32  ;;  %v2762_v32 = vld [vmem:[#allocation2 + $0x3f0] sm:$0xff] }
 0x49d   : > { %5118 = vmatprep.subr.bf16.mxu1 %v9099_v1  ;;  %v9243_v31 = vld [vmem:[#allocation36_spill] sm:$0xff] }
 0x49f   : > { %3352 = vmatmul.mubr.f32.gmra.mrb[52].mxu1 %v9235_v61 }
 0x4a0   : > { %3356 = vmatprep.mubr.f32.mxu1 %v7861_v45  ;;  %5120 = vmatpush1.bf16.msra.mxu1 %v5119_v44  ;;  %v2759_v45 = vld [vmem:[#allocation2 + $0x3d8] sm:$0xff] }
 0x4a1   : > { %5121 = vmatprep.subr.bf16.mxu1 %v9099_v1  ;;  %v5128_v44 = vpack.c.bf16 %v2759_v45, %v2758_v11  ;;  %v9245_v45 = vld [vmem:[#allocation39_spill] sm:$0xff] }
 0x4a2   : > { %v8390_v49 = vpop.f32.mrb[82].mxu0 }
 0x4a3   : > { %9236 = vst [vmem:[#allocation27_spill] sm:$0xff] %v8390_v49  ;;  %3357 = vmatmul.mubr.f32.gmra.mrb[54].mxu1 %v9237_v14  ;;  %v8393_v6 = vpop.f32.mrb[83].mxu0 }
 0x4a4   : > { %9238 = vst [vmem:[#allocation28_spill] sm:$0xff] %v8393_v6  ;;  %3361 = vmatprep.mubr.f32.mxu1 %v7888_v8  ;;  %5123 = vmatpush1.bf16.msra.mxu1 %v5122_v33  ;;  %v9241_v6 = vld [vmem:[#allocation35_spill] sm:$0xff]  ;;  %v5131_v33 = vpack.c.bf16 %v2761_v22, %v2760_v16  ;;  %v9251_v16 = vld [vmem:[#allocation49_spill] sm:$0xff] }
 0x4a5   : > { %5124 = vmatprep.subr.bf16.mxu1 %v9099_v1  ;;  %v9253_v22 = vld [vmem:[#allocation55_spill] sm:$0xff] }
 0x4a7   : > { %3362 = vmatmul.mubr.f32.gmra.mrb[56].mxu1 %v9239_v26 }
 0x4a8   : > { %3366 = vmatprep.mubr.f32.mxu1 %v9193_v23  ;;  %5126 = vmatpush1.bf16.msra.mxu1 %v5125_v10  ;;  %v2763_v23 = vld [vmem:[#allocation2 + $0x3f8] sm:$0xff] }
 0x4a9   : > { %5127 = vmatprep.subr.bf16.mxu1 %v9099_v1  ;;  %v5134_v10 = vpack.c.bf16 %v2763_v23, %v2762_v32 }
 0x4aa   : > { %v8400_v49 = vpop.f32.mrb[84].mxu0 }
 0x4ab   : > { %9240 = vst [vmem:[#allocation29_spill] sm:$0xff] %v8400_v49  ;;  %3367 = vmatmul.mubr.f32.gmra.mrb[58].mxu1 %v9241_v6  ;;  %v8403_v8 = vpop.f32.mrb[85].mxu0 }
 0x4ac   : > { %9242 = vst [vmem:[#allocation30_spill] sm:$0xff] %v8403_v8  ;;  %3371 = vmatprep.mubr.f32.mxu1 %v9194_v39  ;;  %5129 = vmatpush1.bf16.msra.mxu1 %v5128_v44  ;;  %v9247_v39 = vld [vmem:[#allocation8_spill] sm:$0xff] }
 0x4ad   : > { %5130 = vmatprep.subr.bf16.mxu1 %v9099_v1  ;;  %v9248_v44 = vld [vmem:[#allocation40_spill] sm:$0xff] }
 0x4af   : > { %3372 = vmatmul.mubr.f32.gmra.mrb[60].mxu1 %v9243_v31 }
 0x4b0   : > { %3376 = vmatprep.mubr.f32.mxu1 %v9195_v5  ;;  %5132 = vmatpush1.bf16.msra.mxu1 %v5131_v33  ;;  %v9249_v5 = vld [vmem:[#allocation43_spill] sm:$0xff]  ;;  %v2630_v33 = vrot.slane %v8325_v28, 2 }
 0x4b1   : > { %5133 = vmatprep.subr.bf16.mxu1 %v9099_v1  ;;  %v9250_v1 = vld [vmem:[#allocation46_spill] sm:$0xff] }
 0x4b2   : > { %v8410_v11 = vpop.f32.mrb[86].mxu0 }
 0x4b3   : > { %9244 = vst [vmem:[#allocation31_spill] sm:$0xff] %v8410_v11  ;;  %3377 = vmatmul.mubr.f32.gmra.mrb[62].mxu1 %v9245_v45  ;;  %v8413_v49 = vpop.f32.mrb[87].mxu0  ;;  %v9262_v11 = vld [vmem:[#allocation72_spill] sm:$0xff] }
 0x4b4   : > { %9246 = vst [vmem:[#allocation32_spill] sm:$0xff] %v8413_v49  ;;  %3381 = vmatprep.mubr.f32.mxu1 %v9196_v20  ;;  %5135 = vmatpush1.bf16.msra.mxu1 %v5134_v10  ;;  %v9252_v20 = vld [vmem:[#allocation52_spill] sm:$0xff]  ;;  %v2623_v10 = vrot.slane %v8325_v28, 1 }
 0x4b5   : > { %5168 = vmatprep.subr.bf16.mxu1 %v9247_v39 }
 0x4b7   : > { %3382 = vmatmul.mubr.f32.gmra.mrb[64].mxu1 %v9248_v44 }
 0x4b8   : > { %3386 = vmatprep.mubr.f32.mxu1 %v9197_v46  ;;  %v9254_v46 = vld [vmem:[#allocation58_spill] sm:$0xff] }
 0x4bb   : > { %3387 = vmatmul.mubr.f32.gmra.mrb[66].mxu1 %v9249_v5 }
 0x4bc   : > { %3391 = vmatprep.mubr.f32.mxu1 %v9198_v35  ;;  %v9255_v35 = vld [vmem:[#allocation59_spill] sm:$0xff] }
 0x4bf   : > { %3392 = vmatmul.mubr.f32.gmra.mrb[68].mxu1 %v9250_v1 }
 0x4c0   : > { %3396 = vmatprep.mubr.f32.mxu1 %v9199_v53  ;;  %v9256_v53 = vld [vmem:[#allocation62_spill] sm:$0xff] }
 0x4c3   : > { %3397 = vmatmul.mubr.f32.gmra.mrb[70].mxu1 %v9251_v16 }
 0x4c4   : > { %3401 = vmatprep.mubr.f32.mxu1 %v9200_v27  ;;  %v9257_v27 = vld [vmem:[#allocation63_spill] sm:$0xff] }
 0x4c7   : > { %3402 = vmatmul.mubr.f32.gmra.mrb[72].mxu1 %v9252_v20 }
 0x4c8   : > { %3406 = vmatprep.mubr.f32.mxu1 %v9201_v54  ;;  %v9258_v54 = vld [vmem:[#allocation66_spill] sm:$0xff] }
 0x4cb   : > { %3407 = vmatmul.mubr.f32.gmra.mrb[74].mxu1 %v9253_v22 }
 0x4cc   : > { %3411 = vmatprep.mubr.f32.mxu1 %v8053_v9  ;;  %v9259_v9 = vld [vmem:[#allocation67_spill] sm:$0xff] }
 0x4cf   : > { %3412 = vmatmul.mubr.f32.gmra.mrb[76].mxu1 %v9254_v46 }
 0x4d0   : > { %3416 = vmatprep.mubr.f32.mxu1 %v8059_v24  ;;  %v2346_v24 = vsel %vm2229_vm11, 0.0, %v8305_v50 }
 0x4d1   : > { %v2629_v23 = vrot.slane %v2346_v24, 2  ;;  %v2622_v7 = vrot.slane %v2346_v24, 1 }
 0x4d3   : > { %3417 = vmatmul.mubr.f32.gmra.mrb[78].mxu1 %v9255_v35  ;;  %v8452_v49 = vsel %vm453_vm1, %v2629_v23, %v2630_v33  ;;  %v8456_v3 = vsel %vm340_vm0, %v2622_v7, %v2623_v10  ;;  %v9263_v7 = vld [vmem:[#allocation9_spill] sm:$0xff] }
 0x4d4   : > { %3421 = vmatprep.mubr.f32.mxu1 %v8086_v41  ;;  %v9260_v41 = vld [vmem:[#allocation71_spill] sm:$0xff] }
 0x4d7   : > { %3422 = vmatmul.mubr.f32.gmra.mrb[80].mxu1 %v9256_v53 }
 0x4d8   : > { %3426 = vmatprep.mubr.f32.mxu1 %v8092_v37  ;;  %v9261_v37 = vrot.slane %v8297_v2, 7 }
 0x4da   : > { %v2363_v32 = vsel %vm2229_vm11, %v9261_v37, 0.0 }
 0x4db   : > { %3427 = vmatmul.mubr.f32.gmra.mrb[82].mxu1 %v9257_v27  ;;  %v2632_v8 = vrot.slane %v2363_v32, 2 }
 0x4dc   : > { %3431 = vmatprep.mubr.f32.mxu1 %v8291_v0 }
 0x4dd   : > { %v8460_v2 = vsel %vm453_vm1, %v2630_v33, %v2632_v8  ;;  %v9291_v33 = vld [vmem:[#allocation47_spill] sm:$0xff] }
 0x4df   : > { %3432 = vmatmul.mubr.f32.gmra.mrb[84].mxu1 %v9258_v54 }
 0x4e0   : > { %3436 = vmatprep.mubr.f32.mxu1 %v8303_v59 }
 0x4e3   : > { %3437 = vmatmul.mubr.f32.gmra.mrb[86].mxu1 %v9259_v9 }
 0x4e4   : > { %3441 = vmatprep.mubr.f32.mxu1 %v8317_v56 }
 0x4e7   : > { %3442 = vmatmul.mubr.f32.gmra.mrb[88].mxu1 %v9260_v41 }
 0x4e8   : > { %3446 = vmatprep.mubr.f32.mxu1 %v8331_v57  ;;  %v2625_v57 = vrot.slane %v2363_v32, 1 }
 0x4ea   : > { %v8464_v37 = vsel %vm340_vm0, %v2623_v10, %v2625_v57  ;;  %v9264_v57 = vld [vmem:[#allocation10_spill] sm:$0xff] }
 0x4eb   : > { %3447 = vmatmul.mubr.f32.gmra.mrb[90].mxu1 %v9262_v11 }
 0x4ec   : > { %3451 = vmatprep.mubr.f32.mxu1 %v8452_v49 }
 0x4ef   : > { %3452 = vmatmul.mubr.f32.gmra.mrb[92].mxu1 %v8456_v3 }
 0x4f0   : > { %3456 = vmatprep.mubr.f32.mxu1 %v8460_v2 }
 0x4f3   : > { %3457 = vmatmul.mubr.f32.gmra.mrb[94].mxu1 %v8464_v37 }
 0x4f4   : > { %3526 = vmatprep.mubr.f32.mxu1 %v9219_v4  ;;  %v9282_v4 = vld [vmem:[#allocation12_spill] sm:$0xff] }
 0x4f7   : > { %4427 = vmatmul.mubr.msk.f32.vlgmr.msra.gmra.mrb[32].mxu1 %vm7491_vm13, %v7692_v60  ;;  %v9265_v60 = vld [vmem:[#allocation11_spill] sm:$0xff] }
 0x4f8   : > { %3531 = vmatprep.mubr.f32.mxu1 %v9221_v51  ;;  %5176 = vmatpush3.bf16.msra.mxu1 %v9247_v39  ;;  %v9283_v51 = vld [vmem:[#allocation15_spill] sm:$0xff] }
 0x4f9   : > { %5169 = vmatprep.subr.bf16.mxu1 %v9263_v7 }
 0x4fb   : > { %3532 = vmatmul.mubr.f32.gmra.mrb[34].mxu1 %v7711_v15  ;;  %v9266_v15 = vld [vmem:[#allocation14_spill] sm:$0xff] }
 0x4fc   : > { %3536 = vmatprep.mubr.f32.mxu1 %v9223_v12  ;;  %5177 = vmatpush3.bf16.msra.mxu1 %v9263_v7 }
 0x4fd   : > { %5170 = vmatprep.subr.bf16.mxu1 %v9264_v57 }
 0x4ff   : > { %4429 = vmatmul.mubr.msk.f32.gmra.mrb[36].mxu1 %vm7491_vm13, %v7717_v52  ;;  %v9267_v52 = vld [vmem:[#allocation16_spill] sm:$0xff] }
 0x500   : > { %3541 = vmatprep.mubr.f32.mxu1 %v9225_v19  ;;  %5178 = vmatpush3.bf16.msra.mxu1 %v9264_v57 }
 0x501   : > { %5171 = vmatprep.subr.bf16.mxu1 %v9265_v60 }
 0x503   : > { %3542 = vmatmul.mubr.f32.gmra.mrb[38].mxu1 %v7744_v18  ;;  %v9268_v18 = vld [vmem:[#allocation17_spill] sm:$0xff] }
 0x504   : > { %3546 = vmatprep.mubr.f32.mxu1 %v9227_v30  ;;  %5179 = vmatpush3.bf16.msra.mxu1 %v9265_v60  ;;  %v9292_v60 = vld [vmem:[#allocation42_spill] sm:$0xff] }
 0x505   : > { %5172 = vmatprep.subr.bf16.mxu1 %v9266_v15 }
 0x507   : > { %4431 = vmatmul.mubr.msk.f32.gmra.mrb[40].mxu1 %vm7491_vm13, %v7750_v63  ;;  %v9269_v63 = vld [vmem:[#allocation18_spill] sm:$0xff] }
 0x508   : > { %3551 = vmatprep.mubr.f32.mxu1 %v9229_v17  ;;  %5180 = vmatpush3.bf16.msra.mxu1 %v9266_v15 }
 0x509   : > { %5173 = vmatprep.subr.bf16.mxu1 %v9267_v52 }
 0x50b   : > { %3552 = vmatmul.mubr.f32.gmra.mrb[42].mxu1 %v7777_v13  ;;  %v9270_v13 = vld [vmem:[#allocation44_spill] sm:$0xff] }
 0x50c   : > { %3556 = vmatprep.mubr.f32.mxu1 %v9231_v48  ;;  %5181 = vmatpush3.bf16.msra.mxu1 %v9267_v52  ;;  %v9288_v48 = vld [vmem:[#allocation34_spill] sm:$0xff] }
 0x50d   : > { %5174 = vmatprep.subr.bf16.mxu1 %v9268_v18 }
 0x50f   : > { %4433 = vmatmul.mubr.msk.f32.gmra.mrb[44].mxu1 %vm7491_vm13, %v7783_v62  ;;  %v9271_v62 = vld [vmem:[#allocation45_spill] sm:$0xff] }
 0x510   : > { %3561 = vmatprep.mubr.f32.mxu1 %v9233_v55  ;;  %5182 = vmatpush3.bf16.msra.mxu1 %v9268_v18 }
 0x511   : > { %5175 = vmatprep.subr.bf16.mxu1 %v9269_v63 }
 0x513   : > { %3562 = vmatmul.mubr.f32.gmra.mrb[46].mxu1 %v7810_v42  ;;  %v9272_v42 = vld [vmem:[#allocation50_spill] sm:$0xff] }
 0x514   : > { %3566 = vmatprep.mubr.f32.mxu1 %v9235_v61  ;;  %5183 = vmatpush3.bf16.msra.mxu1 %v9269_v63 }
 0x517   : > { %4435 = vmatmul.mubr.msk.f32.gmra.mrb[48].mxu1 %vm7491_vm13, %v7816_v36  ;;  %v9273_v36 = vld [vmem:[#allocation51_spill] sm:$0xff] }
 0x518   : > { %3571 = vmatprep.mubr.f32.mxu1 %v9237_v14 }
 0x51b   : > { %3572 = vmatmul.mubr.f32.gmra.mrb[50].mxu1 %v7843_v58  ;;  %v9274_v58 = vld [vmem:[#allocation56_spill] sm:$0xff] }
 0x51c   : > { %3576 = vmatprep.mubr.f32.mxu1 %v9239_v26 }
 0x51f   : > { %4437 = vmatmul.mubr.msk.f32.gmra.mrb[52].mxu1 %vm7491_vm13, %v7849_v47  ;;  %v9275_v47 = vld [vmem:[#allocation57_spill] sm:$0xff] }
 0x520   : > { %3581 = vmatprep.mubr.f32.mxu1 %v9241_v6 }
 0x523   : > { %3582 = vmatmul.mubr.f32.gmra.mrb[54].mxu1 %v7876_v38  ;;  %v9276_v38 = vld [vmem:[#allocation60_spill] sm:$0xff] }
 0x524   : > { %3586 = vmatprep.mubr.f32.mxu1 %v9243_v31 }
 0x527   : > { %4439 = vmatmul.mubr.msk.f32.gmra.mrb[56].mxu1 %vm7491_vm13, %v7882_v40  ;;  %v9277_v40 = vld [vmem:[#allocation61_spill] sm:$0xff] }
 0x528   : > { %3591 = vmatprep.mubr.f32.mxu1 %v9245_v45  ;;  %v9289_v45 = vld [vmem:[#allocation41_spill] sm:$0xff] }
 0x52b   : > { %3592 = vmatmul.mubr.f32.gmra.mrb[58].mxu1 %v7909_v21  ;;  %v9278_v21 = vld [vmem:[#allocation64_spill] sm:$0xff] }
 0x52c   : > { %3596 = vmatprep.mubr.f32.mxu1 %v9248_v44 }
 0x52f   : > { %4441 = vmatmul.mubr.msk.f32.gmra.mrb[60].mxu1 %vm7491_vm13, %v7915_v25  ;;  %v9279_v25 = vld [vmem:[#allocation65_spill] sm:$0xff] }
 0x530   : > { %3601 = vmatprep.mubr.f32.mxu1 %v9249_v5 }
 0x533   : > { %3602 = vmatmul.mubr.f32.gmra.mrb[62].mxu1 %v7942_v29  ;;  %v9280_v29 = vld [vmem:[#allocation69_spill] sm:$0xff] }
 0x534   : > { %3606 = vmatprep.mubr.f32.mxu1 %v9250_v1 }
 0x537   : > { %4443 = vmatmul.mubr.msk.f32.gmra.mrb[64].mxu1 %vm7491_vm13, %v7948_v43  ;;  %v9281_v43 = vld [vmem:[#allocation13_spill] sm:$0xff] }
 0x538   : > { %3611 = vmatprep.mubr.f32.mxu1 %v9251_v16 }
 0x53b   : > { %3612 = vmatmul.mubr.f32.gmra.mrb[66].mxu1 %v9270_v13 }
 0x53c   : > { %3616 = vmatprep.mubr.f32.mxu1 %v9252_v20 }
 0x53f   : > { %4445 = vmatmul.mubr.msk.f32.gmra.mrb[68].mxu1 %vm7491_vm13, %v9271_v62 }
 0x540   : > { %3621 = vmatprep.mubr.f32.mxu1 %v9253_v22 }
 0x543   : > { %3622 = vmatmul.mubr.f32.gmra.mrb[70].mxu1 %v9272_v42 }
 0x544   : > { %3626 = vmatprep.mubr.f32.mxu1 %v9254_v46  ;;  %v9290_v46 = vld [vmem:[#allocation38_spill] sm:$0xff] }
 0x547   : > { %4447 = vmatmul.mubr.msk.f32.gmra.mrb[72].mxu1 %vm7491_vm13, %v9273_v36  ;;  %v9293_v36 = vld [vmem:[#allocation54_spill] sm:$0xff] }
 0x548   : > { %3631 = vmatprep.mubr.f32.mxu1 %v9255_v35 }
 0x54b   : > { %3632 = vmatmul.mubr.f32.gmra.mrb[74].mxu1 %v9274_v58 }
 0x54c   : > { %3636 = vmatprep.mubr.f32.mxu1 %v9256_v53 }
 0x54f   : > { %4449 = vmatmul.mubr.msk.f32.gmra.mrb[76].mxu1 %vm7491_vm13, %v9275_v47 }
 0x550   : > { %3641 = vmatprep.mubr.f32.mxu1 %v9257_v27 }
 0x553   : > { %3642 = vmatmul.mubr.f32.gmra.mrb[78].mxu1 %v9276_v38 }
 0x554   : > { %3646 = vmatprep.mubr.f32.mxu1 %v9258_v54 }
 0x557   : > { %4451 = vmatmul.mubr.msk.f32.gmra.mrb[80].mxu1 %vm7491_vm13, %v9277_v40 }
 0x558   : > { %3651 = vmatprep.mubr.f32.mxu1 %v9259_v9 }
 0x55b   : > { %3652 = vmatmul.mubr.f32.gmra.mrb[82].mxu1 %v9278_v21 }
 0x55c   : > { %3656 = vmatprep.mubr.f32.mxu1 %v9260_v41 }
 0x55f   : > { %4453 = vmatmul.mubr.msk.f32.gmra.mrb[84].mxu1 %vm7491_vm13, %v9279_v25 }
 0x560   : > { %3661 = vmatprep.mubr.f32.mxu1 %v9262_v11 }
 0x563   : > { %3662 = vmatmul.mubr.f32.gmra.mrb[86].mxu1 %v9280_v29 }
 0x564   : > { %3666 = vmatprep.mubr.f32.mxu1 %v8456_v3  ;;  %v8589_v3 = vld [vmem:[%s8900_s4] ss:$0 sm:$0xff] }
 0x567   : > { %4455 = vmatmul.mubr.msk.f32.gmra.mrb[88].mxu1 %vm7491_vm13, %v8305_v50  ;;  %v9284_v50 = vld [vmem:[#allocation53_spill] sm:$0xff] }
 0x568   : > { %3671 = vmatprep.mubr.f32.mxu1 %v8464_v37 }
 0x56b   : > { %3672 = vmatmul.mubr.f32.gmra.mrb[90].mxu1 %v8325_v28  ;;  %v9285_v28 = vld [vmem:[#allocation73_spill] sm:$0xff] }
 0x56c   : > { %3676 = vmatprep.mubr.f32.mxu1 %v9281_v43  ;;  %v9294_v43 = vld [vmem:[#allocation48_spill] sm:$0xff] }
 0x56f   : > { %4457 = vmatmul.mubr.msk.f32.gmra.mrb[92].mxu1 %vm7491_vm13, %v9282_v4 }
 0x570   : > { %3681 = vmatprep.mubr.f32.mxu1 %v9283_v51 }
 0x573   : > { %3682 = vmatmul.mubr.f32.gmra.mrb[94].mxu1 %v9282_v4 }
 0x574   : > { %4708 = vmatprep.mubr.f32.mxu1 %v8291_v0 }
 0x577   : > { %4709 = vmatmul.mubr.f32.vlgmr.msra.gmra.mrb[96].mxu1 %v8303_v59 }
 0x578   : > { %4711 = vmatprep.mubr.f32.mxu1 %v8317_v56  ;;  %v9287_v56 = vld [vmem:[#allocation37_spill] sm:$0xff] }
 0x57b   : > { %4712 = vmatmul.mubr.f32.gmra.mrb[98].mxu1 %v9284_v50 }
 0x57c   : > { %4714 = vmatprep.mubr.f32.mxu1 %v8452_v49 }
 0x57f   : > { %4715 = vmatmul.mubr.f32.gmra.mrb[100].mxu1 %v8460_v2 }
 0x580   : > { %4717 = vmatprep.mubr.f32.mxu1 %v9285_v28 }
 0x583   : > { %4718 = vmatmul.mubr.f32.gmra.mrb[102].mxu1 %v9286_v34 }
 0x5ca   : > { %v3528_v0 = vpop.f32.mrb[32].mxu1 }
 0x5cb   : > { %v5216_v59 = vadd.f32 %v8589_v3, %v3528_v0  ;;  %v3530_v19 = vpop.f32.mrb[33].mxu1 }
 0x5cc   : > { %v9295_v19 = vld [vmem:[#allocation20_spill] sm:$0xff] }
 0x5cd   : > { %v3754_v12 = vadd.f32 %v5216_v59, %v9287_v56 }
 0x5ce   : > { %v3533_v17 = vpop.f32.mrb[34].mxu1 }
 0x5cf   : > { %v5217_v49 = vadd.f32 %v8589_v3, %v3533_v17  ;;  %v3535_v30 = vpop.f32.mrb[35].mxu1  ;;  %vm3912_vm0 = vcmp.gt.f32.partialorder %v3754_v12, 0.0  ;;  %v3944_v55 = vmul.f32 0.2, %v3754_v12 }
 0x5d1   : > { %v3759_v14 = vadd.f32 %v5217_v49, %v9288_v48  ;;  %v8595_v61 = vsel %vm3912_vm0, %v3754_v12, %v3944_v55 }
 0x5d2   : > { %v3538_v6 = vpop.f32.mrb[36].mxu1  ;;  %v4008_v26 = vmul.f32 %v8595_v61, %v8595_v61 }
 0x5d3   : > { %v5218_v8 = vadd.f32 %v8589_v3, %v3538_v6  ;;  %v3540_v31 = vpop.f32.mrb[37].mxu1  ;;  %vm3913_vm1 = vcmp.gt.f32.partialorder %v3759_v14, 0.0  ;;  %v3945_v11 = vmul.f32 0.2, %v3759_v14 }
 0x5d4   : > { %4040 = vadd.xlane.f32.xlu0 %v4008_v26 }
 0x5d5   : > { %v3764_v39 = vadd.f32 %v5218_v8, %v9289_v45  ;;  %v8601_v44 = vsel %vm3913_vm1, %v3759_v14, %v3945_v11  ;;  %v9296_v14 = vld [vmem:[#allocation19_spill] sm:$0xff] }
 0x5d6   : > { %v3543_v5 = vpop.f32.mrb[38].mxu1  ;;  %v4009_v1 = vmul.f32 %v8601_v44, %v8601_v44 }
 0x5d7   : > { %v5219_v16 = vadd.f32 %v8589_v3, %v3543_v5  ;;  %v3545_v20 = vpop.f32.mrb[39].mxu1  ;;  %vm3914_vm11 = vcmp.gt.f32.partialorder %v3764_v39, 0.0  ;;  %v3946_v22 = vmul.f32 0.2, %v3764_v39  ;;  %v9297_v5 = vld [vmem:[#allocation70_spill] sm:$0xff] }
 0x5d8   : > { %4042 = vadd.xlane.f32.xlu1 %v4009_v1 }
 0x5d9   : > { %v3769_v35 = vadd.f32 %v5219_v16, %v9290_v46  ;;  %v8607_v53 = vsel %vm3914_vm11, %v3764_v39, %v3946_v22 }
 0x5da   : > { %v3548_v27 = vpop.f32.mrb[40].mxu1  ;;  %v4010_v54 = vmul.f32 %v8607_v53, %v8607_v53 }
 0x5db   : > { %v5220_v9 = vadd.f32 %v8589_v3, %v3548_v27  ;;  %v3550_v24 = vpop.f32.mrb[41].mxu1  ;;  %vm3915_vm13 = vcmp.gt.f32.partialorder %v3769_v35, 0.0  ;;  %v3947_v41 = vmul.f32 0.2, %v3769_v35 }
 0x5dc   : > { %4044 = vadd.xlane.f32.xlu0 %v4010_v54  ;;  %v9298_v54 = vld [vmem:[#allocation68_spill] sm:$0xff] }
 0x5dd   : > { %v3774_v32 = vadd.f32 %v5220_v9, %v9291_v33  ;;  %v8613_v23 = vsel %vm3915_vm13, %v3769_v35, %v3947_v41 }
 0x5de   : > { %v3553_v10 = vpop.f32.mrb[42].mxu1  ;;  %v4011_v2 = vmul.f32 %v8613_v23, %v8613_v23 }
 0x5df   : > { %v5221_v37 = vadd.f32 %v8589_v3, %v3553_v10  ;;  %v3555_v7 = vpop.f32.mrb[43].mxu1  ;;  %vm3916_vm10 = vcmp.gt.f32.partialorder %v3774_v32, 0.0  ;;  %v3948_v57 = vmul.f32 0.2, %v3774_v32 }
 0x5e0   : > { %4046 = vadd.xlane.f32.xlu1 %v4011_v2 }
 0x5e1   : > { %v3779_v15 = vadd.f32 %v5221_v37, %v9292_v60  ;;  %v8619_v52 = vsel %vm3916_vm10, %v3774_v32, %v3948_v57  ;;  %v9299_v37 = vld [vmem:[#allocation22_spill] sm:$0xff] }
 0x5e2   : > { %v3558_v18 = vpop.f32.mrb[44].mxu1  ;;  %v4012_v63 = vmul.f32 %v8619_v52, %v8619_v52 }
 0x5e3   : > { %v5222_v13 = vadd.f32 %v8589_v3, %v3558_v18  ;;  %v3560_v62 = vpop.f32.mrb[45].mxu1  ;;  %vm3917_vm12 = vcmp.gt.f32.partialorder %v3779_v15, 0.0  ;;  %v3949_v42 = vmul.f32 0.2, %v3779_v15 }
 0x5e4   : > { %4048 = vadd.xlane.f32.xlu0 %v4012_v63  ;;  %v9300_v62 = vld [vmem:[#allocation21_spill] sm:$0xff] }
 0x5e5   : > { %v3784_v58 = vadd.f32 %v5222_v13, %v9293_v36  ;;  %v8625_v47 = vsel %vm3917_vm12, %v3779_v15, %v3949_v42 }
 0x5e6   : > { %v3563_v38 = vpop.f32.mrb[46].mxu1  ;;  %v4013_v40 = vmul.f32 %v8625_v47, %v8625_v47 }
 0x5e7   : > { %v5223_v21 = vadd.f32 %v8589_v3, %v3563_v38  ;;  %v3565_v25 = vpop.f32.mrb[47].mxu1  ;;  %vm3918_vm14 = vcmp.gt.f32.partialorder %v3784_v58, 0.0  ;;  %v3950_v29 = vmul.f32 0.2, %v3784_v58 }
 0x5e8   : > { %4050 = vadd.xlane.f32.xlu1 %v4013_v40 }
 0x5e9   : > { %v3789_v4 = vadd.f32 %v5223_v21, %v9294_v43  ;;  %v8631_v51 = vsel %vm3918_vm14, %v3784_v58, %v3950_v29  ;;  %v9301_v29 = vld [vmem:[#allocation24_spill] sm:$0xff] }
 0x5ea   : > { %v3568_v50 = vpop.f32.mrb[48].mxu1  ;;  %v4014_v28 = vmul.f32 %v8631_v51, %v8631_v51 }
 0x5eb   : > { %v5224_v34 = vadd.f32 %v8589_v3, %v3568_v50  ;;  %v3570_v0 = vpop.f32.mrb[49].mxu1  ;;  %vm3919_vm15 = vcmp.gt.f32.partialorder %v3789_v4, 0.0  ;;  %v3951_v59 = vmul.f32 0.2, %v3789_v4 }
 0x5ec   : > { %4052 = vadd.xlane.f32.xlu0 %v4014_v28 }
 0x5ed   : > { %v3794_v56 = vadd.f32 %v5224_v34, %v9295_v19  ;;  %v8637_v12 = vsel %vm3919_vm15, %v3789_v4, %v3951_v59  ;;  %v9302_v19 = vld [vmem:[#allocation23_spill] sm:$0xff] }
 0x5ee   : > { %v3573_v17 = vpop.f32.mrb[50].mxu1  ;;  %v4015_v49 = vmul.f32 %v8637_v12, %v8637_v12 }
 0x5ef   : > { %v5225_v30 = vadd.f32 %v8589_v3, %v3573_v17  ;;  %v3575_v55 = vpop.f32.mrb[51].mxu1  ;;  %vm3920_vm2 = vcmp.gt.f32.partialorder %v3794_v56, 0.0  ;;  %v3952_v48 = vmul.f32 0.2, %v3794_v56 }
 0x5f0   : > { %4054 = vadd.xlane.f32.xlu1 %v4015_v49 }
 0x5f1   : > { %v3799_v6 = vadd.f32 %v5225_v30, %v9296_v14  ;;  %v8643_v26 = vsel %vm3920_vm2, %v3794_v56, %v3952_v48 }
 0x5f2   : > { %v3578_v8 = vpop.f32.mrb[52].mxu1  ;;  %v4016_v31 = vmul.f32 %v8643_v26, %v8643_v26 }
 0x5f3   : > { %v5226_v11 = vadd.f32 %v8589_v3, %v3578_v8  ;;  %v3580_v45 = vpop.f32.mrb[53].mxu1  ;;  %vm3921_vm3 = vcmp.gt.f32.partialorder %v3799_v6, 0.0  ;;  %v3953_v39 = vmul.f32 0.2, %v3799_v6 }
 0x5f4   : > { %4056 = vadd.xlane.f32.xlu0 %v4016_v31 }
 0x5f5   : > { %v3804_v1 = vadd.f32 %v5226_v11, %v9297_v5  ;;  %v8649_v16 = vsel %vm3921_vm3, %v3799_v6, %v3953_v39  ;;  %v9303_v6 = vld [vmem:[#allocation26_spill] sm:$0xff] }
 0x5f6   : > { %v3583_v20 = vpop.f32.mrb[54].mxu1  ;;  %v4017_v22 = vmul.f32 %v8649_v16, %v8649_v16 }
 0x5f7   : > { %v5227_v46 = vadd.f32 %v8589_v3, %v3583_v20  ;;  %v3585_v35 = vpop.f32.mrb[55].mxu1  ;;  %vm3922_vm4 = vcmp.gt.f32.partialorder %v3804_v1, 0.0  ;;  %v3954_v27 = vmul.f32 0.2, %v3804_v1  ;;  %v9304_v20 = vld [vmem:[#allocation25_spill] sm:$0xff] }
 0x5f8   : > { %4058 = vadd.xlane.f32.xlu1 %v4017_v22 }
 0x5f9   : > { %v3809_v9 = vadd.f32 %v5227_v46, %v9298_v54  ;;  %v8655_v24 = vsel %vm3922_vm4, %v3804_v1, %v3954_v27 }
 0x5fa   : > { %v3588_v41 = vpop.f32.mrb[56].mxu1  ;;  %v4018_v33 = vmul.f32 %v8655_v24, %v8655_v24 }
 0x5fb   : > { %v5228_v32 = vadd.f32 %v8589_v3, %v3588_v41  ;;  %v3590_v10 = vpop.f32.mrb[57].mxu1  ;;  %vm3923_vm5 = vcmp.gt.f32.partialorder %v3809_v9, 0.0  ;;  %v3955_v2 = vmul.f32 0.2, %v3809_v9 }
 0x5fc   : > { %4060 = vadd.xlane.f32.xlu0 %v4018_v33  ;;  %v9305_v33 = vld [vmem:[#allocation28_spill] sm:$0xff] }
 0x5fd   : > { %v3814_v7 = vadd.f32 %v5228_v32, %v9299_v37  ;;  %v8661_v57 = vsel %vm3923_vm5, %v3809_v9, %v3955_v2 }
 0x5fe   : > { %v3593_v60 = vpop.f32.mrb[58].mxu1  ;;  %v4019_v15 = vmul.f32 %v8661_v57, %v8661_v57 }
 0x5ff   : > { %v5229_v18 = vadd.f32 %v8589_v3, %v3593_v60  ;;  %v3595_v63 = vpop.f32.mrb[59].mxu1  ;;  %vm3924_vm6 = vcmp.gt.f32.partialorder %v3814_v7, 0.0  ;;  %v3956_v13 = vmul.f32 0.2, %v3814_v7 }
 0x600   : > { %4062 = vadd.xlane.f32.xlu1 %v4019_v15 }
 0x601   : > { %v3819_v42 = vadd.f32 %v5229_v18, %v9300_v62  ;;  %v8667_v36 = vsel %vm3924_vm6, %v3814_v7, %v3956_v13  ;;  %v9306_v18 = vld [vmem:[#allocation27_spill] sm:$0xff] }
 0x602   : > { %v3598_v58 = vpop.f32.mrb[60].mxu1  ;;  %v4020_v38 = vmul.f32 %v8667_v36, %v8667_v36 }
 0x603   : > { %v5230_v40 = vadd.f32 %v8589_v3, %v3598_v58  ;;  %v3600_v21 = vpop.f32.mrb[61].mxu1  ;;  %vm3925_vm7 = vcmp.gt.f32.partialorder %v3819_v42, 0.0  ;;  %v3957_v25 = vmul.f32 0.2, %v3819_v42 }
 0x604   : > { %4064 = vadd.xlane.f32.xlu0 %v4020_v38  ;;  %v9307_v21 = vld [vmem:[#allocation30_spill] sm:$0xff] }
 0x605   : > { %v3824_v43 = vadd.f32 %v5230_v40, %v9301_v29  ;;  %v8673_v4 = vsel %vm3925_vm7, %v3819_v42, %v3957_v25 }
 0x606   : > { %v3603_v50 = vpop.f32.mrb[62].mxu1  ;;  %v4021_v28 = vmul.f32 %v8673_v4, %v8673_v4 }
 0x607   : > { %v5231_v34 = vadd.f32 %v8589_v3, %v3603_v50  ;;  %v3605_v0 = vpop.f32.mrb[63].mxu1  ;;  %vm3926_vm8 = vcmp.gt.f32.partialorder %v3824_v43, 0.0  ;;  %v3958_v59 = vmul.f32 0.2, %v3824_v43 }
 0x608   : > { %4066 = vadd.xlane.f32.xlu1 %v4021_v28 }
 0x609   : > { %v3829_v56 = vadd.f32 %v5231_v34, %v9302_v19  ;;  %v8679_v17 = vsel %vm3926_vm8, %v3824_v43, %v3958_v59  ;;  %v9308_v59 = vld [vmem:[#allocation29_spill] sm:$0xff] }
 0x60a   : > { %v3608_v49 = vpop.f32.mrb[64].mxu1  ;;  %v4022_v30 = vmul.f32 %v8679_v17, %v8679_v17 }
 0x60b   : > { %v5232_v55 = vadd.f32 %v8589_v3, %v3608_v49  ;;  %v3610_v48 = vpop.f32.mrb[65].mxu1  ;;  %vm3927_vm9 = vcmp.gt.f32.partialorder %v3829_v56, 0.0  ;;  %v3959_v14 = vmul.f32 0.2, %v3829_v56 }
 0x60c   : > { %4068 = vadd.xlane.f32.xlu0 %v4022_v30 }
 0x60d   : > { %v3834_v8 = vadd.f32 %v5232_v55, %v9303_v6  ;;  %v8685_v31 = vsel %vm3927_vm9, %v3829_v56, %v3959_v14  ;;  %v9309_v6 = vld [vmem:[#allocation32_spill] sm:$0xff] }
 0x60e   : > { %v3613_v11 = vpop.f32.mrb[66].mxu1  ;;  %v4023_v45 = vmul.f32 %v8685_v31, %v8685_v31 }
 0x60f   : > { %v5233_v39 = vadd.f32 %v8589_v3, %v3613_v11  ;;  %v3615_v5 = vpop.f32.mrb[67].mxu1  ;;  %vm3928_vm0 = vcmp.gt.f32.partialorder %v3834_v8, 0.0  ;;  %v3960_v1 = vmul.f32 0.2, %v3834_v8 }
 0x610   : > { %4070 = vadd.xlane.f32.xlu1 %v4023_v45 }
 0x611   : > { %v3839_v22 = vadd.f32 %v5233_v39, %v9304_v20  ;;  %v8691_v46 = vsel %vm3928_vm0, %v3834_v8, %v3960_v1 }
 0x612   : > { %v3618_v35 = vpop.f32.mrb[68].mxu1  ;;  %v4024_v27 = vmul.f32 %v8691_v46, %v8691_v46 }
 0x613   : > { %v5234_v54 = vadd.f32 %v8589_v3, %v3618_v35  ;;  %v3620_v9 = vpop.f32.mrb[69].mxu1  ;;  %vm3929_vm1 = vcmp.gt.f32.partialorder %v3839_v22, 0.0  ;;  %v3961_v41 = vmul.f32 0.2, %v3839_v22 }
 0x614   : > { %4072 = vadd.xlane.f32.xlu0 %v4024_v27 }
 0x615   : > { %v3844_v32 = vadd.f32 %v5234_v54, %v9305_v33  ;;  %v8697_v10 = vsel %vm3929_vm1, %v3839_v22, %v3961_v41  ;;  %v9310_v22 = vld [vmem:[#allocation31_spill] sm:$0xff] }
 0x616   : > { %v3623_v2 = vpop.f32.mrb[70].mxu1  ;;  %v4025_v37 = vmul.f32 %v8697_v10, %v8697_v10 }
 0x617   : > { %v5235_v7 = vadd.f32 %v8589_v3, %v3623_v2  ;;  %v3625_v60 = vpop.f32.mrb[71].mxu1  ;;  %vm3930_vm11 = vcmp.gt.f32.partialorder %v3844_v32, 0.0  ;;  %v3962_v15 = vmul.f32 0.2, %v3844_v32 }
 0x618   : > { %4074 = vadd.xlane.f32.xlu1 %v4025_v37 }
 0x619   : > { %v3849_v63 = vadd.f32 %v5235_v7, %v9306_v18  ;;  %v8703_v13 = vsel %vm3930_vm11, %v3844_v32, %v3962_v15 }
 0x61a   : > { %v3628_v62 = vpop.f32.mrb[72].mxu1  ;;  %v4026_v42 = vmul.f32 %v8703_v13, %v8703_v13 }
 0x61b   : > { %v5236_v58 = vadd.f32 %v8589_v3, %v3628_v62  ;;  %v3630_v38 = vpop.f32.mrb[73].mxu1  ;;  %vm3931_vm13 = vcmp.gt.f32.partialorder %v3849_v63, 0.0  ;;  %v3963_v40 = vmul.f32 0.2, %v3849_v63 }
 0x61c   : > { %4076 = vadd.xlane.f32.xlu0 %v4026_v42 }
 0x61d   : > { %v3854_v25 = vadd.f32 %v5236_v58, %v9307_v21  ;;  %v8709_v29 = vsel %vm3931_vm13, %v3849_v63, %v3963_v40 }
 0x61e   : > { %v3633_v43 = vpop.f32.mrb[74].mxu1  ;;  %v4027_v50 = vmul.f32 %v8709_v29, %v8709_v29 }
 0x61f   : > { %v5237_v28 = vadd.f32 %v8589_v3, %v3633_v43  ;;  %v3635_v34 = vpop.f32.mrb[75].mxu1  ;;  %vm3932_vm10 = vcmp.gt.f32.partialorder %v3854_v25, 0.0  ;;  %v3964_v0 = vmul.f32 0.2, %v3854_v25 }
 0x620   : > { %4078 = vadd.xlane.f32.xlu1 %v4027_v50 }
 0x621   : > { %v3859_v19 = vadd.f32 %v5237_v28, %v9308_v59  ;;  %v8715_v56 = vsel %vm3932_vm10, %v3854_v25, %v3964_v0 }
 0x622   : > { %v3638_v49 = vpop.f32.mrb[76].mxu1  ;;  %v4028_v30 = vmul.f32 %v8715_v56, %v8715_v56 }
 0x623   : > { %v5238_v55 = vadd.f32 %v8589_v3, %v3638_v49  ;;  %v3640_v48 = vpop.f32.mrb[77].mxu1  ;;  %vm3933_vm12 = vcmp.gt.f32.partialorder %v3859_v19, 0.0  ;;  %v3965_v14 = vmul.f32 0.2, %v3859_v19 }
 0x624   : > { %4080 = vadd.xlane.f32.xlu0 %v4028_v30 }
 0x625   : > { %v3864_v8 = vadd.f32 %v5238_v55, %v9309_v6  ;;  %v8721_v11 = vsel %vm3933_vm12, %v3859_v19, %v3965_v14 }
 0x626   : > { %v3643_v45 = vpop.f32.mrb[78].mxu1  ;;  %v4029_v39 = vmul.f32 %v8721_v11, %v8721_v11 }
 0x627   : > { %v5239_v5 = vadd.f32 %v8589_v3, %v3643_v45  ;;  %v3645_v1 = vpop.f32.mrb[79].mxu1  ;;  %vm3934_vm14 = vcmp.gt.f32.partialorder %v3864_v8, 0.0  ;;  %v3966_v20 = vmul.f32 0.2, %v3864_v8 }
 0x628   : > { %4082 = vadd.xlane.f32.xlu1 %v4029_v39 }
 0x629   : > { %v3869_v35 = vadd.f32 %v5239_v5, %v9310_v22  ;;  %v8727_v27 = vsel %vm3934_vm14, %v3864_v8, %v3966_v20 }
 0x62a   : > { %v3648_v54 = vpop.f32.mrb[80].mxu1  ;;  %v4030_v9 = vmul.f32 %v8727_v27, %v8727_v27 }
 0x62b   : > { %v3650_v41 = vpop.f32.mrb[81].mxu1  ;;  %vm3935_vm15 = vcmp.gt.f32.partialorder %v3869_v35, 0.0  ;;  %v3967_v33 = vmul.f32 0.2, %v3869_v35  ;;  %v5240_v28 = vadd.f32 %v8589_v3, %v3648_v54 }
 0x62c   : > { %4084 = vadd.xlane.f32.xlu0 %v4030_v9 }
 0x62d   : > { %v8731_v32 = vsel %vm3935_vm15, %v3869_v35, %v3967_v33 }
 0x62e   : > { %v3653_v2 = vpop.f32.mrb[82].mxu1  ;;  %v4031_v37 = vmul.f32 %v8731_v32, %v8731_v32 }
 0x62f   : > { %v3655_v7 = vpop.f32.mrb[83].mxu1  ;;  %v5241_v50 = vadd.f32 %v8589_v3, %v3653_v2 }
 0x630   : > { %4086 = vadd.xlane.f32.xlu1 %v4031_v37 }
 0x632   : > { %v3658_v60 = vpop.f32.mrb[84].mxu1 }
 0x633   : > { %v3660_v15 = vpop.f32.mrb[85].mxu1  ;;  %v5242_v55 = vadd.f32 %v8589_v3, %v3658_v60 }
 0x636   : > { %v3663_v18 = vpop.f32.mrb[86].mxu1 }
 0x637   : > { %v3665_v63 = vpop.f32.mrb[87].mxu1  ;;  %v5243_v49 = vadd.f32 %v8589_v3, %v3663_v18 }
 0x63a   : > { %v3668_v62 = vpop.f32.mrb[88].mxu1 }
 0x63b   : > { %v3670_v42 = vpop.f32.mrb[89].mxu1  ;;  %v5244_v54 = vadd.f32 %v8589_v3, %v3668_v62 }
 0x63e   : > { %v3673_v58 = vpop.f32.mrb[90].mxu1 }
 0x63f   : > { %v3675_v38 = vpop.f32.mrb[91].mxu1  ;;  %v5245_v20 = vadd.f32 %v8589_v3, %v3673_v58 }
 0x642   : > { %v3678_v40 = vpop.f32.mrb[92].mxu1 }
 0x643   : > { %v3680_v21 = vpop.f32.mrb[93].mxu1  ;;  %v5246_v42 = vadd.f32 %v8589_v3, %v3678_v40 }
 0x646   : > { %v3683_v25 = vpop.f32.mrb[94].mxu1 }
 0x647   : > { %v3685_v43 = vpop.f32.mrb[95].mxu1  ;;  %v5247_v18 = vadd.f32 %v8589_v3, %v3683_v25 }
 0x64a   : > { %v4710_v34 = vpop.f32.mrb[96].mxu1 }
 0x64b   : > { %v3879_v0 = vadd.f32 %v5241_v50, %v4710_v34  ;;  %v3873_v59 = vpop.f32.mrb[97].mxu1 }
 0x64c   : > { %v3874_v19 = vadd.f32 %v5240_v28, %v3873_v59 }
 0x64d   : > { %v3969_v30 = vmul.f32 0.2, %v3879_v0  ;;  %vm3937_vm2 = vcmp.gt.f32.partialorder %v3879_v0, 0.0 }
 0x64e   : > { %v3968_v48 = vmul.f32 0.2, %v3874_v19  ;;  %v4713_v14 = vpop.f32.mrb[98].mxu1  ;;  %vm3936_vm3 = vcmp.gt.f32.partialorder %v3874_v19, 0.0 }
 0x64f   : > { %v3889_v6 = vadd.f32 %v5243_v49, %v4713_v14  ;;  %v3883_v8 = vpop.f32.mrb[99].mxu1  ;;  %v8739_v45 = vsel %vm3937_vm2, %v3879_v0, %v3969_v30 }
 0x650   : > { %v3884_v39 = vadd.f32 %v5242_v55, %v3883_v8  ;;  %v4033_v5 = vmul.f32 %v8739_v45, %v8739_v45  ;;  %v8743_v1 = vsel %vm3936_vm3, %v3874_v19, %v3968_v48 }
 0x651   : > { %v3971_v22 = vmul.f32 0.2, %v3889_v6  ;;  %v4032_v35 = vmul.f32 %v8743_v1, %v8743_v1  ;;  %vm3939_vm4 = vcmp.gt.f32.partialorder %v3889_v6, 0.0 }
 0x652   : > { %v3970_v9 = vmul.f32 0.2, %v3884_v39  ;;  %v4716_v41 = vpop.f32.mrb[100].mxu1  ;;  %4090 = vadd.xlane.f32.xlu1 %v4033_v5  ;;  %vm3938_vm5 = vcmp.gt.f32.partialorder %v3884_v39, 0.0 }
 0x653   : > { %v3899_v33 = vadd.f32 %v5245_v20, %v4716_v41  ;;  %v3893_v2 = vpop.f32.mrb[101].mxu1  ;;  %4088 = vadd.xlane.f32.xlu0 %v4032_v35  ;;  %v8749_v37 = vsel %vm3939_vm4, %v3889_v6, %v3971_v22 }
 0x654   : > { %v3894_v7 = vadd.f32 %v5244_v54, %v3893_v2  ;;  %v4035_v60 = vmul.f32 %v8749_v37, %v8749_v37  ;;  %v8753_v15 = vsel %vm3938_vm5, %v3884_v39, %v3970_v9 }
 0x655   : > { %v3973_v63 = vmul.f32 0.2, %v3899_v33  ;;  %v4034_v62 = vmul.f32 %v8753_v15, %v8753_v15  ;;  %vm3941_vm6 = vcmp.gt.f32.partialorder %v3899_v33, 0.0 }
 0x656   : > { %v3972_v58 = vmul.f32 0.2, %v3894_v7  ;;  %v4719_v38 = vpop.f32.mrb[102].mxu1  ;;  %4094 = vadd.xlane.f32.xlu1 %v4035_v60  ;;  %vm3940_vm7 = vcmp.gt.f32.partialorder %v3894_v7, 0.0 }
 0x657   : > { %v3909_v21 = vadd.f32 %v5247_v18, %v4719_v38  ;;  %v3903_v43 = vpop.f32.mrb[103].mxu1  ;;  %4092 = vadd.xlane.f32.xlu0 %v4034_v62  ;;  %v8759_v50 = vsel %vm3941_vm6, %v3899_v33, %v3973_v63 }
 0x658   : > { %v3904_v28 = vadd.f32 %v5246_v42, %v3903_v43  ;;  %v4037_v25 = vmul.f32 %v8759_v50, %v8759_v50  ;;  %v8763_v34 = vsel %vm3940_vm7, %v3894_v7, %v3972_v58 }
 0x659   : > { %v3975_v0 = vmul.f32 0.2, %v3909_v21  ;;  %v4036_v59 = vmul.f32 %v8763_v34, %v8763_v34  ;;  %vm3943_vm8 = vcmp.gt.f32.partialorder %v3909_v21, 0.0 }
 0x65a   : > { %v3974_v3 = vmul.f32 0.2, %v3904_v28  ;;  %4098 = vadd.xlane.f32.xlu1 %v4037_v25  ;;  %vm3942_vm9 = vcmp.gt.f32.partialorder %v3904_v28, 0.0 }
 0x65b   : > { %4096 = vadd.xlane.f32.xlu0 %v4036_v59  ;;  %v8767_v40 = vsel %vm3943_vm8, %v3909_v21, %v3975_v0 }
 0x65c   : > { %v4039_v19 = vmul.f32 %v8767_v40, %v8767_v40  ;;  %v8771_v49 = vsel %vm3942_vm9, %v3904_v28, %v3974_v3 }
 0x65d   : > { %v4038_v30 = vmul.f32 %v8771_v49, %v8771_v49 }
 0x65e   : > { %4102 = vadd.xlane.f32.xlu1 %v4039_v19 }
 0x65f   : > { %4100 = vadd.xlane.f32.xlu0 %v4038_v30 }
 0x661   : > { %v4041_v55 = vpop.xlane.xlu0 %4040 }
 0x662   : > { %v4104_v48 = vmul.f32 0.125, %v4041_v55 }
 0x664   : > { %v4136_v14 = vadd.f32 1e-08, %v4104_v48 }
 0x665   : > { %v4043_v6 = vpop.xlane.xlu1 %4042 }
 0x666   : > { %5753 = vrsqrt.f32 %v4136_v14  ;;  %v4105_v8 = vmul.f32 0.125, %v4043_v6 }
 0x668   : > { %v4137_v39 = vadd.f32 1e-08, %v4105_v8 }
 0x669   : > { %v4045_v5 = vpop.xlane.xlu0 %4044 }
 0x66a   : > { %5755 = vrsqrt.f32 %v4137_v39  ;;  %v4106_v20 = vmul.f32 0.125, %v4045_v5 }
 0x66c   : > { %v4138_v22 = vadd.f32 1e-08, %v4106_v20 }
 0x66d   : > { %v4047_v35 = vpop.xlane.xlu1 %4046 }
 0x66e   : > { %5757 = vrsqrt.f32 %v4138_v22  ;;  %v4107_v54 = vmul.f32 0.125, %v4047_v35 }
 0x670   : > { %v5754_v9 = vpop.eup %5753  ;;  %v4139_v41 = vadd.f32 1e-08, %v4107_v54 }
 0x671   : > { %v4200_v33 = vmul.f32 %v5754_v9, %v8595_v61  ;;  %v4049_v2 = vpop.xlane.xlu0 %4048 }
 0x672   : > { %5759 = vrsqrt.f32 %v4139_v41  ;;  %v4108_v7 = vmul.f32 0.125, %v4049_v2 }
 0x673   : > { %4232 = vst [vmem:[%s8779_s17] sm:$0xff] %v4200_v33 }
 0x674   : > { %v5756_v60 = vpop.eup %5755  ;;  %v4140_v18 = vadd.f32 1e-08, %v4108_v7 }
 0x675   : > { %v4201_v63 = vmul.f32 %v5756_v60, %v8601_v44  ;;  %v4051_v62 = vpop.xlane.xlu1 %4050 }
 0x676   : > { %5761 = vrsqrt.f32 %v4140_v18  ;;  %v4109_v42 = vmul.f32 0.125, %v4051_v62 }
 0x677   : > { %4233 = vst [vmem:[%s8779_s17 + $0x8] sm:$0xff] %v4201_v63 }
 0x678   : > { %v5758_v58 = vpop.eup %5757  ;;  %v4141_v61 = vadd.f32 1e-08, %v4109_v42 }
 0x679   : > { %v4202_v38 = vmul.f32 %v5758_v58, %v8607_v53  ;;  %v4053_v21 = vpop.xlane.xlu0 %4052 }
 0x67a   : > { %5763 = vrsqrt.f32 %v4141_v61  ;;  %v4110_v43 = vmul.f32 0.125, %v4053_v21 }
 0x67b   : > { %4234 = vst [vmem:[%s8779_s17 + $0x10] sm:$0xff] %v4202_v38 }
 0x67c   : > { %v5760_v28 = vpop.eup %5759  ;;  %v4142_v25 = vadd.f32 1e-08, %v4110_v43 }
 0x67d   : > { %v4203_v0 = vmul.f32 %v5760_v28, %v8613_v23  ;;  %v4055_v59 = vpop.xlane.xlu1 %4054 }
 0x67e   : > { %5765 = vrsqrt.f32 %v4142_v25  ;;  %v4111_v44 = vmul.f32 0.125, %v4055_v59 }
 0x67f   : > { %4235 = vst [vmem:[%s8779_s17 + $0x18] sm:$0xff] %v4203_v0 }
 0x680   : > { %v5762_v3 = vpop.eup %5761  ;;  %v4143_v19 = vadd.f32 1e-08, %v4111_v44 }
 0x681   : > { %v4204_v30 = vmul.f32 %v5762_v3, %v8619_v52  ;;  %v4057_v55 = vpop.xlane.xlu0 %4056 }
 0x682   : > { %5767 = vrsqrt.f32 %v4143_v19  ;;  %v4112_v53 = vmul.f32 0.125, %v4057_v55 }
 0x683   : > { %4236 = vst [vmem:[%s8779_s17 + $0x20] sm:$0xff] %v4204_v30 }
 0x684   : > { %v5764_v48 = vpop.eup %5763  ;;  %v4144_v14 = vadd.f32 1e-08, %v4112_v53 }
 0x685   : > { %v4205_v6 = vmul.f32 %v5764_v48, %v8625_v47  ;;  %v4059_v8 = vpop.xlane.xlu1 %4058 }
 0x686   : > { %5769 = vrsqrt.f32 %v4144_v14  ;;  %v4113_v23 = vmul.f32 0.125, %v4059_v8 }
 0x687   : > { %4237 = vst [vmem:[%s8779_s17 + $0x28] sm:$0xff] %v4205_v6 }
 0x688   : > { %v5766_v39 = vpop.eup %5765  ;;  %v4145_v5 = vadd.f32 1e-08, %v4113_v23 }
 0x689   : > { %v4206_v20 = vmul.f32 %v5766_v39, %v8631_v51  ;;  %v4061_v22 = vpop.xlane.xlu0 %4060 }
 0x68a   : > { %5771 = vrsqrt.f32 %v4145_v5  ;;  %v4114_v52 = vmul.f32 0.125, %v4061_v22 }
 0x68b   : > { %4238 = vst [vmem:[%s8779_s17 + $0x30] sm:$0xff] %v4206_v20 }
 0x68c   : > { %v5768_v35 = vpop.eup %5767  ;;  %v4146_v54 = vadd.f32 1e-08, %v4114_v52 }
 0x68d   : > { %v4207_v9 = vmul.f32 %v5768_v35, %v8637_v12  ;;  %v4063_v41 = vpop.xlane.xlu1 %4062 }
 0x68e   : > { %5773 = vrsqrt.f32 %v4146_v54  ;;  %v4115_v47 = vmul.f32 0.125, %v4063_v41 }
 0x68f   : > { %4239 = vst [vmem:[%s8779_s17 + $0x38] sm:$0xff] %v4207_v9 }
 0x690   : > { %v5770_v33 = vpop.eup %5769  ;;  %v4147_v2 = vadd.f32 1e-08, %v4115_v47 }
 0x691   : > { %v4208_v7 = vmul.f32 %v5770_v33, %v8643_v26  ;;  %v4065_v60 = vpop.xlane.xlu0 %4064 }
 0x692   : > { %5775 = vrsqrt.f32 %v4147_v2  ;;  %v4116_v51 = vmul.f32 0.125, %v4065_v60 }
 0x693   : > { %4240 = vst [vmem:[%s8779_s17 + $0x40] sm:$0xff] %v4208_v7 }
 0x694   : > { %v5772_v18 = vpop.eup %5771  ;;  %v4148_v63 = vadd.f32 1e-08, %v4116_v51 }
 0x695   : > { %v4209_v62 = vmul.f32 %v5772_v18, %v8649_v16  ;;  %v4067_v42 = vpop.xlane.xlu1 %4066 }
 0x696   : > { %5777 = vrsqrt.f32 %v4148_v63  ;;  %v4117_v12 = vmul.f32 0.125, %v4067_v42 }
 0x697   : > { %4241 = vst [vmem:[%s8779_s17 + $0x48] sm:$0xff] %v4209_v62 }
 0x698   : > { %v5774_v58 = vpop.eup %5773  ;;  %v4149_v61 = vadd.f32 1e-08, %v4117_v12 }
 0x699   : > { %v4210_v38 = vmul.f32 %v5774_v58, %v8655_v24  ;;  %v4069_v21 = vpop.xlane.xlu0 %4068 }
 0x69a   : > { %5779 = vrsqrt.f32 %v4149_v61  ;;  %v4118_v26 = vmul.f32 0.125, %v4069_v21 }
 0x69b   : > { %4242 = vst [vmem:[%s8779_s17 + $0x50] sm:$0xff] %v4210_v38 }
 0x69c   : > { %v5776_v43 = vpop.eup %5775  ;;  %v4150_v28 = vadd.f32 1e-08, %v4118_v26 }
 0x69d   : > { %v4211_v25 = vmul.f32 %v5776_v43, %v8661_v57  ;;  %v4071_v0 = vpop.xlane.xlu1 %4070 }
 0x69e   : > { %5781 = vrsqrt.f32 %v4150_v28  ;;  %v4119_v16 = vmul.f32 0.125, %v4071_v0 }
 0x69f   : > { %4243 = vst [vmem:[%s8779_s17 + $0x58] sm:$0xff] %v4211_v25 }
 0x6a0   : > { %v5778_v59 = vpop.eup %5777  ;;  %v4151_v44 = vadd.f32 1e-08, %v4119_v16 }
 0x6a1   : > { %v4212_v3 = vmul.f32 %v5778_v59, %v8667_v36  ;;  %v4073_v19 = vpop.xlane.xlu0 %4072 }
 0x6a2   : > { %5783 = vrsqrt.f32 %v4151_v44  ;;  %v4120_v24 = vmul.f32 0.125, %v4073_v19 }
 0x6a3   : > { %4244 = vst [vmem:[%s8779_s17 + $0x60] sm:$0xff] %v4212_v3 }
 0x6a4   : > { %v5780_v30 = vpop.eup %5779  ;;  %v4152_v55 = vadd.f32 1e-08, %v4120_v24 }
 0x6a5   : > { %v4213_v53 = vmul.f32 %v5780_v30, %v8673_v4  ;;  %v4075_v48 = vpop.xlane.xlu1 %4074 }
 0x6a6   : > { %5785 = vrsqrt.f32 %v4152_v55  ;;  %v4121_v57 = vmul.f32 0.125, %v4075_v48 }
 0x6a7   : > { %4245 = vst [vmem:[%s8779_s17 + $0x68] sm:$0xff] %v4213_v53 }
 0x6a8   : > { %v5782_v14 = vpop.eup %5781  ;;  %v4153_v6 = vadd.f32 1e-08, %v4121_v57 }
 0x6a9   : > { %v4214_v8 = vmul.f32 %v5782_v14, %v8679_v17  ;;  %v4077_v23 = vpop.xlane.xlu0 %4076 }
 0x6aa   : > { %5787 = vrsqrt.f32 %v4153_v6  ;;  %v4122_v36 = vmul.f32 0.125, %v4077_v23 }
 0x6ab   : > { %4246 = vst [vmem:[%s8779_s17 + $0x70] sm:$0xff] %v4214_v8 }
 0x6ac   : > { %v5784_v39 = vpop.eup %5783  ;;  %v4154_v5 = vadd.f32 1e-08, %v4122_v36 }
 0x6ad   : > { %v4215_v20 = vmul.f32 %v5784_v39, %v8685_v31  ;;  %v4079_v22 = vpop.xlane.xlu1 %4078 }
 0x6ae   : > { %5789 = vrsqrt.f32 %v4154_v5  ;;  %v4123_v4 = vmul.f32 0.125, %v4079_v22 }
 0x6af   : > { %4247 = vst [vmem:[%s8779_s17 + $0x78] sm:$0xff] %v4215_v20 }
 0x6b0   : > { %v5786_v52 = vpop.eup %5785  ;;  %v4155_v35 = vadd.f32 1e-08, %v4123_v4 }
 0x6b1   : > { %v4216_v54 = vmul.f32 %v5786_v52, %v8691_v46  ;;  %v4081_v9 = vpop.xlane.xlu0 %4080 }
 0x6b2   : > { %5791 = vrsqrt.f32 %v4155_v35  ;;  %v4124_v17 = vmul.f32 0.125, %v4081_v9 }
 0x6b3   : > { %4248 = vst [vmem:[%s8779_s17 + $0x80] sm:$0xff] %v4216_v54 }
 0x6b4   : > { %v5788_v41 = vpop.eup %5787  ;;  %v4156_v47 = vadd.f32 1e-08, %v4124_v17 }
 0x6b5   : > { %v4217_v33 = vmul.f32 %v5788_v41, %v8697_v10  ;;  %v4083_v2 = vpop.xlane.xlu1 %4082 }
 0x6b6   : > { %5793 = vrsqrt.f32 %v4156_v47  ;;  %v4125_v31 = vmul.f32 0.125, %v4083_v2 }
 0x6b7   : > { %4249 = vst [vmem:[%s8779_s17 + $0x88] sm:$0xff] %v4217_v33 }
 0x6b8   : > { %v5790_v7 = vpop.eup %5789  ;;  %v4157_v60 = vadd.f32 1e-08, %v4125_v31 }
 0x6b9   : > { %v4218_v51 = vmul.f32 %v5790_v7, %v8703_v13  ;;  %v4085_v46 = vpop.xlane.xlu0 %4084 }
 0x6ba   : > { %5795 = vrsqrt.f32 %v4157_v60  ;;  %v4126_v18 = vmul.f32 0.125, %v4085_v46 }
 0x6bb   : > { %4250 = vst [vmem:[%s8779_s17 + $0x90] sm:$0xff] %v4218_v51 }
 0x6bc   : > { %v5792_v63 = vpop.eup %5791  ;;  %v4158_v62 = vadd.f32 1e-08, %v4126_v18 }
 0x6bd   : > { %v4219_v10 = vmul.f32 %v5792_v63, %v8709_v29  ;;  %v4087_v42 = vpop.xlane.xlu1 %4086 }
 0x6be   : > { %5797 = vrsqrt.f32 %v4158_v62  ;;  %v4127_v12 = vmul.f32 0.125, %v4087_v42 }
 0x6bf   : > { %4251 = vst [vmem:[%s8779_s17 + $0x98] sm:$0xff] %v4219_v10 }
 0x6c0   : > { %v5794_v58 = vpop.eup %5793  ;;  %v4159_v61 = vadd.f32 1e-08, %v4127_v12 }
 0x6c1   : > { %v4220_v13 = vmul.f32 %v5794_v58, %v8715_v56 }
 0x6c2   : > { %5799 = vrsqrt.f32 %v4159_v61 }
 0x6c3   : > { %4252 = vst [vmem:[%s8779_s17 + $0xa0] sm:$0xff] %v4220_v13 }
 0x6c4   : > { %v5796_v38 = vpop.eup %5795 }
 0x6c5   : > { %v4221_v21 = vmul.f32 %v5796_v38, %v8721_v11 }
 0x6c7   : > { %4253 = vst [vmem:[%s8779_s17 + $0xa8] sm:$0xff] %v4221_v21 }
 0x6c8   : > { %v5798_v26 = vpop.eup %5797 }
 0x6c9   : > { %v4222_v43 = vmul.f32 %v5798_v26, %v8727_v27 }
 0x6cb   : > { %4254 = vst [vmem:[%s8779_s17 + $0xb0] sm:$0xff] %v4222_v43 }
 0x6cc   : > { %v5800_v29 = vpop.eup %5799 }
 0x6cd   : > { %v4223_v28 = vmul.f32 %v5800_v29, %v8731_v32 }
 0x6cf   : > { %4255 = vst [vmem:[%s8779_s17 + $0xb8] sm:$0xff] %v4223_v28 }
 0x6df   : > { %v4091_v25 = vpop.xlane.xlu1 %4090 }
 0x6e0   : > { %v4129_v0 = vmul.f32 0.125, %v4091_v25  ;;  %v4089_v16 = vpop.xlane.xlu0 %4088 }
 0x6e1   : > { %v4128_v59 = vmul.f32 0.125, %v4089_v16 }
 0x6e2   : > { %v4161_v44 = vadd.f32 1e-08, %v4129_v0 }
 0x6e3   : > { %v4160_v56 = vadd.f32 1e-08, %v4128_v59  ;;  %v4095_v3 = vpop.xlane.xlu1 %4094 }
 0x6e4   : > { %5801 = vrsqrt.f32 %v4161_v44  ;;  %v4131_v19 = vmul.f32 0.125, %v4095_v3  ;;  %v4093_v24 = vpop.xlane.xlu0 %4092 }
 0x6e5   : > { %5803 = vrsqrt.f32 %v4160_v56  ;;  %v4130_v11 = vmul.f32 0.125, %v4093_v24 }
 0x6e6   : > { %v4163_v30 = vadd.f32 1e-08, %v4131_v19 }
 0x6e7   : > { %v4162_v55 = vadd.f32 1e-08, %v4130_v11  ;;  %v4099_v27 = vpop.xlane.xlu1 %4098 }
 0x6e8   : > { %5805 = vrsqrt.f32 %v4163_v30  ;;  %v4133_v53 = vmul.f32 0.125, %v4099_v27  ;;  %v4097_v48 = vpop.xlane.xlu0 %4096 }
 0x6e9   : > { %5807 = vrsqrt.f32 %v4162_v55  ;;  %v4132_v32 = vmul.f32 0.125, %v4097_v48 }
 0x6ea   : > { %v4165_v57 = vadd.f32 1e-08, %v4133_v53 }
 0x6eb   : > { %v4164_v14 = vadd.f32 1e-08, %v4132_v32  ;;  %v4103_v6 = vpop.xlane.xlu1 %4102 }
 0x6ec   : > { %5809 = vrsqrt.f32 %v4165_v57  ;;  %v4135_v8 = vmul.f32 0.125, %v4103_v6  ;;  %v4101_v23 = vpop.xlane.xlu0 %4100 }
 0x6ed   : > { %5811 = vrsqrt.f32 %v4164_v14  ;;  %v4134_v36 = vmul.f32 0.125, %v4101_v23 }
 0x6ee   : > { %v5802_v39 = vpop.eup %5801  ;;  %v4167_v5 = vadd.f32 1e-08, %v4135_v8 }
 0x6ef   : > { %v5804_v20 = vpop.eup %5803  ;;  %v4225_v22 = vmul.f32 %v5802_v39, %v8739_v45  ;;  %v4166_v4 = vadd.f32 1e-08, %v4134_v36 }
 0x6f0   : > { %v4224_v52 = vmul.f32 %v5804_v20, %v8743_v1  ;;  %5813 = vrsqrt.f32 %v4167_v5 }
 0x6f1   : > { %4257 = vst [vmem:[%s8779_s17 + $0xc8] sm:$0xff] %v4225_v22  ;;  %5815 = vrsqrt.f32 %v4166_v4 }
 0x6f2   : > { %v5806_v35 = vpop.eup %5805  ;;  %4256 = vst [vmem:[%s8779_s17 + $0xc0] sm:$0xff] %v4224_v52 }
 0x6f3   : > { %v5808_v54 = vpop.eup %5807  ;;  %v4227_v9 = vmul.f32 %v5806_v35, %v8749_v37 }
 0x6f4   : > { %v4226_v17 = vmul.f32 %v5808_v54, %v8753_v15 }
 0x6f5   : > { %4259 = vst [vmem:[%s8779_s17 + $0xd8] sm:$0xff] %v4227_v9 }
 0x6f6   : > { %v5810_v45 = vpop.eup %5809  ;;  %4258 = vst [vmem:[%s8779_s17 + $0xd0] sm:$0xff] %v4226_v17 }
 0x6f7   : > { %v5812_v1 = vpop.eup %5811  ;;  %v4229_v41 = vmul.f32 %v5810_v45, %v8759_v50 }
 0x6f8   : > { %v4228_v47 = vmul.f32 %v5812_v1, %v8763_v34 }
 0x6f9   : > { %4261 = vst [vmem:[%s8779_s17 + $0xe8] sm:$0xff] %v4229_v41 }
 0x6fa   : > { %v5814_v33 = vpop.eup %5813  ;;  %4260 = vst [vmem:[%s8779_s17 + $0xe0] sm:$0xff] %v4228_v47 }
 0x6fb   : > { %v5816_v37 = vpop.eup %5815  ;;  %v4231_v15 = vmul.f32 %v5814_v33, %v8767_v40 }
 0x6fc   : > { %v4230_v50 = vmul.f32 %v5816_v37, %v8771_v49 }
 0x6fd   : > { %4263 = vst [vmem:[%s8779_s17 + $0xf8] sm:$0xff] %v4231_v15 }
 0x6fe   : > { %4262 = vst [vmem:[%s8779_s17 + $0xf0] sm:$0xff] %v4230_v50 }
 0x6ff   : > { %5886 = shalt.err (!%p5883_p7)
}
 0x700   : > { %s5887_s8 = scalar_lea.hbm %s8846_s9, 4096  ;;  %s5891_s14 = scalar_lea.hbm %s8901_s5, 8192 }
 0x701   : > { %p5888_p8 = scmp.ne.s32.totalorder %s8846_s9, %s5887_s8  ;;  %p5892_p1 = scmp.lt.u32.totalorder %s8846_s9, %s8901_s5 }
 0x702   : > { %p5893_p0 = scmp.lt.u32.totalorder %s5891_s14, %s5887_s8  ;;  %p5895_p6 = scmp.lt.u32.totalorder %s5887_s8, %s8846_s9 }
 0x703   : > { %p5889_p11 = pnand %p5888_p8, %p9311_p9 }
 0x704   : > { %p5894_p5 = por %p5893_p0, %p5892_p1 }
 0x705   : > { %p5890_p13 = pneg %p5889_p11 }
 0x706   : > { %p5896_p10 = por %p5895_p6, %p5894_p5 }
 0x708   : > { %p5897_p12 = pnand %p5896_p10, %p5890_p13 }
 0x70a   : > { %5900 = shalt.err (!%p5897_p12)
}
 0x70b   : > { %s5947_s17 = smov 128   ;;  %s5948_s23 = smov 8  }
 0x70c   : > { %5637 = dma.vmem_to_hbm [thread:$0]  (%p9311_p9), %s8848_s25, 4096, %s8846_s9, %s8855_s22, %s5947_s17, %s5947_s17, %s5948_s23  }
 0x70d PF: > { %p5649_p2 = scmp.ge.s32.totalorder %s5939_s21, 2  ;;  %s4293_s26 = sand.u32 1, %s5927_s18  }
 0x70e   : > { %p9312_p3 = scmp.ne.s32.totalorder %s9070_s29, 0  ;;  %s4294_s6 = scalar_lea.sflag [#allocation4], %s4293_s26 }
 0x710   : > { %p5644_p4 = pnand %p5649_p2, %p9312_p3 }
 0x712   : > { %5922 = dma.done.wait (!%p5644_p4), %s4294_s6, 4096  }
 0x713   : > { %5924 = vsyncadd (!%p5644_p4), %s4294_s6, 4294963200  ;;  %p16_p7 = scmp.ge.s32.totalorder %s6004_s24, 4   ;;  %s9313_s18 = smov %s5931_s19 }
 0x714   : > { %s9314_s19 = smov %s5935_s20  ;;  %s9315_s20 = smov %s6015_s27 }
 0x715   : > { %s9316_s21 = smov %s6004_s24  ;;  %18 = sbr.rel (!%p16_p7) target bundleno = 4 (0x4), region = 80 }
 0x71c   :  { %4299 = vsyncpa [#allocation3], 1 }
 0x71d   :  { %4301 = vsyncpa [#allocation3 + $0x1], 1 }
 0x71e   :  { %4302 = vsyncpa [#allocation4], 1 }
 0x71f   :  { %4304 = vsyncpa [#allocation4 + $0x1], 1 }

</bundles_post_ra>
